<compile_context>
chip_gen: v7x
topology: tpu7x:2x2x1
jax: 0.10.0
libtpu: 0.0.40
codegen_flags: <defaults>
</compile_context>

<pallas_src>
import functools
import numpy as np
import jax
import jax.numpy as jnp
from jax import lax
from jax.experimental import pallas as pl
from jax.experimental.pallas import tpu as pltpu


# PyTorch gate order is (i, f, g, o); we pack gate blocks as [i | f | o | g]
# so sigmoid applies to one contiguous 3*HP slab and tanh to the trailing HP.
_GATE_DST = (0, 1, 3, 2)


def _round_up(v, m):
    return (v + m - 1) // m * m


def make_lstm_kernel(num_layers, T, TB, HP):
    """Pallas kernel closure for fixed static sizes.

    refs = [x (T,TB,I) f32,
            (w_ihT (K_l,4HP) bf16, w_hhT (HP,4HP) bf16, b (1,4HP) f32) * L,
            fc_wT (HP,OP) bf16, fc_b (1,OP) f32,
            out (TB,OP) f32,
            gx_scratch (T,TB,4HP) f32, seq_a (T,TB,HP) bf16, seq_b (T,TB,HP) bf16]
    """
    H4 = 4 * HP
    # ~512-row MXU passes for the hoisted input projection.
    chunk_t = max(1, min(T, 512 // max(TB, 1)))
    unroll = min(T, 8)

    def kernel(*refs):
        n_in = 1 + 3 * num_layers + 2
        x_ref = refs[0]
        layer_refs = refs[1:1 + 3 * num_layers]
        fc_w_ref = refs[1 + 3 * num_layers]
        fc_b_ref = refs[2 + 3 * num_layers]
        out_ref = refs[n_in]
        gx_ref, seq_a, seq_b = refs[n_in + 1:]
        seq_bufs = (seq_a, seq_b)

        last_h = None
        for l in range(num_layers):
            w_ih_ref = layer_refs[3 * l]       # (K_l, 4HP) bf16
            w_hh_ref = layer_refs[3 * l + 1]   # (HP,  4HP) bf16
            b_ref = layer_refs[3 * l + 2]      # (1,   4HP) f32

            w_ih = w_ih_ref[...]
            bias = b_ref[...]

            # ---- hoisted input projection, chunked over time ----
            for t0 in range(0, T, chunk_t):
                tc = min(chunk_t, T - t0)
                if l == 0:
                    k_in = x_ref.shape[-1]
                    x_2d = x_ref[pl.ds(t0, tc)].reshape(tc * TB, k_in)
                    x_2d = x_2d.astype(jnp.bfloat16)
                else:
                    x_2d = seq_bufs[(l - 1) % 2][pl.ds(t0, tc)].reshape(tc * TB, HP)
                g = jnp.dot(x_2d, w_ih,
                            preferred_element_type=jnp.float32) + bias
                gx_ref[pl.ds(t0, tc)] = g.reshape(tc, TB, H4)

            seq_out = seq_bufs[l % 2]
            write_seq = l < num_layers - 1

            # W_hh loaded once per layer (loop-invariant across timesteps).
            w_hh = w_hh_ref[...]

            # ---- serial recurrence: only h @ W_hhT per step ----
            def body(t, carry, w_hh=w_hh, seq_out=seq_out, write_seq=write_seq):
                h, c = carry                                   # h bf16, c f32
                gates = gx_ref[t] + jnp.dot(
                    h, w_hh, preferred_element_type=jnp.float32)   # (TB, 4HP) f32
                # gate layout [i | f | o | g]; each block is lane-aligned (HP%128==0)
                sig = jax.nn.sigmoid(gates[:, :3 * HP])
                g_g = jnp.tanh(gates[:, 3 * HP:])
                i_g = sig[:, 0 * HP:1 * HP]
                f_g = sig[:, 1 * HP:2 * HP]
                o_g = sig[:, 2 * HP:3 * HP]
                c_new = f_g * c + i_g * g_g                    # f32 state
                h_new = (o_g * jnp.tanh(c_new)).astype(jnp.bfloat16)
                if write_seq:
                    seq_out[t] = h_new                         # bf16 vst per step
                return h_new, c_new

            h0 = jnp.zeros((TB, HP), jnp.bfloat16)
            c0 = jnp.zeros((TB, HP), jnp.float32)
            last_h, _ = lax.fori_loop(0, T, body, (h0, c0), unroll=unroll)

        # ---- fc on last timestep's hidden state (lane-dense padded output) ----
        out = jnp.dot(last_h, fc_w_ref[...],
                      preferred_element_type=jnp.float32) + fc_b_ref[...]
        out_ref[...] = out                                     # (TB, OP)

    return kernel


def pack_lstm_params(params, *, input_size, hidden_size, num_layers):
    """One-time host-side packing of weights (bf16) / biases (f32).

    Done once per model, outside the forward path, so the forward only moves x.
    """
    H = hidden_size
    HP = _round_up(H, 128)     # per-gate lane-aligned padded width
    OP = 128                   # lane-dense fc output slab

    def pack_gate_cols(w_t, n_rows):
        # w_t: (K, 4H) -> (n_rows, 4HP); src gate g goes to block _GATE_DST[g]
        K = w_t.shape[0]
        out = np.zeros((n_rows, 4 * HP), np.float32)
        for src in range(4):
            dst = _GATE_DST[src]
            out[:K, dst * HP:dst * HP + H] = w_t[:, src * H:(src + 1) * H]
        return out

    def pack_gate_bias(bv):
        out = np.zeros((1, 4 * HP), np.float32)
        for src in range(4):
            dst = _GATE_DST[src]
            out[0, dst * HP:dst * HP + H] = bv[src * H:(src + 1) * H]
        return out

    layers = []
    for l in range(num_layers):
        w_ih, w_hh, b_ih, b_hh = [np.asarray(p, np.float32)
                                  for p in params["layers"][l]]
        in_sz = w_ih.shape[1]
        k_rows = in_sz if l == 0 else HP       # pad hidden-input rows for l>0
        layers.append((
            jnp.asarray(pack_gate_cols(w_ih.T, k_rows), jnp.bfloat16),
            jnp.asarray(pack_gate_cols(w_hh.T, HP), jnp.bfloat16),
            jnp.asarray(pack_gate_bias(b_ih + b_hh), jnp.float32),
        ))

    fc_w, fc_b = [np.asarray(p, np.float32) for p in params["fc"]]
    fc_wT = np.zeros((HP, OP), np.float32)
    fc_wT[:H, 0] = fc_w[0, :]
    fc_bp = np.zeros((1, OP), np.float32)
    fc_bp[0, 0] = fc_b[0]

    return {
        "layers": layers,
        "fc_w": jnp.asarray(fc_wT, jnp.bfloat16),
        "fc_b": jnp.asarray(fc_bp, jnp.float32),
    }


@functools.partial(jax.jit, static_argnames=("hidden_size", "num_layers"))
def lstm_model_forward(x, packed, *, hidden_size, num_layers):
    """x: (B, T, I) float32, batch-first (same as the PyTorch module)."""
    B, T, I = x.shape
    H = hidden_size
    HP = _round_up(H, 128)
    OP = 128

    # batch padding / tiling: sublane tile >= 8; prefer >=2 grid points when
    # the padded batch supports it (v7x megacore), cap tiles at 128 rows.
    BP = _round_up(B, 8)
    if BP > 128:
        TB = 128
        BP = _round_up(B, TB)
    elif BP >= 16 and BP % 16 == 0:
        TB = BP // 2
    else:
        TB = BP
    n_bt = BP // TB

    # time-major, batch-padded input (f32; cast to bf16 at the dot)
    x_tm = jnp.transpose(x.astype(jnp.float32), (1, 0, 2))       # (T, B, I)
    x_tm = jnp.pad(x_tm, ((0, 0), (0, BP - B), (0, 0)))          # (T, BP, I)

    kernel_inputs = [x_tm]
    in_specs = [pl.BlockSpec((T, TB, I), lambda b: (0, b, 0))]

    for l in range(num_layers):
        w_ihT, w_hhT, bias = packed["layers"][l]
        k_rows = w_ihT.shape[0]
        kernel_inputs += [w_ihT, w_hhT, bias]
        in_specs += [pl.BlockSpec((k_rows, 4 * HP), lambda b: (0, 0)),
                     pl.BlockSpec((HP, 4 * HP), lambda b: (0, 0)),
                     pl.BlockSpec((1, 4 * HP), lambda b: (0, 0))]

    kernel_inputs += [packed["fc_w"], packed["fc_b"]]
    in_specs += [pl.BlockSpec((HP, OP), lambda b: (0, 0)),
                 pl.BlockSpec((1, OP), lambda b: (0, 0))]

    kernel = make_lstm_kernel(num_layers, T, TB, HP)

    # VMEM budget: gx (f32) + 2x seq (bf16) scratch + double-buffered I/O tiles.
    gx_bytes = T * TB * 4 * HP * 4
    seq_bytes = 2 * T * TB * HP * 2
    x_bytes = 2 * T * TB * I * 4
    w_bytes = 2 * sum(int(np.prod(a.shape)) * a.dtype.itemsize
                      for a in kernel_inputs[1:])
    out_bytes = 2 * TB * OP * 4
    vmem_needed = gx_bytes + seq_bytes + x_bytes + w_bytes + out_bytes
    vmem_limit = int(min(max(vmem_needed + (4 << 20), 32 << 20), 128 << 20))

    out = pl.pallas_call(
        kernel,
        out_shape=jax.ShapeDtypeStruct((BP, OP), jnp.float32),
        grid_spec=pltpu.PrefetchScalarGridSpec(
            num_scalar_prefetch=0,
            grid=(n_bt,),
            in_specs=in_specs,
            out_specs=pl.BlockSpec((TB, OP), lambda b: (b, 0)),
            scratch_shapes=[
                pltpu.VMEM((T, TB, 4 * HP), jnp.float32),   # batched input-proj gates
                pltpu.VMEM((T, TB, HP), jnp.bfloat16),      # inter-layer seq (ping)
                pltpu.VMEM((T, TB, HP), jnp.bfloat16),      # inter-layer seq (pong)
            ],
        ),
        compiler_params=pltpu.CompilerParams(
            dimension_semantics=("parallel",),   # batch tiles -> both TCs on v7x
            vmem_limit_bytes=vmem_limit,
        ),
    )(*kernel_inputs)

    res = out[:B, 0]
    if B == 1:                  # match torch .squeeze(): 0-d result for B == 1
        res = res[0]
    return res


# ----------------------------- reference (numpy) -----------------------------
def lstm_model_ref(x, params, *, hidden_size, num_layers):
    x = np.asarray(x, np.float64)
    B, T, _ = x.shape
    H = hidden_size

    def sigmoid(z):
        return 1.0 / (1.0 + np.exp(-z))

    layer_in = x
    h = None
    for l in range(num_layers):
        w_ih, w_hh, b_ih, b_hh = [np.asarray(p, np.float64)
                                  for p in params["layers"][l]]
        h = np.zeros((B, H)); c = np.zeros((B, H))
        outs = []
        for t in range(T):
            x_t = layer_in[:, t, :]
            gates = x_t @ w_ih.T + h @ w_hh.T + b_ih + b_hh
            i_g = sigmoid(gates[:, 0 * H:1 * H])
            f_g = sigmoid(gates[:, 1 * H:2 * H])
            g_g = np.tanh(gates[:, 2 * H:3 * H])
            o_g = sigmoid(gates[:, 3 * H:4 * H])
            c = f_g * c + i_g * g_g
            h = o_g * np.tanh(c)
            outs.append(h)
        layer_in = np.stack(outs, axis=1)
    fc_w, fc_b = [np.asarray(p, np.float64) for p in params["fc"]]
    return (h @ fc_w.T + fc_b).squeeze()


# ----------------------------------- main ------------------------------------
if __name__ == "__main__":
    B, T = 2, 8            # batch, sequence length
    input_size = 4
    hidden_size = 32
    num_layers = 2

    key = jax.random.PRNGKey(0)
    keys = iter(jax.random.split(key, 64))
    scale = 1.0 / np.sqrt(hidden_size)

    def u(shape):
        return jax.random.uniform(next(keys), shape, jnp.float32, -scale, scale)

    # Deterministic parameter init (PyTorch LSTM/Linear layouts).
    params = {"layers": [], "fc": None}
    for l in range(num_layers):
        in_sz = input_size if l == 0 else hidden_size
        w_ih = u((4 * hidden_size, in_sz))
        w_hh = u((4 * hidden_size, hidden_size))
        b_ih = u((4 * hidden_size,))
        b_hh = u((4 * hidden_size,))
        params["layers"].append((w_ih, w_hh, b_ih, b_hh))
    fc_w = u((1, hidden_size))
    fc_b = u((1,))
    params["fc"] = (fc_w, fc_b)

    x = jax.random.normal(next(keys), (B, T, input_size), jnp.float32)

    # One-time weight packing (cached outside the forward path).
    packed = pack_lstm_params(params, input_size=input_size,
                              hidden_size=hidden_size, num_layers=num_layers)

    out = lstm_model_forward(x, packed, hidden_size=hidden_size,
                             num_layers=num_layers)
    out = jax.block_until_ready(out)

    ref = lstm_model_ref(np.asarray(x), params,
                         hidden_size=hidden_size, num_layers=num_layers)

    # Tolerance accounts for bf16 MXU operands / bf16 h carry (f32 accumulation,
    # f32 cell state).
    np.testing.assert_allclose(np.asarray(out), ref, rtol=2e-2, atol=2e-2)
    print("KERNEL_OK")
</pallas_src>

<mosaic_0001>
module attributes {stable_mosaic.version = 11 : i64} {
  func.func @kernel(%arg0: i32, %arg1: memref<8x8x4xf32, #tpu.memory_space<vmem>>, %arg2: memref<4x512xbf16, #tpu.memory_space<vmem>>, %arg3: memref<128x512xbf16, #tpu.memory_space<vmem>>, %arg4: memref<1x512xf32, #tpu.memory_space<vmem>>, %arg5: memref<128x512xbf16, #tpu.memory_space<vmem>>, %arg6: memref<128x512xbf16, #tpu.memory_space<vmem>>, %arg7: memref<1x512xf32, #tpu.memory_space<vmem>>, %arg8: memref<128x128xbf16, #tpu.memory_space<vmem>>, %arg9: memref<1x128xf32, #tpu.memory_space<vmem>>, %arg10: memref<8x128xf32, #tpu.memory_space<vmem>>, %arg11: memref<8x8x512xf32, #tpu.memory_space<vmem>>, %arg12: memref<8x8x128xbf16, #tpu.memory_space<vmem>>, %arg13: memref<8x8x128xbf16, #tpu.memory_space<vmem>>) attributes {dimension_semantics = [#tpu.dimension_semantics<parallel>], iteration_bounds = array<i64: 1>, scalar_prefetch = 0 : i64, scratch_operands = 3 : i64, tpu.core_type = #tpu.core_type<tc>, window_params = [{transform_indices = @transform_0, window_bounds = array<i64: 8, 8, 4>}, {pipeline_mode = #tpu.pipeline_mode<synchronous>, transform_indices = @transform_1, window_bounds = array<i64: 4, 512>}, {pipeline_mode = #tpu.pipeline_mode<synchronous>, transform_indices = @transform_2, window_bounds = array<i64: 128, 512>}, {pipeline_mode = #tpu.pipeline_mode<synchronous>, transform_indices = @transform_3, window_bounds = array<i64: 1, 512>}, {pipeline_mode = #tpu.pipeline_mode<synchronous>, transform_indices = @transform_4, window_bounds = array<i64: 128, 512>}, {pipeline_mode = #tpu.pipeline_mode<synchronous>, transform_indices = @transform_5, window_bounds = array<i64: 128, 512>}, {pipeline_mode = #tpu.pipeline_mode<synchronous>, transform_indices = @transform_6, window_bounds = array<i64: 1, 512>}, {pipeline_mode = #tpu.pipeline_mode<synchronous>, transform_indices = @transform_7, window_bounds = array<i64: 128, 128>}, {pipeline_mode = #tpu.pipeline_mode<synchronous>, transform_indices = @transform_8, window_bounds = array<i64: 1, 128>}, {transform_indices = @transform_9, window_bounds = array<i64: 8, 128>}]} {
    %c0 = arith.constant 0 : index
    %c0_0 = arith.constant 0 : index
    %0 = vector.load %arg2[%c0, %c0_0] : memref<4x512xbf16, #tpu.memory_space<vmem>>, vector<4x512xbf16>
    %c0_1 = arith.constant 0 : index
    %c0_2 = arith.constant 0 : index
    %1 = vector.load %arg4[%c0_1, %c0_2] : memref<1x512xf32, #tpu.memory_space<vmem>>, vector<1x512xf32>
    %c0_3 = arith.constant 0 : index
    %c0_4 = arith.constant 0 : index
    %c0_5 = arith.constant 0 : index
    %2 = vector.load %arg1[%c0_3, %c0_4, %c0_5] : memref<8x8x4xf32, #tpu.memory_space<vmem>>, vector<8x8x4xf32>
    %3 = vector.shape_cast %2 : vector<8x8x4xf32> to vector<64x4xf32>
    %4 = arith.truncf %3 : vector<64x4xf32> to vector<64x4xbf16>
    %cst = arith.constant dense<0.000000e+00> : vector<64x512xf32>
    %5 = tpu.matmul %4, %0, %cst {dimension_numbers = #tpu.dot_dimension_numbers<[1], [0], [0], [1], [0, 0, 1, 1], [], []>} : vector<64x4xbf16>, vector<4x512xbf16>, vector<64x512xf32> -> vector<64x512xf32>
    %6 = vector.broadcast %1 : vector<1x512xf32> to vector<64x512xf32>
    %7 = arith.addf %5, %6 : vector<64x512xf32>
    %8 = vector.shape_cast %7 : vector<64x512xf32> to vector<8x8x512xf32>
    %c0_6 = arith.constant 0 : index
    %c0_7 = arith.constant 0 : index
    %c0_8 = arith.constant 0 : index
    %9 = vector.load %arg11[%c0_6, %c0_7, %c0_8] : memref<8x8x512xf32, #tpu.memory_space<vmem>>, vector<8x8x512xf32>
    tpu.vector_store %arg11[%c0_6, %c0_7, %c0_8], %8 {strides = array<i32>} : memref<8x8x512xf32, #tpu.memory_space<vmem>>, vector<8x8x512xf32>,
    %c0_9 = arith.constant 0 : index
    %c0_10 = arith.constant 0 : index
    %10 = vector.load %arg3[%c0_9, %c0_10] : memref<128x512xbf16, #tpu.memory_space<vmem>>, vector<128x512xbf16>
    %cst_11 = arith.constant 0.000000e+00 : bf16
    %11 = vector.broadcast %cst_11 : bf16 to vector<8x128xbf16>
    %cst_12 = arith.constant 0.000000e+00 : f32
    %12 = vector.broadcast %cst_12 : f32 to vector<8x128xf32>
    %c0_i32 = arith.constant 0 : i32
    %13 = arith.index_cast %c0_i32 : i32 to index
    %c0_13 = arith.constant 0 : index
    %c0_14 = arith.constant 0 : index
    %14 = vector.load %arg11[%13, %c0_13, %c0_14] : memref<8x8x512xf32, #tpu.memory_space<vmem>>, vector<1x8x512xf32>
    %15 = vector.shape_cast %14 : vector<1x8x512xf32> to vector<8x512xf32>
    %cst_15 = arith.constant dense<0.000000e+00> : vector<8x512xf32>
    %16 = tpu.matmul %11, %10, %cst_15 {dimension_numbers = #tpu.dot_dimension_numbers<[1], [0], [0], [1], [0, 0, 1, 1], [], []>} : vector<8x128xbf16>, vector<128x512xbf16>, vector<8x512xf32> -> vector<8x512xf32>
    %17 = arith.addf %15, %16 : vector<8x512xf32>
    %18 = vector.extract_strided_slice %17 {offsets = [0, 0], sizes = [8, 384], strides = [1, 1]} : vector<8x512xf32> to vector<8x384xf32>
    %19 = arith.negf %18 : vector<8x384xf32>
    %20 = math.exp %19 : vector<8x384xf32>
    %cst_16 = arith.constant 1.000000e+00 : f32
    %21 = vector.broadcast %cst_16 : f32 to vector<8x384xf32>
    %22 = arith.addf %21, %20 : vector<8x384xf32>
    %23 = arith.divf %21, %22 : vector<8x384xf32>
    %24 = vector.extract_strided_slice %17 {offsets = [0, 384], sizes = [8, 128], strides = [1, 1]} : vector<8x512xf32> to vector<8x128xf32>
    %25 = math.tanh %24 : vector<8x128xf32>
    %26 = vector.extract_strided_slice %23 {offsets = [0, 0], sizes = [8, 128], strides = [1, 1]} : vector<8x384xf32> to vector<8x128xf32>
    %27 = vector.extract_strided_slice %23 {offsets = [0, 128], sizes = [8, 128], strides = [1, 1]} : vector<8x384xf32> to vector<8x128xf32>
    %28 = vector.extract_strided_slice %23 {offsets = [0, 256], sizes = [8, 128], strides = [1, 1]} : vector<8x384xf32> to vector<8x128xf32>
    %29 = arith.mulf %27, %12 : vector<8x128xf32>
    %30 = arith.mulf %26, %25 : vector<8x128xf32>
    %31 = arith.addf %29, %30 : vector<8x128xf32>
    %32 = math.tanh %31 : vector<8x128xf32>
    %33 = arith.mulf %28, %32 : vector<8x128xf32>
    %34 = arith.truncf %33 : vector<8x128xf32> to vector<8x128xbf16>
    %35 = arith.index_cast %c0_i32 : i32 to index
    %c0_17 = arith.constant 0 : index
    %c0_18 = arith.constant 0 : index
    %36 = vector.load %arg12[%35, %c0_17, %c0_18] : memref<8x8x128xbf16, #tpu.memory_space<vmem>>, vector<1x8x128xbf16>
    %37 = vector.shape_cast %36 : vector<1x8x128xbf16> to vector<8x128xbf16>
    %38 = vector.shape_cast %34 : vector<8x128xbf16> to vector<1x8x128xbf16>
    tpu.vector_store %arg12[%35, %c0_17, %c0_18], %38 {strides = array<i32>} : memref<8x8x128xbf16, #tpu.memory_space<vmem>>, vector<1x8x128xbf16>,
    %c1_i32 = arith.constant 1 : i32
    %39 = arith.index_cast %c1_i32 : i32 to index
    %c0_19 = arith.constant 0 : index
    %c0_20 = arith.constant 0 : index
    %40 = vector.load %arg11[%39, %c0_19, %c0_20] : memref<8x8x512xf32, #tpu.memory_space<vmem>>, vector<1x8x512xf32>
    %41 = vector.shape_cast %40 : vector<1x8x512xf32> to vector<8x512xf32>
    %cst_21 = arith.constant dense<0.000000e+00> : vector<8x512xf32>
    %42 = tpu.matmul %34, %10, %cst_21 {dimension_numbers = #tpu.dot_dimension_numbers<[1], [0], [0], [1], [0, 0, 1, 1], [], []>} : vector<8x128xbf16>, vector<128x512xbf16>, vector<8x512xf32> -> vector<8x512xf32>
    %43 = arith.addf %41, %42 : vector<8x512xf32>
    %44 = vector.extract_strided_slice %43 {offsets = [0, 0], sizes = [8, 384], strides = [1, 1]} : vector<8x512xf32> to vector<8x384xf32>
    %45 = arith.negf %44 : vector<8x384xf32>
    %46 = math.exp %45 : vector<8x384xf32>
    %cst_22 = arith.constant 1.000000e+00 : f32
    %47 = vector.broadcast %cst_22 : f32 to vector<8x384xf32>
    %48 = arith.addf %47, %46 : vector<8x384xf32>
    %49 = arith.divf %47, %48 : vector<8x384xf32>
    %50 = vector.extract_strided_slice %43 {offsets = [0, 384], sizes = [8, 128], strides = [1, 1]} : vector<8x512xf32> to vector<8x128xf32>
    %51 = math.tanh %50 : vector<8x128xf32>
    %52 = vector.extract_strided_slice %49 {offsets = [0, 0], sizes = [8, 128], strides = [1, 1]} : vector<8x384xf32> to vector<8x128xf32>
    %53 = vector.extract_strided_slice %49 {offsets = [0, 128], sizes = [8, 128], strides = [1, 1]} : vector<8x384xf32> to vector<8x128xf32>
    %54 = vector.extract_strided_slice %49 {offsets = [0, 256], sizes = [8, 128], strides = [1, 1]} : vector<8x384xf32> to vector<8x128xf32>
    %55 = arith.mulf %53, %31 : vector<8x128xf32>
    %56 = arith.mulf %52, %51 : vector<8x128xf32>
    %57 = arith.addf %55, %56 : vector<8x128xf32>
    %58 = math.tanh %57 : vector<8x128xf32>
    %59 = arith.mulf %54, %58 : vector<8x128xf32>
    %60 = arith.truncf %59 : vector<8x128xf32> to vector<8x128xbf16>
    %61 = arith.index_cast %c1_i32 : i32 to index
    %c0_23 = arith.constant 0 : index
    %c0_24 = arith.constant 0 : index
    %62 = vector.load %arg12[%61, %c0_23, %c0_24] : memref<8x8x128xbf16, #tpu.memory_space<vmem>>, vector<1x8x128xbf16>
    %63 = vector.shape_cast %62 : vector<1x8x128xbf16> to vector<8x128xbf16>
    %64 = vector.shape_cast %60 : vector<8x128xbf16> to vector<1x8x128xbf16>
    tpu.vector_store %arg12[%61, %c0_23, %c0_24], %64 {strides = array<i32>} : memref<8x8x128xbf16, #tpu.memory_space<vmem>>, vector<1x8x128xbf16>,
    %c2_i32 = arith.constant 2 : i32
    %65 = arith.index_cast %c2_i32 : i32 to index
    %c0_25 = arith.constant 0 : index
    %c0_26 = arith.constant 0 : index
    %66 = vector.load %arg11[%65, %c0_25, %c0_26] : memref<8x8x512xf32, #tpu.memory_space<vmem>>, vector<1x8x512xf32>
    %67 = vector.shape_cast %66 : vector<1x8x512xf32> to vector<8x512xf32>
    %cst_27 = arith.constant dense<0.000000e+00> : vector<8x512xf32>
    %68 = tpu.matmul %60, %10, %cst_27 {dimension_numbers = #tpu.dot_dimension_numbers<[1], [0], [0], [1], [0, 0, 1, 1], [], []>} : vector<8x128xbf16>, vector<128x512xbf16>, vector<8x512xf32> -> vector<8x512xf32>
    %69 = arith.addf %67, %68 : vector<8x512xf32>
    %70 = vector.extract_strided_slice %69 {offsets = [0, 0], sizes = [8, 384], strides = [1, 1]} : vector<8x512xf32> to vector<8x384xf32>
    %71 = arith.negf %70 : vector<8x384xf32>
    %72 = math.exp %71 : vector<8x384xf32>
    %cst_28 = arith.constant 1.000000e+00 : f32
    %73 = vector.broadcast %cst_28 : f32 to vector<8x384xf32>
    %74 = arith.addf %73, %72 : vector<8x384xf32>
    %75 = arith.divf %73, %74 : vector<8x384xf32>
    %76 = vector.extract_strided_slice %69 {offsets = [0, 384], sizes = [8, 128], strides = [1, 1]} : vector<8x512xf32> to vector<8x128xf32>
    %77 = math.tanh %76 : vector<8x128xf32>
    %78 = vector.extract_strided_slice %75 {offsets = [0, 0], sizes = [8, 128], strides = [1, 1]} : vector<8x384xf32> to vector<8x128xf32>
    %79 = vector.extract_strided_slice %75 {offsets = [0, 128], sizes = [8, 128], strides = [1, 1]} : vector<8x384xf32> to vector<8x128xf32>
    %80 = vector.extract_strided_slice %75 {offsets = [0, 256], sizes = [8, 128], strides = [1, 1]} : vector<8x384xf32> to vector<8x128xf32>
    %81 = arith.mulf %79, %57 : vector<8x128xf32>
    %82 = arith.mulf %78, %77 : vector<8x128xf32>
    %83 = arith.addf %81, %82 : vector<8x128xf32>
    %84 = math.tanh %83 : vector<8x128xf32>
    %85 = arith.mulf %80, %84 : vector<8x128xf32>
    %86 = arith.truncf %85 : vector<8x128xf32> to vector<8x128xbf16>
    %87 = arith.index_cast %c2_i32 : i32 to index
    %c0_29 = arith.constant 0 : index
    %c0_30 = arith.constant 0 : index
    %88 = vector.load %arg12[%87, %c0_29, %c0_30] : memref<8x8x128xbf16, #tpu.memory_space<vmem>>, vector<1x8x128xbf16>
    %89 = vector.shape_cast %88 : vector<1x8x128xbf16> to vector<8x128xbf16>
    %90 = vector.shape_cast %86 : vector<8x128xbf16> to vector<1x8x128xbf16>
    tpu.vector_store %arg12[%87, %c0_29, %c0_30], %90 {strides = array<i32>} : memref<8x8x128xbf16, #tpu.memory_space<vmem>>, vector<1x8x128xbf16>,
    %c3_i32 = arith.constant 3 : i32
    %91 = arith.index_cast %c3_i32 : i32 to index
    %c0_31 = arith.constant 0 : index
    %c0_32 = arith.constant 0 : index
    %92 = vector.load %arg11[%91, %c0_31, %c0_32] : memref<8x8x512xf32, #tpu.memory_space<vmem>>, vector<1x8x512xf32>
    %93 = vector.shape_cast %92 : vector<1x8x512xf32> to vector<8x512xf32>
    %cst_33 = arith.constant dense<0.000000e+00> : vector<8x512xf32>
    %94 = tpu.matmul %86, %10, %cst_33 {dimension_numbers = #tpu.dot_dimension_numbers<[1], [0], [0], [1], [0, 0, 1, 1], [], []>} : vector<8x128xbf16>, vector<128x512xbf16>, vector<8x512xf32> -> vector<8x512xf32>
    %95 = arith.addf %93, %94 : vector<8x512xf32>
    %96 = vector.extract_strided_slice %95 {offsets = [0, 0], sizes = [8, 384], strides = [1, 1]} : vector<8x512xf32> to vector<8x384xf32>
    %97 = arith.negf %96 : vector<8x384xf32>
    %98 = math.exp %97 : vector<8x384xf32>
    %cst_34 = arith.constant 1.000000e+00 : f32
    %99 = vector.broadcast %cst_34 : f32 to vector<8x384xf32>
    %100 = arith.addf %99, %98 : vector<8x384xf32>
    %101 = arith.divf %99, %100 : vector<8x384xf32>
    %102 = vector.extract_strided_slice %95 {offsets = [0, 384], sizes = [8, 128], strides = [1, 1]} : vector<8x512xf32> to vector<8x128xf32>
    %103 = math.tanh %102 : vector<8x128xf32>
    %104 = vector.extract_strided_slice %101 {offsets = [0, 0], sizes = [8, 128], strides = [1, 1]} : vector<8x384xf32> to vector<8x128xf32>
    %105 = vector.extract_strided_slice %101 {offsets = [0, 128], sizes = [8, 128], strides = [1, 1]} : vector<8x384xf32> to vector<8x128xf32>
    %106 = vector.extract_strided_slice %101 {offsets = [0, 256], sizes = [8, 128], strides = [1, 1]} : vector<8x384xf32> to vector<8x128xf32>
    %107 = arith.mulf %105, %83 : vector<8x128xf32>
    %108 = arith.mulf %104, %103 : vector<8x128xf32>
    %109 = arith.addf %107, %108 : vector<8x128xf32>
    %110 = math.tanh %109 : vector<8x128xf32>
    %111 = arith.mulf %106, %110 : vector<8x128xf32>
    %112 = arith.truncf %111 : vector<8x128xf32> to vector<8x128xbf16>
    %113 = arith.index_cast %c3_i32 : i32 to index
    %c0_35 = arith.constant 0 : index
    %c0_36 = arith.constant 0 : index
    %114 = vector.load %arg12[%113, %c0_35, %c0_36] : memref<8x8x128xbf16, #tpu.memory_space<vmem>>, vector<1x8x128xbf16>
    %115 = vector.shape_cast %114 : vector<1x8x128xbf16> to vector<8x128xbf16>
    %116 = vector.shape_cast %112 : vector<8x128xbf16> to vector<1x8x128xbf16>
    tpu.vector_store %arg12[%113, %c0_35, %c0_36], %116 {strides = array<i32>} : memref<8x8x128xbf16, #tpu.memory_space<vmem>>, vector<1x8x128xbf16>,
    %c4_i32 = arith.constant 4 : i32
    %117 = arith.index_cast %c4_i32 : i32 to index
    %c0_37 = arith.constant 0 : index
    %c0_38 = arith.constant 0 : index
    %118 = vector.load %arg11[%117, %c0_37, %c0_38] : memref<8x8x512xf32, #tpu.memory_space<vmem>>, vector<1x8x512xf32>
    %119 = vector.shape_cast %118 : vector<1x8x512xf32> to vector<8x512xf32>
    %cst_39 = arith.constant dense<0.000000e+00> : vector<8x512xf32>
    %120 = tpu.matmul %112, %10, %cst_39 {dimension_numbers = #tpu.dot_dimension_numbers<[1], [0], [0], [1], [0, 0, 1, 1], [], []>} : vector<8x128xbf16>, vector<128x512xbf16>, vector<8x512xf32> -> vector<8x512xf32>
    %121 = arith.addf %119, %120 : vector<8x512xf32>
    %122 = vector.extract_strided_slice %121 {offsets = [0, 0], sizes = [8, 384], strides = [1, 1]} : vector<8x512xf32> to vector<8x384xf32>
    %123 = arith.negf %122 : vector<8x384xf32>
    %124 = math.exp %123 : vector<8x384xf32>
    %cst_40 = arith.constant 1.000000e+00 : f32
    %125 = vector.broadcast %cst_40 : f32 to vector<8x384xf32>
    %126 = arith.addf %125, %124 : vector<8x384xf32>
    %127 = arith.divf %125, %126 : vector<8x384xf32>
    %128 = vector.extract_strided_slice %121 {offsets = [0, 384], sizes = [8, 128], strides = [1, 1]} : vector<8x512xf32> to vector<8x128xf32>
    %129 = math.tanh %128 : vector<8x128xf32>
    %130 = vector.extract_strided_slice %127 {offsets = [0, 0], sizes = [8, 128], strides = [1, 1]} : vector<8x384xf32> to vector<8x128xf32>
    %131 = vector.extract_strided_slice %127 {offsets = [0, 128], sizes = [8, 128], strides = [1, 1]} : vector<8x384xf32> to vector<8x128xf32>
    %132 = vector.extract_strided_slice %127 {offsets = [0, 256], sizes = [8, 128], strides = [1, 1]} : vector<8x384xf32> to vector<8x128xf32>
    %133 = arith.mulf %131, %109 : vector<8x128xf32>
    %134 = arith.mulf %130, %129 : vector<8x128xf32>
    %135 = arith.addf %133, %134 : vector<8x128xf32>
    %136 = math.tanh %135 : vector<8x128xf32>
    %137 = arith.mulf %132, %136 : vector<8x128xf32>
    %138 = arith.truncf %137 : vector<8x128xf32> to vector<8x128xbf16>
    %139 = arith.index_cast %c4_i32 : i32 to index
    %c0_41 = arith.constant 0 : index
    %c0_42 = arith.constant 0 : index
    %140 = vector.load %arg12[%139, %c0_41, %c0_42] : memref<8x8x128xbf16, #tpu.memory_space<vmem>>, vector<1x8x128xbf16>
    %141 = vector.shape_cast %140 : vector<1x8x128xbf16> to vector<8x128xbf16>
    %142 = vector.shape_cast %138 : vector<8x128xbf16> to vector<1x8x128xbf16>
    tpu.vector_store %arg12[%139, %c0_41, %c0_42], %142 {strides = array<i32>} : memref<8x8x128xbf16, #tpu.memory_space<vmem>>, vector<1x8x128xbf16>,
    %c5_i32 = arith.constant 5 : i32
    %143 = arith.index_cast %c5_i32 : i32 to index
    %c0_43 = arith.constant 0 : index
    %c0_44 = arith.constant 0 : index
    %144 = vector.load %arg11[%143, %c0_43, %c0_44] : memref<8x8x512xf32, #tpu.memory_space<vmem>>, vector<1x8x512xf32>
    %145 = vector.shape_cast %144 : vector<1x8x512xf32> to vector<8x512xf32>
    %cst_45 = arith.constant dense<0.000000e+00> : vector<8x512xf32>
    %146 = tpu.matmul %138, %10, %cst_45 {dimension_numbers = #tpu.dot_dimension_numbers<[1], [0], [0], [1], [0, 0, 1, 1], [], []>} : vector<8x128xbf16>, vector<128x512xbf16>, vector<8x512xf32> -> vector<8x512xf32>
    %147 = arith.addf %145, %146 : vector<8x512xf32>
    %148 = vector.extract_strided_slice %147 {offsets = [0, 0], sizes = [8, 384], strides = [1, 1]} : vector<8x512xf32> to vector<8x384xf32>
    %149 = arith.negf %148 : vector<8x384xf32>
    %150 = math.exp %149 : vector<8x384xf32>
    %cst_46 = arith.constant 1.000000e+00 : f32
    %151 = vector.broadcast %cst_46 : f32 to vector<8x384xf32>
    %152 = arith.addf %151, %150 : vector<8x384xf32>
    %153 = arith.divf %151, %152 : vector<8x384xf32>
    %154 = vector.extract_strided_slice %147 {offsets = [0, 384], sizes = [8, 128], strides = [1, 1]} : vector<8x512xf32> to vector<8x128xf32>
    %155 = math.tanh %154 : vector<8x128xf32>
    %156 = vector.extract_strided_slice %153 {offsets = [0, 0], sizes = [8, 128], strides = [1, 1]} : vector<8x384xf32> to vector<8x128xf32>
    %157 = vector.extract_strided_slice %153 {offsets = [0, 128], sizes = [8, 128], strides = [1, 1]} : vector<8x384xf32> to vector<8x128xf32>
    %158 = vector.extract_strided_slice %153 {offsets = [0, 256], sizes = [8, 128], strides = [1, 1]} : vector<8x384xf32> to vector<8x128xf32>
    %159 = arith.mulf %157, %135 : vector<8x128xf32>
    %160 = arith.mulf %156, %155 : vector<8x128xf32>
    %161 = arith.addf %159, %160 : vector<8x128xf32>
    %162 = math.tanh %161 : vector<8x128xf32>
    %163 = arith.mulf %158, %162 : vector<8x128xf32>
    %164 = arith.truncf %163 : vector<8x128xf32> to vector<8x128xbf16>
    %165 = arith.index_cast %c5_i32 : i32 to index
    %c0_47 = arith.constant 0 : index
    %c0_48 = arith.constant 0 : index
    %166 = vector.load %arg12[%165, %c0_47, %c0_48] : memref<8x8x128xbf16, #tpu.memory_space<vmem>>, vector<1x8x128xbf16>
    %167 = vector.shape_cast %166 : vector<1x8x128xbf16> to vector<8x128xbf16>
    %168 = vector.shape_cast %164 : vector<8x128xbf16> to vector<1x8x128xbf16>
    tpu.vector_store %arg12[%165, %c0_47, %c0_48], %168 {strides = array<i32>} : memref<8x8x128xbf16, #tpu.memory_space<vmem>>, vector<1x8x128xbf16>,
    %c6_i32 = arith.constant 6 : i32
    %169 = arith.index_cast %c6_i32 : i32 to index
    %c0_49 = arith.constant 0 : index
    %c0_50 = arith.constant 0 : index
    %170 = vector.load %arg11[%169, %c0_49, %c0_50] : memref<8x8x512xf32, #tpu.memory_space<vmem>>, vector<1x8x512xf32>
    %171 = vector.shape_cast %170 : vector<1x8x512xf32> to vector<8x512xf32>
    %cst_51 = arith.constant dense<0.000000e+00> : vector<8x512xf32>
    %172 = tpu.matmul %164, %10, %cst_51 {dimension_numbers = #tpu.dot_dimension_numbers<[1], [0], [0], [1], [0, 0, 1, 1], [], []>} : vector<8x128xbf16>, vector<128x512xbf16>, vector<8x512xf32> -> vector<8x512xf32>
    %173 = arith.addf %171, %172 : vector<8x512xf32>
    %174 = vector.extract_strided_slice %173 {offsets = [0, 0], sizes = [8, 384], strides = [1, 1]} : vector<8x512xf32> to vector<8x384xf32>
    %175 = arith.negf %174 : vector<8x384xf32>
    %176 = math.exp %175 : vector<8x384xf32>
    %cst_52 = arith.constant 1.000000e+00 : f32
    %177 = vector.broadcast %cst_52 : f32 to vector<8x384xf32>
    %178 = arith.addf %177, %176 : vector<8x384xf32>
    %179 = arith.divf %177, %178 : vector<8x384xf32>
    %180 = vector.extract_strided_slice %173 {offsets = [0, 384], sizes = [8, 128], strides = [1, 1]} : vector<8x512xf32> to vector<8x128xf32>
    %181 = math.tanh %180 : vector<8x128xf32>
    %182 = vector.extract_strided_slice %179 {offsets = [0, 0], sizes = [8, 128], strides = [1, 1]} : vector<8x384xf32> to vector<8x128xf32>
    %183 = vector.extract_strided_slice %179 {offsets = [0, 128], sizes = [8, 128], strides = [1, 1]} : vector<8x384xf32> to vector<8x128xf32>
    %184 = vector.extract_strided_slice %179 {offsets = [0, 256], sizes = [8, 128], strides = [1, 1]} : vector<8x384xf32> to vector<8x128xf32>
    %185 = arith.mulf %183, %161 : vector<8x128xf32>
    %186 = arith.mulf %182, %181 : vector<8x128xf32>
    %187 = arith.addf %185, %186 : vector<8x128xf32>
    %188 = math.tanh %187 : vector<8x128xf32>
    %189 = arith.mulf %184, %188 : vector<8x128xf32>
    %190 = arith.truncf %189 : vector<8x128xf32> to vector<8x128xbf16>
    %191 = arith.index_cast %c6_i32 : i32 to index
    %c0_53 = arith.constant 0 : index
    %c0_54 = arith.constant 0 : index
    %192 = vector.load %arg12[%191, %c0_53, %c0_54] : memref<8x8x128xbf16, #tpu.memory_space<vmem>>, vector<1x8x128xbf16>
    %193 = vector.shape_cast %192 : vector<1x8x128xbf16> to vector<8x128xbf16>
    %194 = vector.shape_cast %190 : vector<8x128xbf16> to vector<1x8x128xbf16>
    tpu.vector_store %arg12[%191, %c0_53, %c0_54], %194 {strides = array<i32>} : memref<8x8x128xbf16, #tpu.memory_space<vmem>>, vector<1x8x128xbf16>,
    %c7_i32 = arith.constant 7 : i32
    %195 = arith.index_cast %c7_i32 : i32 to index
    %c0_55 = arith.constant 0 : index
    %c0_56 = arith.constant 0 : index
    %196 = vector.load %arg11[%195, %c0_55, %c0_56] : memref<8x8x512xf32, #tpu.memory_space<vmem>>, vector<1x8x512xf32>
    %197 = vector.shape_cast %196 : vector<1x8x512xf32> to vector<8x512xf32>
    %cst_57 = arith.constant dense<0.000000e+00> : vector<8x512xf32>
    %198 = tpu.matmul %190, %10, %cst_57 {dimension_numbers = #tpu.dot_dimension_numbers<[1], [0], [0], [1], [0, 0, 1, 1], [], []>} : vector<8x128xbf16>, vector<128x512xbf16>, vector<8x512xf32> -> vector<8x512xf32>
    %199 = arith.addf %197, %198 : vector<8x512xf32>
    %200 = vector.extract_strided_slice %199 {offsets = [0, 0], sizes = [8, 384], strides = [1, 1]} : vector<8x512xf32> to vector<8x384xf32>
    %201 = arith.negf %200 : vector<8x384xf32>
    %202 = math.exp %201 : vector<8x384xf32>
    %cst_58 = arith.constant 1.000000e+00 : f32
    %203 = vector.broadcast %cst_58 : f32 to vector<8x384xf32>
    %204 = arith.addf %203, %202 : vector<8x384xf32>
    %205 = arith.divf %203, %204 : vector<8x384xf32>
    %206 = vector.extract_strided_slice %199 {offsets = [0, 384], sizes = [8, 128], strides = [1, 1]} : vector<8x512xf32> to vector<8x128xf32>
    %207 = math.tanh %206 : vector<8x128xf32>
    %208 = vector.extract_strided_slice %205 {offsets = [0, 0], sizes = [8, 128], strides = [1, 1]} : vector<8x384xf32> to vector<8x128xf32>
    %209 = vector.extract_strided_slice %205 {offsets = [0, 128], sizes = [8, 128], strides = [1, 1]} : vector<8x384xf32> to vector<8x128xf32>
    %210 = vector.extract_strided_slice %205 {offsets = [0, 256], sizes = [8, 128], strides = [1, 1]} : vector<8x384xf32> to vector<8x128xf32>
    %211 = arith.mulf %209, %187 : vector<8x128xf32>
    %212 = arith.mulf %208, %207 : vector<8x128xf32>
    %213 = arith.addf %211, %212 : vector<8x128xf32>
    %214 = math.tanh %213 : vector<8x128xf32>
    %215 = arith.mulf %210, %214 : vector<8x128xf32>
    %216 = arith.truncf %215 : vector<8x128xf32> to vector<8x128xbf16>
    %217 = arith.index_cast %c7_i32 : i32 to index
    %c0_59 = arith.constant 0 : index
    %c0_60 = arith.constant 0 : index
    %218 = vector.load %arg12[%217, %c0_59, %c0_60] : memref<8x8x128xbf16, #tpu.memory_space<vmem>>, vector<1x8x128xbf16>
    %219 = vector.shape_cast %218 : vector<1x8x128xbf16> to vector<8x128xbf16>
    %220 = vector.shape_cast %216 : vector<8x128xbf16> to vector<1x8x128xbf16>
    tpu.vector_store %arg12[%217, %c0_59, %c0_60], %220 {strides = array<i32>} : memref<8x8x128xbf16, #tpu.memory_space<vmem>>, vector<1x8x128xbf16>,
    %c8_i32 = arith.constant 8 : i32
    %c0_61 = arith.constant 0 : index
    %c0_62 = arith.constant 0 : index
    %221 = vector.load %arg5[%c0_61, %c0_62] : memref<128x512xbf16, #tpu.memory_space<vmem>>, vector<128x512xbf16>
    %c0_63 = arith.constant 0 : index
    %c0_64 = arith.constant 0 : index
    %222 = vector.load %arg7[%c0_63, %c0_64] : memref<1x512xf32, #tpu.memory_space<vmem>>, vector<1x512xf32>
    %c0_65 = arith.constant 0 : index
    %c0_66 = arith.constant 0 : index
    %c0_67 = arith.constant 0 : index
    %223 = vector.load %arg12[%c0_65, %c0_66, %c0_67] : memref<8x8x128xbf16, #tpu.memory_space<vmem>>, vector<8x8x128xbf16>
    %224 = vector.shape_cast %223 : vector<8x8x128xbf16> to vector<64x128xbf16>
    %cst_68 = arith.constant dense<0.000000e+00> : vector<64x512xf32>
    %225 = tpu.matmul %224, %221, %cst_68 {dimension_numbers = #tpu.dot_dimension_numbers<[1], [0], [0], [1], [0, 0, 1, 1], [], []>} : vector<64x128xbf16>, vector<128x512xbf16>, vector<64x512xf32> -> vector<64x512xf32>
    %226 = vector.broadcast %222 : vector<1x512xf32> to vector<64x512xf32>
    %227 = arith.addf %225, %226 : vector<64x512xf32>
    %228 = vector.shape_cast %227 : vector<64x512xf32> to vector<8x8x512xf32>
    %c0_69 = arith.constant 0 : index
    %c0_70 = arith.constant 0 : index
    %c0_71 = arith.constant 0 : index
    %229 = vector.load %arg11[%c0_69, %c0_70, %c0_71] : memref<8x8x512xf32, #tpu.memory_space<vmem>>, vector<8x8x512xf32>
    tpu.vector_store %arg11[%c0_69, %c0_70, %c0_71], %228 {strides = array<i32>} : memref<8x8x512xf32, #tpu.memory_space<vmem>>, vector<8x8x512xf32>,
    %c0_72 = arith.constant 0 : index
    %c0_73 = arith.constant 0 : index
    %230 = vector.load %arg6[%c0_72, %c0_73] : memref<128x512xbf16, #tpu.memory_space<vmem>>, vector<128x512xbf16>
    %cst_74 = arith.constant 0.000000e+00 : bf16
    %231 = vector.broadcast %cst_74 : bf16 to vector<8x128xbf16>
    %cst_75 = arith.constant 0.000000e+00 : f32
    %232 = vector.broadcast %cst_75 : f32 to vector<8x128xf32>
    %c0_i32_76 = arith.constant 0 : i32
    %233 = arith.index_cast %c0_i32_76 : i32 to index
    %c0_77 = arith.constant 0 : index
    %c0_78 = arith.constant 0 : index
    %234 = vector.load %arg11[%233, %c0_77, %c0_78] : memref<8x8x512xf32, #tpu.memory_space<vmem>>, vector<1x8x512xf32>
    %235 = vector.shape_cast %234 : vector<1x8x512xf32> to vector<8x512xf32>
    %cst_79 = arith.constant dense<0.000000e+00> : vector<8x512xf32>
    %236 = tpu.matmul %231, %230, %cst_79 {dimension_numbers = #tpu.dot_dimension_numbers<[1], [0], [0], [1], [0, 0, 1, 1], [], []>} : vector<8x128xbf16>, vector<128x512xbf16>, vector<8x512xf32> -> vector<8x512xf32>
    %237 = arith.addf %235, %236 : vector<8x512xf32>
    %238 = vector.extract_strided_slice %237 {offsets = [0, 0], sizes = [8, 384], strides = [1, 1]} : vector<8x512xf32> to vector<8x384xf32>
    %239 = arith.negf %238 : vector<8x384xf32>
    %240 = math.exp %239 : vector<8x384xf32>
    %cst_80 = arith.constant 1.000000e+00 : f32
    %241 = vector.broadcast %cst_80 : f32 to vector<8x384xf32>
    %242 = arith.addf %241, %240 : vector<8x384xf32>
    %243 = arith.divf %241, %242 : vector<8x384xf32>
    %244 = vector.extract_strided_slice %237 {offsets = [0, 384], sizes = [8, 128], strides = [1, 1]} : vector<8x512xf32> to vector<8x128xf32>
    %245 = math.tanh %244 : vector<8x128xf32>
    %246 = vector.extract_strided_slice %243 {offsets = [0, 0], sizes = [8, 128], strides = [1, 1]} : vector<8x384xf32> to vector<8x128xf32>
    %247 = vector.extract_strided_slice %243 {offsets = [0, 128], sizes = [8, 128], strides = [1, 1]} : vector<8x384xf32> to vector<8x128xf32>
    %248 = vector.extract_strided_slice %243 {offsets = [0, 256], sizes = [8, 128], strides = [1, 1]} : vector<8x384xf32> to vector<8x128xf32>
    %249 = arith.mulf %247, %232 : vector<8x128xf32>
    %250 = arith.mulf %246, %245 : vector<8x128xf32>
    %251 = arith.addf %249, %250 : vector<8x128xf32>
    %252 = math.tanh %251 : vector<8x128xf32>
    %253 = arith.mulf %248, %252 : vector<8x128xf32>
    %254 = arith.truncf %253 : vector<8x128xf32> to vector<8x128xbf16>
    %c1_i32_81 = arith.constant 1 : i32
    %255 = arith.index_cast %c1_i32_81 : i32 to index
    %c0_82 = arith.constant 0 : index
    %c0_83 = arith.constant 0 : index
    %256 = vector.load %arg11[%255, %c0_82, %c0_83] : memref<8x8x512xf32, #tpu.memory_space<vmem>>, vector<1x8x512xf32>
    %257 = vector.shape_cast %256 : vector<1x8x512xf32> to vector<8x512xf32>
    %cst_84 = arith.constant dense<0.000000e+00> : vector<8x512xf32>
    %258 = tpu.matmul %254, %230, %cst_84 {dimension_numbers = #tpu.dot_dimension_numbers<[1], [0], [0], [1], [0, 0, 1, 1], [], []>} : vector<8x128xbf16>, vector<128x512xbf16>, vector<8x512xf32> -> vector<8x512xf32>
    %259 = arith.addf %257, %258 : vector<8x512xf32>
    %260 = vector.extract_strided_slice %259 {offsets = [0, 0], sizes = [8, 384], strides = [1, 1]} : vector<8x512xf32> to vector<8x384xf32>
    %261 = arith.negf %260 : vector<8x384xf32>
    %262 = math.exp %261 : vector<8x384xf32>
    %cst_85 = arith.constant 1.000000e+00 : f32
    %263 = vector.broadcast %cst_85 : f32 to vector<8x384xf32>
    %264 = arith.addf %263, %262 : vector<8x384xf32>
    %265 = arith.divf %263, %264 : vector<8x384xf32>
    %266 = vector.extract_strided_slice %259 {offsets = [0, 384], sizes = [8, 128], strides = [1, 1]} : vector<8x512xf32> to vector<8x128xf32>
    %267 = math.tanh %266 : vector<8x128xf32>
    %268 = vector.extract_strided_slice %265 {offsets = [0, 0], sizes = [8, 128], strides = [1, 1]} : vector<8x384xf32> to vector<8x128xf32>
    %269 = vector.extract_strided_slice %265 {offsets = [0, 128], sizes = [8, 128], strides = [1, 1]} : vector<8x384xf32> to vector<8x128xf32>
    %270 = vector.extract_strided_slice %265 {offsets = [0, 256], sizes = [8, 128], strides = [1, 1]} : vector<8x384xf32> to vector<8x128xf32>
    %271 = arith.mulf %269, %251 : vector<8x128xf32>
    %272 = arith.mulf %268, %267 : vector<8x128xf32>
    %273 = arith.addf %271, %272 : vector<8x128xf32>
    %274 = math.tanh %273 : vector<8x128xf32>
    %275 = arith.mulf %270, %274 : vector<8x128xf32>
    %276 = arith.truncf %275 : vector<8x128xf32> to vector<8x128xbf16>
    %c2_i32_86 = arith.constant 2 : i32
    %277 = arith.index_cast %c2_i32_86 : i32 to index
    %c0_87 = arith.constant 0 : index
    %c0_88 = arith.constant 0 : index
    %278 = vector.load %arg11[%277, %c0_87, %c0_88] : memref<8x8x512xf32, #tpu.memory_space<vmem>>, vector<1x8x512xf32>
    %279 = vector.shape_cast %278 : vector<1x8x512xf32> to vector<8x512xf32>
    %cst_89 = arith.constant dense<0.000000e+00> : vector<8x512xf32>
    %280 = tpu.matmul %276, %230, %cst_89 {dimension_numbers = #tpu.dot_dimension_numbers<[1], [0], [0], [1], [0, 0, 1, 1], [], []>} : vector<8x128xbf16>, vector<128x512xbf16>, vector<8x512xf32> -> vector<8x512xf32>
    %281 = arith.addf %279, %280 : vector<8x512xf32>
    %282 = vector.extract_strided_slice %281 {offsets = [0, 0], sizes = [8, 384], strides = [1, 1]} : vector<8x512xf32> to vector<8x384xf32>
    %283 = arith.negf %282 : vector<8x384xf32>
    %284 = math.exp %283 : vector<8x384xf32>
    %cst_90 = arith.constant 1.000000e+00 : f32
    %285 = vector.broadcast %cst_90 : f32 to vector<8x384xf32>
    %286 = arith.addf %285, %284 : vector<8x384xf32>
    %287 = arith.divf %285, %286 : vector<8x384xf32>
    %288 = vector.extract_strided_slice %281 {offsets = [0, 384], sizes = [8, 128], strides = [1, 1]} : vector<8x512xf32> to vector<8x128xf32>
    %289 = math.tanh %288 : vector<8x128xf32>
    %290 = vector.extract_strided_slice %287 {offsets = [0, 0], sizes = [8, 128], strides = [1, 1]} : vector<8x384xf32> to vector<8x128xf32>
    %291 = vector.extract_strided_slice %287 {offsets = [0, 128], sizes = [8, 128], strides = [1, 1]} : vector<8x384xf32> to vector<8x128xf32>
    %292 = vector.extract_strided_slice %287 {offsets = [0, 256], sizes = [8, 128], strides = [1, 1]} : vector<8x384xf32> to vector<8x128xf32>
    %293 = arith.mulf %291, %273 : vector<8x128xf32>
    %294 = arith.mulf %290, %289 : vector<8x128xf32>
    %295 = arith.addf %293, %294 : vector<8x128xf32>
    %296 = math.tanh %295 : vector<8x128xf32>
    %297 = arith.mulf %292, %296 : vector<8x128xf32>
    %298 = arith.truncf %297 : vector<8x128xf32> to vector<8x128xbf16>
    %c3_i32_91 = arith.constant 3 : i32
    %299 = arith.index_cast %c3_i32_91 : i32 to index
    %c0_92 = arith.constant 0 : index
    %c0_93 = arith.constant 0 : index
    %300 = vector.load %arg11[%299, %c0_92, %c0_93] : memref<8x8x512xf32, #tpu.memory_space<vmem>>, vector<1x8x512xf32>
    %301 = vector.shape_cast %300 : vector<1x8x512xf32> to vector<8x512xf32>
    %cst_94 = arith.constant dense<0.000000e+00> : vector<8x512xf32>
    %302 = tpu.matmul %298, %230, %cst_94 {dimension_numbers = #tpu.dot_dimension_numbers<[1], [0], [0], [1], [0, 0, 1, 1], [], []>} : vector<8x128xbf16>, vector<128x512xbf16>, vector<8x512xf32> -> vector<8x512xf32>
    %303 = arith.addf %301, %302 : vector<8x512xf32>
    %304 = vector.extract_strided_slice %303 {offsets = [0, 0], sizes = [8, 384], strides = [1, 1]} : vector<8x512xf32> to vector<8x384xf32>
    %305 = arith.negf %304 : vector<8x384xf32>
    %306 = math.exp %305 : vector<8x384xf32>
    %cst_95 = arith.constant 1.000000e+00 : f32
    %307 = vector.broadcast %cst_95 : f32 to vector<8x384xf32>
    %308 = arith.addf %307, %306 : vector<8x384xf32>
    %309 = arith.divf %307, %308 : vector<8x384xf32>
    %310 = vector.extract_strided_slice %303 {offsets = [0, 384], sizes = [8, 128], strides = [1, 1]} : vector<8x512xf32> to vector<8x128xf32>
    %311 = math.tanh %310 : vector<8x128xf32>
    %312 = vector.extract_strided_slice %309 {offsets = [0, 0], sizes = [8, 128], strides = [1, 1]} : vector<8x384xf32> to vector<8x128xf32>
    %313 = vector.extract_strided_slice %309 {offsets = [0, 128], sizes = [8, 128], strides = [1, 1]} : vector<8x384xf32> to vector<8x128xf32>
    %314 = vector.extract_strided_slice %309 {offsets = [0, 256], sizes = [8, 128], strides = [1, 1]} : vector<8x384xf32> to vector<8x128xf32>
    %315 = arith.mulf %313, %295 : vector<8x128xf32>
    %316 = arith.mulf %312, %311 : vector<8x128xf32>
    %317 = arith.addf %315, %316 : vector<8x128xf32>
    %318 = math.tanh %317 : vector<8x128xf32>
    %319 = arith.mulf %314, %318 : vector<8x128xf32>
    %320 = arith.truncf %319 : vector<8x128xf32> to vector<8x128xbf16>
    %c4_i32_96 = arith.constant 4 : i32
    %321 = arith.index_cast %c4_i32_96 : i32 to index
    %c0_97 = arith.constant 0 : index
    %c0_98 = arith.constant 0 : index
    %322 = vector.load %arg11[%321, %c0_97, %c0_98] : memref<8x8x512xf32, #tpu.memory_space<vmem>>, vector<1x8x512xf32>
    %323 = vector.shape_cast %322 : vector<1x8x512xf32> to vector<8x512xf32>
    %cst_99 = arith.constant dense<0.000000e+00> : vector<8x512xf32>
    %324 = tpu.matmul %320, %230, %cst_99 {dimension_numbers = #tpu.dot_dimension_numbers<[1], [0], [0], [1], [0, 0, 1, 1], [], []>} : vector<8x128xbf16>, vector<128x512xbf16>, vector<8x512xf32> -> vector<8x512xf32>
    %325 = arith.addf %323, %324 : vector<8x512xf32>
    %326 = vector.extract_strided_slice %325 {offsets = [0, 0], sizes = [8, 384], strides = [1, 1]} : vector<8x512xf32> to vector<8x384xf32>
    %327 = arith.negf %326 : vector<8x384xf32>
    %328 = math.exp %327 : vector<8x384xf32>
    %cst_100 = arith.constant 1.000000e+00 : f32
    %329 = vector.broadcast %cst_100 : f32 to vector<8x384xf32>
    %330 = arith.addf %329, %328 : vector<8x384xf32>
    %331 = arith.divf %329, %330 : vector<8x384xf32>
    %332 = vector.extract_strided_slice %325 {offsets = [0, 384], sizes = [8, 128], strides = [1, 1]} : vector<8x512xf32> to vector<8x128xf32>
    %333 = math.tanh %332 : vector<8x128xf32>
    %334 = vector.extract_strided_slice %331 {offsets = [0, 0], sizes = [8, 128], strides = [1, 1]} : vector<8x384xf32> to vector<8x128xf32>
    %335 = vector.extract_strided_slice %331 {offsets = [0, 128], sizes = [8, 128], strides = [1, 1]} : vector<8x384xf32> to vector<8x128xf32>
    %336 = vector.extract_strided_slice %331 {offsets = [0, 256], sizes = [8, 128], strides = [1, 1]} : vector<8x384xf32> to vector<8x128xf32>
    %337 = arith.mulf %335, %317 : vector<8x128xf32>
    %338 = arith.mulf %334, %333 : vector<8x128xf32>
    %339 = arith.addf %337, %338 : vector<8x128xf32>
    %340 = math.tanh %339 : vector<8x128xf32>
    %341 = arith.mulf %336, %340 : vector<8x128xf32>
    %342 = arith.truncf %341 : vector<8x128xf32> to vector<8x128xbf16>
    %c5_i32_101 = arith.constant 5 : i32
    %343 = arith.index_cast %c5_i32_101 : i32 to index
    %c0_102 = arith.constant 0 : index
    %c0_103 = arith.constant 0 : index
    %344 = vector.load %arg11[%343, %c0_102, %c0_103] : memref<8x8x512xf32, #tpu.memory_space<vmem>>, vector<1x8x512xf32>
    %345 = vector.shape_cast %344 : vector<1x8x512xf32> to vector<8x512xf32>
    %cst_104 = arith.constant dense<0.000000e+00> : vector<8x512xf32>
    %346 = tpu.matmul %342, %230, %cst_104 {dimension_numbers = #tpu.dot_dimension_numbers<[1], [0], [0], [1], [0, 0, 1, 1], [], []>} : vector<8x128xbf16>, vector<128x512xbf16>, vector<8x512xf32> -> vector<8x512xf32>
    %347 = arith.addf %345, %346 : vector<8x512xf32>
    %348 = vector.extract_strided_slice %347 {offsets = [0, 0], sizes = [8, 384], strides = [1, 1]} : vector<8x512xf32> to vector<8x384xf32>
    %349 = arith.negf %348 : vector<8x384xf32>
    %350 = math.exp %349 : vector<8x384xf32>
    %cst_105 = arith.constant 1.000000e+00 : f32
    %351 = vector.broadcast %cst_105 : f32 to vector<8x384xf32>
    %352 = arith.addf %351, %350 : vector<8x384xf32>
    %353 = arith.divf %351, %352 : vector<8x384xf32>
    %354 = vector.extract_strided_slice %347 {offsets = [0, 384], sizes = [8, 128], strides = [1, 1]} : vector<8x512xf32> to vector<8x128xf32>
    %355 = math.tanh %354 : vector<8x128xf32>
    %356 = vector.extract_strided_slice %353 {offsets = [0, 0], sizes = [8, 128], strides = [1, 1]} : vector<8x384xf32> to vector<8x128xf32>
    %357 = vector.extract_strided_slice %353 {offsets = [0, 128], sizes = [8, 128], strides = [1, 1]} : vector<8x384xf32> to vector<8x128xf32>
    %358 = vector.extract_strided_slice %353 {offsets = [0, 256], sizes = [8, 128], strides = [1, 1]} : vector<8x384xf32> to vector<8x128xf32>
    %359 = arith.mulf %357, %339 : vector<8x128xf32>
    %360 = arith.mulf %356, %355 : vector<8x128xf32>
    %361 = arith.addf %359, %360 : vector<8x128xf32>
    %362 = math.tanh %361 : vector<8x128xf32>
    %363 = arith.mulf %358, %362 : vector<8x128xf32>
    %364 = arith.truncf %363 : vector<8x128xf32> to vector<8x128xbf16>
    %c6_i32_106 = arith.constant 6 : i32
    %365 = arith.index_cast %c6_i32_106 : i32 to index
    %c0_107 = arith.constant 0 : index
    %c0_108 = arith.constant 0 : index
    %366 = vector.load %arg11[%365, %c0_107, %c0_108] : memref<8x8x512xf32, #tpu.memory_space<vmem>>, vector<1x8x512xf32>
    %367 = vector.shape_cast %366 : vector<1x8x512xf32> to vector<8x512xf32>
    %cst_109 = arith.constant dense<0.000000e+00> : vector<8x512xf32>
    %368 = tpu.matmul %364, %230, %cst_109 {dimension_numbers = #tpu.dot_dimension_numbers<[1], [0], [0], [1], [0, 0, 1, 1], [], []>} : vector<8x128xbf16>, vector<128x512xbf16>, vector<8x512xf32> -> vector<8x512xf32>
    %369 = arith.addf %367, %368 : vector<8x512xf32>
    %370 = vector.extract_strided_slice %369 {offsets = [0, 0], sizes = [8, 384], strides = [1, 1]} : vector<8x512xf32> to vector<8x384xf32>
    %371 = arith.negf %370 : vector<8x384xf32>
    %372 = math.exp %371 : vector<8x384xf32>
    %cst_110 = arith.constant 1.000000e+00 : f32
    %373 = vector.broadcast %cst_110 : f32 to vector<8x384xf32>
    %374 = arith.addf %373, %372 : vector<8x384xf32>
    %375 = arith.divf %373, %374 : vector<8x384xf32>
    %376 = vector.extract_strided_slice %369 {offsets = [0, 384], sizes = [8, 128], strides = [1, 1]} : vector<8x512xf32> to vector<8x128xf32>
    %377 = math.tanh %376 : vector<8x128xf32>
    %378 = vector.extract_strided_slice %375 {offsets = [0, 0], sizes = [8, 128], strides = [1, 1]} : vector<8x384xf32> to vector<8x128xf32>
    %379 = vector.extract_strided_slice %375 {offsets = [0, 128], sizes = [8, 128], strides = [1, 1]} : vector<8x384xf32> to vector<8x128xf32>
    %380 = vector.extract_strided_slice %375 {offsets = [0, 256], sizes = [8, 128], strides = [1, 1]} : vector<8x384xf32> to vector<8x128xf32>
    %381 = arith.mulf %379, %361 : vector<8x128xf32>
    %382 = arith.mulf %378, %377 : vector<8x128xf32>
    %383 = arith.addf %381, %382 : vector<8x128xf32>
    %384 = math.tanh %383 : vector<8x128xf32>
    %385 = arith.mulf %380, %384 : vector<8x128xf32>
    %386 = arith.truncf %385 : vector<8x128xf32> to vector<8x128xbf16>
    %c7_i32_111 = arith.constant 7 : i32
    %387 = arith.index_cast %c7_i32_111 : i32 to index
    %c0_112 = arith.constant 0 : index
    %c0_113 = arith.constant 0 : index
    %388 = vector.load %arg11[%387, %c0_112, %c0_113] : memref<8x8x512xf32, #tpu.memory_space<vmem>>, vector<1x8x512xf32>
    %389 = vector.shape_cast %388 : vector<1x8x512xf32> to vector<8x512xf32>
    %cst_114 = arith.constant dense<0.000000e+00> : vector<8x512xf32>
    %390 = tpu.matmul %386, %230, %cst_114 {dimension_numbers = #tpu.dot_dimension_numbers<[1], [0], [0], [1], [0, 0, 1, 1], [], []>} : vector<8x128xbf16>, vector<128x512xbf16>, vector<8x512xf32> -> vector<8x512xf32>
    %391 = arith.addf %389, %390 : vector<8x512xf32>
    %392 = vector.extract_strided_slice %391 {offsets = [0, 0], sizes = [8, 384], strides = [1, 1]} : vector<8x512xf32> to vector<8x384xf32>
    %393 = arith.negf %392 : vector<8x384xf32>
    %394 = math.exp %393 : vector<8x384xf32>
    %cst_115 = arith.constant 1.000000e+00 : f32
    %395 = vector.broadcast %cst_115 : f32 to vector<8x384xf32>
    %396 = arith.addf %395, %394 : vector<8x384xf32>
    %397 = arith.divf %395, %396 : vector<8x384xf32>
    %398 = vector.extract_strided_slice %391 {offsets = [0, 384], sizes = [8, 128], strides = [1, 1]} : vector<8x512xf32> to vector<8x128xf32>
    %399 = math.tanh %398 : vector<8x128xf32>
    %400 = vector.extract_strided_slice %397 {offsets = [0, 0], sizes = [8, 128], strides = [1, 1]} : vector<8x384xf32> to vector<8x128xf32>
    %401 = vector.extract_strided_slice %397 {offsets = [0, 128], sizes = [8, 128], strides = [1, 1]} : vector<8x384xf32> to vector<8x128xf32>
    %402 = vector.extract_strided_slice %397 {offsets = [0, 256], sizes = [8, 128], strides = [1, 1]} : vector<8x384xf32> to vector<8x128xf32>
    %403 = arith.mulf %401, %383 : vector<8x128xf32>
    %404 = arith.mulf %400, %399 : vector<8x128xf32>
    %405 = arith.addf %403, %404 : vector<8x128xf32>
    %406 = math.tanh %405 : vector<8x128xf32>
    %407 = arith.mulf %402, %406 : vector<8x128xf32>
    %408 = arith.truncf %407 : vector<8x128xf32> to vector<8x128xbf16>
    %c8_i32_116 = arith.constant 8 : i32
    %c0_117 = arith.constant 0 : index
    %c0_118 = arith.constant 0 : index
    %409 = vector.load %arg8[%c0_117, %c0_118] : memref<128x128xbf16, #tpu.memory_space<vmem>>, vector<128x128xbf16>
    %cst_119 = arith.constant dense<0.000000e+00> : vector<8x128xf32>
    %410 = tpu.matmul %408, %409, %cst_119 {dimension_numbers = #tpu.dot_dimension_numbers<[1], [0], [0], [1], [0, 0, 1, 1], [], []>} : vector<8x128xbf16>, vector<128x128xbf16>, vector<8x128xf32> -> vector<8x128xf32>
    %c0_120 = arith.constant 0 : index
    %c0_121 = arith.constant 0 : index
    %411 = vector.load %arg9[%c0_120, %c0_121] : memref<1x128xf32, #tpu.memory_space<vmem>>, vector<1x128xf32>
    %412 = vector.broadcast %411 : vector<1x128xf32> to vector<8x128xf32>
    %413 = arith.addf %410, %412 : vector<8x128xf32>
    %c0_122 = arith.constant 0 : index
    %c0_123 = arith.constant 0 : index
    %414 = vector.load %arg10[%c0_122, %c0_123] : memref<8x128xf32, #tpu.memory_space<vmem>>, vector<8x128xf32>
    tpu.vector_store %arg10[%c0_122, %c0_123], %413 {strides = array<i32>} : memref<8x128xf32, #tpu.memory_space<vmem>>, vector<8x128xf32>,
    return
  }
  func.func @transform_0(%arg0: i32) -> (i32, i32, i32) {
    %c0_i32 = arith.constant 0 : i32
    %c0_i32_0 = arith.constant 0 : i32
    %c0_i32_1 = arith.constant 0 : i32
    return %c0_i32, %arg0, %c0_i32_0 : i32, i32, i32
  }
  func.func @transform_1(%arg0: i32) -> (i32, i32) {
    %c0_i32 = arith.constant 0 : i32
    %c0_i32_0 = arith.constant 0 : i32
    %c0_i32_1 = arith.constant 0 : i32
    return %c0_i32, %c0_i32_0 : i32, i32
  }
  func.func @transform_2(%arg0: i32) -> (i32, i32) {
    %c0_i32 = arith.constant 0 : i32
    %c0_i32_0 = arith.constant 0 : i32
    %c0_i32_1 = arith.constant 0 : i32
    return %c0_i32, %c0_i32_0 : i32, i32
  }
  func.func @transform_3(%arg0: i32) -> (i32, i32) {
    %c0_i32 = arith.constant 0 : i32
    %c0_i32_0 = arith.constant 0 : i32
    %c0_i32_1 = arith.constant 0 : i32
    return %c0_i32, %c0_i32_0 : i32, i32
  }
  func.func @transform_4(%arg0: i32) -> (i32, i32) {
    %c0_i32 = arith.constant 0 : i32
    %c0_i32_0 = arith.constant 0 : i32
    %c0_i32_1 = arith.constant 0 : i32
    return %c0_i32, %c0_i32_0 : i32, i32
  }
  func.func @transform_5(%arg0: i32) -> (i32, i32) {
    %c0_i32 = arith.constant 0 : i32
    %c0_i32_0 = arith.constant 0 : i32
    %c0_i32_1 = arith.constant 0 : i32
    return %c0_i32, %c0_i32_0 : i32, i32
  }
  func.func @transform_6(%arg0: i32) -> (i32, i32) {
    %c0_i32 = arith.constant 0 : i32
    %c0_i32_0 = arith.constant 0 : i32
    %c0_i32_1 = arith.constant 0 : i32
    return %c0_i32, %c0_i32_0 : i32, i32
  }
  func.func @transform_7(%arg0: i32) -> (i32, i32) {
    %c0_i32 = arith.constant 0 : i32
    %c0_i32_0 = arith.constant 0 : i32
    %c0_i32_1 = arith.constant 0 : i32
    return %c0_i32, %c0_i32_0 : i32, i32
  }
  func.func @transform_8(%arg0: i32) -> (i32, i32) {
    %c0_i32 = arith.constant 0 : i32
    %c0_i32_0 = arith.constant 0 : i32
    %c0_i32_1 = arith.constant 0 : i32
    return %c0_i32, %c0_i32_0 : i32, i32
  }
  func.func @transform_9(%arg0: i32) -> (i32, i32) {
    %c0_i32 = arith.constant 0 : i32
    %c0_i32_0 = arith.constant 0 : i32
    return %arg0, %c0_i32 : i32, i32
  }
}

</mosaic_0001>

<bundles_post_ra>
// kernel: lstm_model_forward.1
= control target key start
LH: loop header
LB: loop body
LE: loop exit
PB: predicated region body
PF: predicated region fallthrough
CT: control target
= control target key end

     0   :  { %14 = vsyncpa [#allocation6], 0  ;;  %s5206_s0 = inlined_call_operand.vmem [shape: f32[8,8,4], index: 0, kind: input, shape index: {}]   ;;  %s5207_s1 = inlined_call_operand.vmem [shape: bf16[4,512], index: 1, kind: input, shape index: {}]   ;;  %s5208_s2 = inlined_call_operand.hbm [shape: bf16[128,512], index: 2, kind: input, shape index: {}]   ;;  %s5209_s3 = inlined_call_operand.vmem [shape: f32[1,512], index: 3, kind: input, shape index: {}]   ;;  %s5210_s4 = inlined_call_operand.hbm [shape: bf16[128,512], index: 4, kind: input, shape index: {}]   ;;  %s5211_s5 = inlined_call_operand.hbm [shape: bf16[128,512], index: 5, kind: input, shape index: {}]   ;;  %s5212_s6 = inlined_call_operand.vmem [shape: f32[1,512], index: 6, kind: input, shape index: {}]   ;;  %s5213_s7 = inlined_call_operand.vmem [shape: bf16[128,128], index: 7, kind: input, shape index: {}]   ;;  %s5214_s8 = inlined_call_operand.vmem [shape: f32[1,128], index: 8, kind: input, shape index: {}]   ;;  %s5215_s9 = inlined_call_operand.vmem [shape: f32[8,128], index: 9, kind: output, shape index: {}]  }
   0x1   :  { %15 = vsyncpa [#allocation8], 0  ;;  %s3871_s30 = smov [#allocation7]   ;;  %s3872_s11 = smov [#allocation5]  }
   0x2   :  { %s39_s10 = sshll.u32 %s3871_s30, 4  ;;  %s25_s12 = sshll.u32 %s3872_s11, 4  ;;  %s40_s10 = int_to_ptr.vmem [resolvable:$true] %s39_s10  ;;  %s3930_s12 = int_to_ptr.vmem [resolvable:$true] %s25_s12 }
   0x3   :  { %s3801_s15 = scalar_lea.hbm %s5210_s4, 4096 }
   0x4   :  { %p3802_p0 = scmp.ne.s32.totalorder %s5210_s4, %s3801_s15  ;;  %p3805_p1 = scmp.lt.u32.totalorder %s3801_s15, %s5210_s4 }
   0x6   :  { %p3807_p2 = pnand %p3805_p1, %p3802_p0 }
   0x8   :  { %3810 = shalt.err (!%p3807_p2)
}
   0x9   :  { %s3811_s20 = scalar_lea.vmem %s40_s10, 4096  ;;  %p3816_p4 = scmp.lt.s32.totalorder %s40_s10, %s40_s10 }
   0xa   :  { %p3812_p3 = scmp.ne.s32.totalorder %s40_s10, %s3811_s20  ;;  %p3817_p5 = scmp.lt.s32.totalorder %s3811_s20, %s3811_s20 }
   0xc   :  { %p3818_p6 = por %p3817_p5, %p3816_p4 }
   0xe   :  { %p3819_p7 = pnand %p3818_p6, %p3812_p3 }
  0x10   :  { %3822 = shalt.err (!%p3819_p7)
}
  0x11   :  { %s3873_s21 = smov 256   ;;  %s3874_s22 = smov 16  }
  0x12   :  { %45 = dma.hbm_to_vmem [thread:$0]  %s5210_s4, 4096, %s40_s10, [#allocation8], %s3873_s21, %s3873_s21, %s3874_s22  }
  0x13   :  { %s3823_s27 = scalar_lea.hbm %s5208_s2, 4096 }
  0x14   :  { %p3824_p8 = scmp.ne.s32.totalorder %s5208_s2, %s3823_s27  ;;  %p3827_p9 = scmp.lt.u32.totalorder %s3823_s27, %s5208_s2 }
  0x16   :  { %p3829_p10 = pnand %p3827_p9, %p3824_p8 }
  0x18   :  { %3832 = shalt.err (!%p3829_p10)
}
  0x19   :  { %s3833_s13 = scalar_lea.vmem %s3930_s12, 4096  ;;  %p3838_p12 = scmp.lt.s32.totalorder %s3930_s12, %s3930_s12 }
  0x1a   :  { %p3834_p11 = scmp.ne.s32.totalorder %s3930_s12, %s3833_s13  ;;  %p3839_p13 = scmp.lt.s32.totalorder %s3833_s13, %s3833_s13 }
  0x1c   :  { %p3840_p0 = por %p3839_p13, %p3838_p12 }
  0x1e   :  { %p3841_p1 = pnand %p3840_p0, %p3834_p11 }
  0x20   :  { %3844 = shalt.err (!%p3841_p1)
}
  0x21   :  { %31 = dma.hbm_to_vmem [thread:$0]  %s5208_s2, 4096, %s3930_s12, [#allocation6], %s3873_s21, %s3873_s21, %s3874_s22  }
  0x22   :  { %s3875_s14 = smov [#allocation9]   ;;  %s3845_s18 = scalar_lea.hbm %s5211_s5, 4096 }
  0x23   :  { %s51_s15 = sshll.u32 %s3875_s14, 4  ;;  %p3846_p2 = scmp.ne.s32.totalorder %s5211_s5, %s3845_s18  ;;  %s52_s15 = int_to_ptr.vmem [resolvable:$true] %s51_s15 }
  0x24   :  { %p3849_p3 = scmp.lt.u32.totalorder %s3845_s18, %s5211_s5 }
  0x26   :  { %p3851_p4 = pnand %p3849_p3, %p3846_p2 }
  0x28   :  { %3854 = shalt.err (!%p3851_p4)
}
  0x29   :  { %s3855_s25 = scalar_lea.vmem %s52_s15, 4096  ;;  %p3860_p6 = scmp.lt.s32.totalorder %s52_s15, %s52_s15 }
  0x2a   :  { %p3856_p5 = scmp.ne.s32.totalorder %s52_s15, %s3855_s25  ;;  %p3861_p7 = scmp.lt.s32.totalorder %s3855_s25, %s3855_s25 }
  0x2c   :  { %p3862_p8 = por %p3861_p7, %p3860_p6 }
  0x2e   :  { %p3863_p9 = pnand %p3862_p8, %p3856_p5 }
  0x30   :  { %3866 = shalt.err (!%p3863_p9)
}
  0x31   :  { %57 = dma.hbm_to_vmem [thread:$0]  %s5211_s5, 4096, %s52_s15, [#allocation8], %s3873_s21, %s3873_s21, %s3874_s22  }
  0x32   :  { %3867 = dma.done.wait [#allocation6], 4096  }
  0x33   :  { %3868 = vsyncadd [#allocation6], 4294963200 }
  0x34   :  { %3869 = dma.done.wait [#allocation8], 8192  }
  0x35   :  { %3870 = vsyncadd [#allocation8], 4294959104  ;;  %v89_v0 = vlaneseq  ;;  %v3876_v1 = vmov 1983009808   ;;  %v5220_v3 = vmov 0   ;;  %v74_v7 = vld [vmem:[%s5207_s1] sm:$0xff] }
  0x36   :  { %v112_v2 = vunpack.c.l.s4 %v3876_v1  ;;  %185 = vmatprep.mubr.bf16.mxu0 %v5220_v3  ;;  %258 = vmatprep.mubr.bf16.mxu1 %v5220_v3  ;;  %vm140_vm0 = vcmask 1041408   ;;  %v110_v9 = vcombine.high %v74_v7, %v74_v7  ;;  %v76_v10 = vld [vmem:[%s5206_s0] sm:$0xff]  ;;  %v77_v11 = vld [vmem:[%s5206_s0 + $0x8] sm:$0xff]  ;;  %vm127_vm1 = vcmask 31744   ;;  %v78_v25 = vld [vmem:[%s5206_s0 + $0x10] sm:$0xff] }
  0x37   :  { %v3984_v4 = vshrl.u32 %v89_v0, 7  ;;  %v3997_v15 = vld [vmem:[#allocation5 + $0x4] ss:$16 sps:$4 sm:$0xff]   ;;  %v84_v18 = vpack.c.bf16 %v77_v11, %v76_v10  ;;  %v4001_v19 = vld [vmem:[#allocation5 + $0xc] ss:$16 sps:$4 sm:$0xff]   ;;  %vm3879_vm2 = vmmov 0  }
  0x38   :  { %v113_v5 = vunpack.c.0.s8 %v112_v2  ;;  %v4003_v20 = vld [vmem:[#allocation5] ss:$16 sps:$4 sm:$0xff]   ;;  %v4007_v21 = vld [vmem:[#allocation5 + $0x24] ss:$16 sps:$4 sm:$0xff]   ;;  %v4009_v22 = vld [vmem:[#allocation5 + $0x8] ss:$16 sps:$4 sm:$0xff]  }
  0x39   :  { %5224 = vst [vmem:[#allocation12_spill] sm:$0xff] %v3984_v4  ;;  %v4013_v23 = vld [vmem:[#allocation5 + $0x20] ss:$16 sps:$4 sm:$0xff]   ;;  %v4015_v24 = vld [vmem:[#allocation5 + $0x2c] ss:$16 sps:$4 sm:$0xff]   ;;  %v5219_v59 = vsub.s32 0, %v3984_v4 }
  0x3a   :  { %v116_v6 = vsub.s32 %v113_v5, %v3984_v4  ;;  %v79_v26 = vld [vmem:[%s5206_s0 + $0x18] sm:$0xff]  ;;  %v4027_v27 = vld [vmem:[#allocation5 + $0x44] ss:$16 sps:$4 sm:$0xff]   ;;  %v4037_v31 = vld [vmem:[#allocation5 + $0x40] ss:$16 sps:$4 sm:$0xff]   ;;  %v5218_v60 = vsub.s32 2, %v3984_v4 }
  0x3b   :  { %v4030_v28 = vld [vmem:[#allocation5 + $0x28] ss:$16 sps:$4 sm:$0xff]   ;;  %v85_v29 = vpack.c.bf16 %v79_v26, %v78_v25  ;;  %v4034_v30 = vld [vmem:[#allocation5 + $0x4c] ss:$16 sps:$4 sm:$0xff]   ;;  %v4040_v32 = vld [vmem:[#allocation5 + $0x64] ss:$16 sps:$4 sm:$0xff]  }
  0x3c   :  { %v117_v8 = vrot.slane %v74_v7, %v116_v6  ;;  %v124_v14 = vrot.slane %v110_v9, %v116_v6  ;;  %v4043_v33 = vld [vmem:[#allocation5 + $0x48] ss:$16 sps:$4 sm:$0xff]   ;;  %v4047_v34 = vld [vmem:[#allocation5 + $0x6c] ss:$16 sps:$4 sm:$0xff]   ;;  %v4050_v35 = vld [vmem:[#allocation5 + $0x60] ss:$16 sps:$4 sm:$0xff]  }
  0x3d   :  { %v80_v36 = vld [vmem:[%s5206_s0 + $0x20] sm:$0xff]  ;;  %v81_v37 = vld [vmem:[%s5206_s0 + $0x28] sm:$0xff]  ;;  %v82_v47 = vld [vmem:[%s5206_s0 + $0x30] sm:$0xff]  ;;  %v5217_v62 = vsub.s32 1, %v3984_v4  ;;  %v5216_v63 = vsub.s32 3, %v3984_v4 }
  0x3e   :  { %v125_v12 = vcombine.high %v117_v8, %v117_v8  ;;  %v142_v13 = vsel %vm140_vm0, %v117_v8, 0  ;;  %v126_v16 = vcombine.high %v124_v14, %v124_v14  ;;  %v148_v17 = vsel %vm140_vm0, %v124_v14, 0  ;;  %v4061_v38 = vld [vmem:[#allocation5 + $0x84] ss:$16 sps:$4 sm:$0xff]   ;;  %v4064_v39 = vld [vmem:[#allocation5 + $0x68] ss:$16 sps:$4 sm:$0xff]  }
  0x3f   :  { %v86_v40 = vpack.c.bf16 %v81_v37, %v80_v36  ;;  %v4068_v41 = vld [vmem:[#allocation5 + $0x80] ss:$16 sps:$4 sm:$0xff]   ;;  %v4070_v42 = vld [vmem:[#allocation5 + $0x8c] ss:$16 sps:$4 sm:$0xff]   ;;  %v4073_v43 = vld [vmem:[#allocation5 + $0x88] ss:$16 sps:$4 sm:$0xff]  }
  0x40   :  { %3119 = vmatprep.subr.msk.bf16.mxu0 %vm140_vm0, %v125_v12  ;;  %3124 = vmatprep.subr.msk.bf16.mxu1 %vm140_vm0, %v126_v16  ;;  %v4075_v44 = vld [vmem:[#allocation5 + $0xa4] ss:$16 sps:$4 sm:$0xff]   ;;  %v4078_v45 = vld [vmem:[#allocation5 + $0xac] ss:$16 sps:$4 sm:$0xff]   ;;  %v4081_v46 = vld [vmem:[#allocation5 + $0xa0] ss:$16 sps:$4 sm:$0xff]  }
  0x41   :  { %154 = vmatpush1.bf16.msra.mxu0 %v142_v13  ;;  %227 = vmatpush1.bf16.msra.mxu1 %v148_v17  ;;  %v83_v48 = vld [vmem:[%s5206_s0 + $0x38] sm:$0xff]  ;;  %v4091_v49 = vld [vmem:[#allocation5 + $0xc4] ss:$16 sps:$4 sm:$0xff]   ;;  %v4103_v52 = vld [vmem:[#allocation5 + $0xc0] ss:$16 sps:$4 sm:$0xff]  }
  0x42   :  { %527 = vmatprep.subr.bf16.mxu0 %v3997_v15  ;;  %568 = vmatprep.subr.bf16.mxu1 %v4001_v19  ;;  %v4095_v50 = vld [vmem:[#allocation5 + $0xa8] ss:$16 sps:$4 sm:$0xff]   ;;  %v4099_v51 = vld [vmem:[#allocation5 + $0xcc] ss:$16 sps:$4 sm:$0xff]   ;;  %v87_v53 = vpack.c.bf16 %v83_v48, %v82_v47  ;;  %v4106_v54 = vld [vmem:[#allocation5 + $0xe4] ss:$16 sps:$4 sm:$0xff]  }
  0x43   :  { %v4109_v55 = vld [vmem:[#allocation5 + $0xc8] ss:$16 sps:$4 sm:$0xff]   ;;  %v4112_v56 = vld [vmem:[#allocation5 + $0xec] ss:$16 sps:$4 sm:$0xff]   ;;  %v4115_v57 = vld [vmem:[#allocation5 + $0xe0] ss:$16 sps:$4 sm:$0xff]  }
  0x44   :  { %3120 = vmatmul.mubr.msk.bf16.vlgmr.msra.gmra.mrb[0].mxu0 %vm127_vm1, %v84_v18  ;;  %3125 = vmatmul.mubr.msk.bf16.vlgmr.msra.gmra.mrb[0].mxu1 %vm127_vm1, %v84_v18  ;;  %v4121_v58 = vld [vmem:[#allocation5 + $0xe8] ss:$16 sps:$4 sm:$0xff]   ;;  %v75_v61 = vld [vmem:[%s5209_s3] sm:$0xf] }
  0x45   :  { %528 = vmatpush1.bf16.msra.mxu0 %v4003_v20  ;;  %195 = vmatprep.mubr.bf16.mxu0 %v5220_v3  ;;  %v4179_v1 = vrot.slane %v75_v61, %v5219_v59  ;;  %v4185_v5 = vrot.slane %v75_v61, %v5218_v60  ;;  %v96_v6 = vrot.slane %v75_v61, %v5217_v62 }
  0x46   :  { %529 = vmatprep.subr.bf16.mxu0 %v4007_v21  ;;  %569 = vmatpush1.bf16.msra.mxu1 %v4009_v22  ;;  %v4191_v9 = vrot.slane %v75_v61, %v5216_v63 }
  0x47   :  { %268 = vmatprep.mubr.bf16.mxu1 %v5220_v3  ;;  %570 = vmatprep.subr.bf16.mxu1 %v4015_v24 }
  0x49   :  { %530 = vmatpush1.bf16.msra.mxu0 %v4013_v23 }
  0x4a   :  { %531 = vmatprep.subr.bf16.mxu0 %v4027_v27  ;;  %571 = vmatpush1.bf16.msra.mxu1 %v4030_v28 }
  0x4b   :  { %572 = vmatprep.subr.bf16.mxu1 %v4034_v30 }
  0x4c   :  { %3121 = vmatmul.mubr.msk.bf16.gmra.mrb[4].mxu0 %vm127_vm1, %v85_v29  ;;  %3126 = vmatmul.mubr.msk.bf16.gmra.mrb[4].mxu1 %vm127_vm1, %v85_v29 }
  0x4d   :  { %532 = vmatpush1.bf16.msra.mxu0 %v4037_v31  ;;  %205 = vmatprep.mubr.bf16.mxu0 %v5220_v3 }
  0x4e   :  { %533 = vmatprep.subr.bf16.mxu0 %v4040_v32  ;;  %573 = vmatpush1.bf16.msra.mxu1 %v4043_v33 }
  0x4f   :  { %278 = vmatprep.mubr.bf16.mxu1 %v5220_v3  ;;  %574 = vmatprep.subr.bf16.mxu1 %v4047_v34 }
  0x51   :  { %534 = vmatpush1.bf16.msra.mxu0 %v4050_v35 }
  0x52   :  { %535 = vmatprep.subr.bf16.mxu0 %v4061_v38  ;;  %575 = vmatpush1.bf16.msra.mxu1 %v4064_v39 }
  0x53   :  { %576 = vmatprep.subr.bf16.mxu1 %v4070_v42 }
  0x54   :  { %3122 = vmatmul.mubr.msk.bf16.gmra.mrb[8].mxu0 %vm127_vm1, %v86_v40  ;;  %3127 = vmatmul.mubr.msk.bf16.gmra.mrb[8].mxu1 %vm127_vm1, %v86_v40 }
  0x55   :  { %536 = vmatpush1.bf16.msra.mxu0 %v4068_v41  ;;  %215 = vmatprep.mubr.bf16.mxu0 %v5220_v3 }
  0x56   :  { %537 = vmatprep.subr.bf16.mxu0 %v4075_v44  ;;  %577 = vmatpush1.bf16.msra.mxu1 %v4073_v43 }
  0x57   :  { %288 = vmatprep.mubr.bf16.mxu1 %v5220_v3  ;;  %578 = vmatprep.subr.bf16.mxu1 %v4078_v45 }
  0x59   :  { %538 = vmatpush1.bf16.msra.mxu0 %v4081_v46 }
  0x5a   :  { %539 = vmatprep.subr.bf16.mxu0 %v4091_v49  ;;  %579 = vmatpush1.bf16.msra.mxu1 %v4095_v50 }
  0x5b   :  { %580 = vmatprep.subr.bf16.mxu1 %v4099_v51 }
  0x5c   :  { %3123 = vmatmul.mubr.msk.bf16.gmra.mrb[12].mxu0 %vm127_vm1, %v87_v53  ;;  %3128 = vmatmul.mubr.msk.bf16.gmra.mrb[12].mxu1 %vm127_vm1, %v87_v53 }
  0x5d   :  { %540 = vmatpush1.bf16.msra.mxu0 %v4103_v52  ;;  %559 = vmatprep.mubr.bf16.mxu0 %v5220_v3 }
  0x5e   :  { %541 = vmatprep.subr.bf16.mxu0 %v4106_v54  ;;  %581 = vmatpush1.bf16.msra.mxu1 %v4109_v55 }
  0x5f   :  { %600 = vmatprep.mubr.bf16.mxu1 %v5220_v3  ;;  %582 = vmatprep.subr.bf16.mxu1 %v4112_v56 }
  0x61   :  { %542 = vmatpush1.bf16.msra.mxu0 %v4115_v57 }
  0x62   :  { %644 = vmatprep.subr.bf16.mxu0 %v3997_v15  ;;  %583 = vmatpush1.bf16.msra.mxu1 %v4121_v58 }
  0x63   :  { %685 = vmatprep.subr.bf16.mxu1 %v4001_v19 }
  0x64   :  { %560 = vmatmul.mubr.bf16.vlgmr.msra.gmra.mrb[16].mxu0 %v5220_v3 }
  0x65   :  { %645 = vmatpush1.bf16.msra.mxu0 %v4003_v20  ;;  %676 = vmatprep.mubr.bf16.mxu0 %v5220_v3 }
  0x66   :  { %601 = vmatmul.mubr.bf16.vlgmr.msra.gmra.mrb[16].mxu1 %v5220_v3  ;;  %646 = vmatprep.subr.bf16.mxu0 %v4007_v21 }
  0x67   :  { %686 = vmatpush1.bf16.msra.mxu1 %v4009_v22  ;;  %717 = vmatprep.mubr.bf16.mxu1 %v5220_v3 }
  0x68   :  { %687 = vmatprep.subr.bf16.mxu1 %v4015_v24 }
  0x69   :  { %647 = vmatpush1.bf16.msra.mxu0 %v4013_v23 }
  0x6a   :  { %648 = vmatprep.subr.bf16.mxu0 %v4027_v27 }
  0x6b   :  { %688 = vmatpush1.bf16.msra.mxu1 %v4030_v28 }
  0x6c   :  { %689 = vmatprep.subr.bf16.mxu1 %v4034_v30 }
  0x6d   :  { %649 = vmatpush1.bf16.msra.mxu0 %v4037_v31 }
  0x6e   :  { %650 = vmatprep.subr.bf16.mxu0 %v4040_v32 }
  0x6f   :  { %690 = vmatpush1.bf16.msra.mxu1 %v4043_v33 }
  0x70   :  { %691 = vmatprep.subr.bf16.mxu1 %v4047_v34 }
  0x71   :  { %651 = vmatpush1.bf16.msra.mxu0 %v4050_v35 }
  0x72   :  { %652 = vmatprep.subr.bf16.mxu0 %v4061_v38 }
  0x73   :  { %692 = vmatpush1.bf16.msra.mxu1 %v4064_v39 }
  0x74   :  { %693 = vmatprep.subr.bf16.mxu1 %v4070_v42 }
  0x75   :  { %653 = vmatpush1.bf16.msra.mxu0 %v4068_v41 }
  0x76   :  { %654 = vmatprep.subr.bf16.mxu0 %v4075_v44 }
  0x77   :  { %694 = vmatpush1.bf16.msra.mxu1 %v4073_v43 }
  0x78   :  { %695 = vmatprep.subr.bf16.mxu1 %v4078_v45 }
  0x79   :  { %655 = vmatpush1.bf16.msra.mxu0 %v4081_v46 }
  0x7a   :  { %656 = vmatprep.subr.bf16.mxu0 %v4091_v49 }
  0x7b   :  { %696 = vmatpush1.bf16.msra.mxu1 %v4095_v50 }
  0x7c   :  { %697 = vmatprep.subr.bf16.mxu1 %v4099_v51 }
  0x7d   :  { %657 = vmatpush1.bf16.msra.mxu0 %v4103_v52 }
  0x7e   :  { %658 = vmatprep.subr.bf16.mxu0 %v4106_v54 }
  0x7f   :  { %698 = vmatpush1.bf16.msra.mxu1 %v4109_v55 }
  0x80   :  { %699 = vmatprep.subr.bf16.mxu1 %v4112_v56 }
  0x81   :  { %659 = vmatpush1.bf16.msra.mxu0 %v4115_v57 }
  0x82   :  { %762 = vmatprep.subr.bf16.mxu0 %v3997_v15 }
  0x83   :  { %700 = vmatpush1.bf16.msra.mxu1 %v4121_v58 }
  0x84   :  { %803 = vmatprep.subr.bf16.mxu1 %v4001_v19 }
 0x117   :  { %v4175_v0 = vpop.f32.mrb[0].mxu0  ;;  %v260_v8 = vpop.f32.mrb[0].mxu1 }
 0x118   :  { %v4181_v2 = vpop.f32.mrb[1].mxu0  ;;  %v262_v12 = vpop.f32.mrb[1].mxu1 }
 0x119   :  { %v191_v7 = vpop.f32.mrb[2].mxu0  ;;  %v264_v14 = vpop.f32.mrb[2].mxu1 }
 0x11a   :  { %v4194_v10 = vadd.f32 %v191_v7, %v4179_v1  ;;  %v193_v11 = vpop.f32.mrb[3].mxu0  ;;  %v4199_v16 = vadd.f32 %v264_v14, %v4185_v5  ;;  %v266_v17 = vpop.f32.mrb[3].mxu1 }
 0x11b   :  { %v4196_v13 = vadd.f32 %v193_v11, %v96_v6  ;;  %v4202_v18 = vadd.f32 %v266_v17, %v4191_v9 }
 0x11f   :  { %v197_v25 = vpop.f32.mrb[4].mxu0  ;;  %v270_v40 = vpop.f32.mrb[4].mxu1 }
 0x120   :  { %v4205_v26 = vadd.f32 %v197_v25, %v4179_v1  ;;  %v199_v29 = vpop.f32.mrb[5].mxu0  ;;  %v4213_v53 = vadd.f32 %v270_v40, %v4185_v5  ;;  %v272_v61 = vpop.f32.mrb[5].mxu1 }
 0x121   :  { %v4207_v36 = vadd.f32 %v199_v29, %v96_v6  ;;  %v201_v37 = vpop.f32.mrb[6].mxu0  ;;  %v4218_v11 = vadd.f32 %v272_v61, %v4191_v9  ;;  %v274_v14 = vpop.f32.mrb[6].mxu1 }
 0x122   :  { %v4210_v47 = vadd.f32 %v201_v37, %v4179_v1  ;;  %v203_v48 = vpop.f32.mrb[7].mxu0  ;;  %v4221_v17 = vadd.f32 %v274_v14, %v4185_v5  ;;  %v276_v25 = vpop.f32.mrb[7].mxu1 }
 0x123   :  { %v4215_v7 = vadd.f32 %v203_v48, %v96_v6  ;;  %5227 = vst [vmem:[#allocation15_spill] sm:$0xff] %v4218_v11  ;;  %v4224_v29 = vadd.f32 %v276_v25, %v4191_v9 }
 0x124   :  { %5225 = vst [vmem:[#allocation13_spill] sm:$0xff] %v4210_v47  ;;  %5228 = vst [vmem:[#allocation16_spill] sm:$0xff] %v4221_v17 }
 0x125   :  { %5226 = vst [vmem:[#allocation14_spill] sm:$0xff] %v4215_v7  ;;  %5229 = vst [vmem:[#allocation17_spill] sm:$0xff] %v4224_v29 }
 0x127   :  { %v207_v37 = vpop.f32.mrb[8].mxu0  ;;  %v280_v60 = vpop.f32.mrb[8].mxu1 }
 0x128   :  { %v4227_v63 = vadd.f32 %v207_v37, %v4179_v1  ;;  %v209_v40 = vpop.f32.mrb[9].mxu0  ;;  %v4235_v14 = vadd.f32 %v280_v60, %v4185_v5  ;;  %v282_v3 = vpop.f32.mrb[9].mxu1 }
 0x129   :  { %v4229_v62 = vadd.f32 %v209_v40, %v96_v6  ;;  %v211_v48 = vpop.f32.mrb[10].mxu0  ;;  %v4240_v25 = vadd.f32 %v282_v3, %v4191_v9  ;;  %v284_v37 = vpop.f32.mrb[10].mxu1 }
 0x12a   :  { %5230 = vst [vmem:[#allocation18_spill] sm:$0xff] %v4227_v63  ;;  %v4232_v61 = vadd.f32 %v211_v48, %v4179_v1  ;;  %v213_v59 = vpop.f32.mrb[11].mxu0  ;;  %5233 = vst [vmem:[#allocation21_spill] sm:$0xff] %v4235_v14  ;;  %v4243_v63 = vadd.f32 %v284_v37, %v4185_v5  ;;  %v286_v40 = vpop.f32.mrb[11].mxu1 }
 0x12b   :  { %5231 = vst [vmem:[#allocation19_spill] sm:$0xff] %v4229_v62  ;;  %v4237_v4 = vadd.f32 %v213_v59, %v96_v6  ;;  %5235 = vst [vmem:[#allocation23_spill] sm:$0xff] %v4240_v25  ;;  %v4246_v62 = vadd.f32 %v286_v40, %v4191_v9 }
 0x12c   :  { %5232 = vst [vmem:[#allocation20_spill] sm:$0xff] %v4232_v61  ;;  %5236 = vst [vmem:[#allocation24_spill] sm:$0xff] %v4243_v63 }
 0x12d   :  { %5234 = vst [vmem:[#allocation22_spill] sm:$0xff] %v4237_v4  ;;  %5237 = vst [vmem:[#allocation25_spill] sm:$0xff] %v4246_v62 }
 0x12f   :  { %v217_v48 = vpop.f32.mrb[12].mxu0  ;;  %v290_v4 = vpop.f32.mrb[12].mxu1 }
 0x130   :  { %v4249_v61 = vadd.f32 %v217_v48, %v4179_v1  ;;  %v219_v60 = vpop.f32.mrb[13].mxu0  ;;  %v4257_v37 = vadd.f32 %v290_v4, %v4185_v5  ;;  %v292_v63 = vpop.f32.mrb[13].mxu1  ;;  %v190_v4 = vadd.f32 %v4181_v2, %v96_v6 }
 0x131   :  { %v4251_v14 = vadd.f32 %v219_v60, %v96_v6  ;;  %v221_v59 = vpop.f32.mrb[14].mxu0  ;;  %v4262_v40 = vadd.f32 %v292_v63, %v4191_v9  ;;  %v294_v48 = vpop.f32.mrb[14].mxu1  ;;  %v263_v63 = vadd.f32 %v262_v12, %v4191_v9 }
 0x132   :  { %5238 = vst [vmem:[#allocation26_spill] sm:$0xff] %v4249_v61  ;;  %v4254_v3 = vadd.f32 %v221_v59, %v4179_v1  ;;  %v223_v25 = vpop.f32.mrb[15].mxu0  ;;  %5241 = vst [vmem:[#allocation29_spill] sm:$0xff] %v4257_v37  ;;  %v4265_v61 = vadd.f32 %v294_v48, %v4185_v5  ;;  %v296_v60 = vpop.f32.mrb[15].mxu1  ;;  %v188_v59 = vadd.f32 %v4175_v0, %v4179_v1 }
 0x133   :  { %5239 = vst [vmem:[#allocation27_spill] sm:$0xff] %v4251_v14  ;;  %v4259_v29 = vadd.f32 %v223_v25, %v96_v6  ;;  %5243 = vst [vmem:[#allocation31_spill] sm:$0xff] %v4262_v40  ;;  %v4268_v14 = vadd.f32 %v296_v60, %v4191_v9  ;;  %v261_v25 = vadd.f32 %v260_v8, %v4185_v5 }
 0x134   :  { %5240 = vst [vmem:[#allocation28_spill] sm:$0xff] %v4254_v3  ;;  %5244 = vst [vmem:[#allocation32_spill] sm:$0xff] %v4265_v61 }
 0x135   :  { %5242 = vst [vmem:[#allocation30_spill] sm:$0xff] %v4259_v29  ;;  %5245 = vst [vmem:[#allocation33_spill] sm:$0xff] %v4268_v14 }
 0x137   :  { %v561_v3 = vpop.f32.mrb[16].mxu0 }
 0x138   :  { %v609_v29 = vadd.f32 %v561_v3, %v188_v59  ;;  %v563_v37 = vpop.f32.mrb[17].mxu0 }
 0x139   :  { %v610_v40 = vadd.f32 %v563_v37, %v190_v4  ;;  %v565_v62 = vpop.f32.mrb[18].mxu0  ;;  %v602_v48 = vpop.f32.mrb[16].mxu1 }
 0x13a   :  { %v3161_v61 = vmul.f32 -1.442695, %v609_v29  ;;  %v611_v7 = vadd.f32 %v602_v48, %v261_v25  ;;  %v566_v17 = vpop.f32.mrb[19].mxu0  ;;  %v604_v60 = vpop.f32.mrb[17].mxu1 }
 0x13b   :  { %v3162_v14 = vmul.f32 -1.442695, %v610_v40  ;;  %v612_v47 = vadd.f32 %v604_v60, %v263_v63  ;;  %v606_v11 = vpop.f32.mrb[18].mxu1 }
 0x13c   :  { %3481 = vpow2.f32 %v3161_v61  ;;  %v607_v0 = vpop.f32.mrb[19].mxu1  ;;  %v3163_v1 = vmul.f32 -1.442695, %v611_v7 }
 0x13d   :  { %3483 = vpow2.f32 %v3162_v14 }
 0x13e   :  { %3485 = vpow2.f32 %v3163_v1 }
 0x13f   :  { %3487 = vtanh.f32 %v612_v47  ;;  %v5246_v47 = vmov 0  }
 0x146   :  { %v3482_v2 = vpop.eup %3481 }
 0x147   :  { %v3484_v5 = vpop.eup %3483  ;;  %v622_v6 = vadd.f32 1.0, %v3482_v2 }
 0x148   :  { %v623_v8 = vadd.f32 1.0, %v3484_v5  ;;  %v3486_v62 = vpop.eup %3485 }
 0x149   :  { %3489 = vrcp.f32 %v622_v6  ;;  %v3488_v9 = vpop.eup %3487  ;;  %v624_v29 = vadd.f32 1.0, %v3486_v62 }
 0x14a   :  { %3491 = vrcp.f32 %v623_v8 }
 0x14b   :  { %3493 = vrcp.f32 %v624_v29 }
 0x153   :  { %v3490_v12 = vpop.eup %3489 }
 0x154   :  { %v3492_v17 = vpop.eup %3491  ;;  %v633_v3 = vmul.f32 %v3490_v12, %v3488_v9 }
 0x155   :  { %v632_v37 = vmul.f32 0.0, %v3492_v17  ;;  %v3494_v7 = vpop.eup %3493 }
 0x157   :  { %v4275_v11 = vadd.f32 %v633_v3, %v632_v37 }
 0x159   :  { %3495 = vtanh.f32 %v4275_v11 }
 0x163   :  { %v3496_v61 = vpop.eup %3495 }
 0x164   :  { %v636_v14 = vmul.f32 %v3496_v61, %v3494_v7 }
 0x166   :  { %v637_v40 = vpack.c.bf16 %v636_v14, %v636_v14 }
 0x168   :  { %638 = vst [vmem:[#allocation3] sm:$0xf] %v637_v40  ;;  %677 = vmatmul.mubr.bf16.vlgmr.msra.gmra.mrb[20].mxu0 %v637_v40  ;;  %718 = vmatmul.mubr.bf16.vlgmr.msra.gmra.mrb[20].mxu1 %v637_v40 }
 0x169   :  { %763 = vmatpush1.bf16.msra.mxu0 %v4003_v20  ;;  %804 = vmatpush1.bf16.msra.mxu1 %v4009_v22 }
 0x16a   :  { %764 = vmatprep.subr.bf16.mxu0 %v4007_v21  ;;  %805 = vmatprep.subr.bf16.mxu1 %v4015_v24 }
 0x16b   :  { %794 = vmatprep.mubr.bf16.mxu0 %v5246_v47  ;;  %835 = vmatprep.mubr.bf16.mxu1 %v5246_v47 }
 0x16d   :  { %765 = vmatpush1.bf16.msra.mxu0 %v4013_v23  ;;  %806 = vmatpush1.bf16.msra.mxu1 %v4030_v28 }
 0x16e   :  { %766 = vmatprep.subr.bf16.mxu0 %v4027_v27  ;;  %807 = vmatprep.subr.bf16.mxu1 %v4034_v30 }
 0x171   :  { %767 = vmatpush1.bf16.msra.mxu0 %v4037_v31  ;;  %808 = vmatpush1.bf16.msra.mxu1 %v4043_v33 }
 0x172   :  { %768 = vmatprep.subr.bf16.mxu0 %v4040_v32  ;;  %809 = vmatprep.subr.bf16.mxu1 %v4047_v34 }
 0x175   :  { %769 = vmatpush1.bf16.msra.mxu0 %v4050_v35  ;;  %810 = vmatpush1.bf16.msra.mxu1 %v4064_v39 }
 0x176   :  { %770 = vmatprep.subr.bf16.mxu0 %v4061_v38  ;;  %811 = vmatprep.subr.bf16.mxu1 %v4070_v42 }
 0x179   :  { %771 = vmatpush1.bf16.msra.mxu0 %v4068_v41  ;;  %812 = vmatpush1.bf16.msra.mxu1 %v4073_v43 }
 0x17a   :  { %772 = vmatprep.subr.bf16.mxu0 %v4075_v44  ;;  %813 = vmatprep.subr.bf16.mxu1 %v4078_v45 }
 0x17d   :  { %773 = vmatpush1.bf16.msra.mxu0 %v4081_v46  ;;  %814 = vmatpush1.bf16.msra.mxu1 %v4095_v50 }
 0x17e   :  { %774 = vmatprep.subr.bf16.mxu0 %v4091_v49  ;;  %815 = vmatprep.subr.bf16.mxu1 %v4099_v51 }
 0x181   :  { %775 = vmatpush1.bf16.msra.mxu0 %v4103_v52  ;;  %816 = vmatpush1.bf16.msra.mxu1 %v4109_v55 }
 0x182   :  { %776 = vmatprep.subr.bf16.mxu0 %v4106_v54  ;;  %817 = vmatprep.subr.bf16.mxu1 %v4112_v56 }
 0x185   :  { %777 = vmatpush1.bf16.msra.mxu0 %v4115_v57  ;;  %818 = vmatpush1.bf16.msra.mxu1 %v4121_v58 }
 0x186   :  { %880 = vmatprep.subr.bf16.mxu0 %v3997_v15  ;;  %921 = vmatprep.subr.bf16.mxu1 %v4001_v19 }
 0x23b   :  { %v678_v59 = vpop.f32.mrb[20].mxu0  ;;  %v719_v4 = vpop.f32.mrb[20].mxu1 }
 0x23c   :  { %v726_v25 = vadd.f32 %v678_v59, %v4194_v10  ;;  %v728_v63 = vadd.f32 %v719_v4, %v4199_v16  ;;  %v680_v48 = vpop.f32.mrb[21].mxu0  ;;  %v721_v60 = vpop.f32.mrb[21].mxu1 }
 0x23d   :  { %v727_v0 = vadd.f32 %v680_v48, %v4196_v13  ;;  %v729_v1 = vadd.f32 %v721_v60, %v4202_v18  ;;  %v682_v2 = vpop.f32.mrb[22].mxu0  ;;  %v723_v5 = vpop.f32.mrb[22].mxu1 }
 0x23e   :  { %v3164_v6 = vmul.f32 -1.442695, %v726_v25  ;;  %v683_v8 = vpop.f32.mrb[23].mxu0  ;;  %v724_v62 = vpop.f32.mrb[23].mxu1  ;;  %v3166_v12 = vmul.f32 -1.442695, %v728_v63 }
 0x23f   :  { %v3165_v9 = vmul.f32 -1.442695, %v727_v0 }
 0x240   :  { %3497 = vpow2.f32 %v3164_v6  ;;  %v5247_v6 = vld [vmem:[#allocation15_spill] sm:$0xff] }
 0x241   :  { %3499 = vpow2.f32 %v3165_v9 }
 0x242   :  { %3501 = vtanh.f32 %v729_v1 }
 0x243   :  { %3503 = vpow2.f32 %v3166_v12 }
 0x24a   :  { %v3498_v17 = vpop.eup %3497 }
 0x24b   :  { %v739_v29 = vadd.f32 1.0, %v3498_v17  ;;  %v3500_v10 = vpop.eup %3499 }
 0x24c   :  { %v740_v16 = vadd.f32 1.0, %v3500_v10  ;;  %v3502_v13 = vpop.eup %3501 }
 0x24d   :  { %3505 = vrcp.f32 %v739_v29  ;;  %v3504_v3 = vpop.eup %3503 }
 0x24e   :  { %3507 = vrcp.f32 %v740_v16  ;;  %v741_v61 = vadd.f32 1.0, %v3504_v3 }
 0x250   :  { %3509 = vrcp.f32 %v741_v61 }
 0x257   :  { %v3506_v18 = vpop.eup %3505 }
 0x258   :  { %v750_v37 = vmul.f32 %v3506_v18, %v3502_v13  ;;  %v3508_v7 = vpop.eup %3507 }
 0x259   :  { %v749_v14 = vmul.f32 %v3508_v7, %v4275_v11 }
 0x25a   :  { %v3510_v59 = vpop.eup %3509 }
 0x25b   :  { %v4317_v40 = vadd.f32 %v750_v37, %v749_v14 }
 0x25d   :  { %3511 = vtanh.f32 %v4317_v40 }
 0x267   :  { %v3512_v4 = vpop.eup %3511 }
 0x268   :  { %v753_v25 = vmul.f32 %v3512_v4, %v3510_v59 }
 0x26a   :  { %v754_v63 = vpack.c.bf16 %v753_v25, %v753_v25 }
 0x26c   :  { %756 = vst [vmem:[#allocation3 + $0x4] sm:$0xf] %v754_v63  ;;  %795 = vmatmul.mubr.bf16.vlgmr.msra.gmra.mrb[24].mxu0 %v754_v63  ;;  %836 = vmatmul.mubr.bf16.vlgmr.msra.gmra.mrb[24].mxu1 %v754_v63 }
 0x26d   :  { %881 = vmatpush1.bf16.msra.mxu0 %v4003_v20  ;;  %922 = vmatpush1.bf16.msra.mxu1 %v4009_v22 }
 0x26e   :  { %882 = vmatprep.subr.bf16.mxu0 %v4007_v21  ;;  %923 = vmatprep.subr.bf16.mxu1 %v4015_v24 }
 0x26f   :  { %912 = vmatprep.mubr.bf16.mxu0 %v5246_v47  ;;  %953 = vmatprep.mubr.bf16.mxu1 %v5246_v47 }
 0x271   :  { %883 = vmatpush1.bf16.msra.mxu0 %v4013_v23  ;;  %924 = vmatpush1.bf16.msra.mxu1 %v4030_v28 }
 0x272   :  { %884 = vmatprep.subr.bf16.mxu0 %v4027_v27  ;;  %925 = vmatprep.subr.bf16.mxu1 %v4034_v30 }
 0x275   :  { %885 = vmatpush1.bf16.msra.mxu0 %v4037_v31  ;;  %926 = vmatpush1.bf16.msra.mxu1 %v4043_v33 }
 0x276   :  { %886 = vmatprep.subr.bf16.mxu0 %v4040_v32  ;;  %927 = vmatprep.subr.bf16.mxu1 %v4047_v34 }
 0x279   :  { %887 = vmatpush1.bf16.msra.mxu0 %v4050_v35  ;;  %928 = vmatpush1.bf16.msra.mxu1 %v4064_v39 }
 0x27a   :  { %888 = vmatprep.subr.bf16.mxu0 %v4061_v38  ;;  %929 = vmatprep.subr.bf16.mxu1 %v4070_v42 }
 0x27d   :  { %889 = vmatpush1.bf16.msra.mxu0 %v4068_v41  ;;  %930 = vmatpush1.bf16.msra.mxu1 %v4073_v43 }
 0x27e   :  { %890 = vmatprep.subr.bf16.mxu0 %v4075_v44  ;;  %931 = vmatprep.subr.bf16.mxu1 %v4078_v45 }
 0x281   :  { %891 = vmatpush1.bf16.msra.mxu0 %v4081_v46  ;;  %932 = vmatpush1.bf16.msra.mxu1 %v4095_v50 }
 0x282   :  { %892 = vmatprep.subr.bf16.mxu0 %v4091_v49  ;;  %933 = vmatprep.subr.bf16.mxu1 %v4099_v51 }
 0x285   :  { %893 = vmatpush1.bf16.msra.mxu0 %v4103_v52  ;;  %934 = vmatpush1.bf16.msra.mxu1 %v4109_v55 }
 0x286   :  { %894 = vmatprep.subr.bf16.mxu0 %v4106_v54  ;;  %935 = vmatprep.subr.bf16.mxu1 %v4112_v56 }
 0x289   :  { %895 = vmatpush1.bf16.msra.mxu0 %v4115_v57  ;;  %936 = vmatpush1.bf16.msra.mxu1 %v4121_v58 }
 0x28a   :  { %998 = vmatprep.subr.bf16.mxu0 %v3997_v15  ;;  %1039 = vmatprep.subr.bf16.mxu1 %v4001_v19 }
 0x33f   :  { %v796_v11 = vpop.f32.mrb[24].mxu0  ;;  %v837_v48 = vpop.f32.mrb[24].mxu1 }
 0x340   :  { %v844_v60 = vadd.f32 %v796_v11, %v4205_v26  ;;  %v846_v0 = vadd.f32 %v837_v48, %v4213_v53  ;;  %v798_v1 = vpop.f32.mrb[25].mxu0  ;;  %v839_v2 = vpop.f32.mrb[25].mxu1 }
 0x341   :  { %v845_v5 = vadd.f32 %v798_v1, %v4207_v36  ;;  %v847_v8 = vadd.f32 %v839_v2, %v5247_v6  ;;  %v800_v62 = vpop.f32.mrb[26].mxu0  ;;  %v841_v9 = vpop.f32.mrb[26].mxu1 }
 0x342   :  { %v3167_v12 = vmul.f32 -1.442695, %v844_v60  ;;  %v801_v17 = vpop.f32.mrb[27].mxu0  ;;  %v842_v29 = vpop.f32.mrb[27].mxu1  ;;  %v3169_v19 = vmul.f32 -1.442695, %v846_v0 }
 0x343   :  { %v3168_v15 = vmul.f32 -1.442695, %v845_v5  ;;  %v4408_v29 = vld [vmem:[#allocation5] ss:$16 sps:$4 sm:$0xff]  }
 0x344   :  { %3513 = vpow2.f32 %v3167_v12 }
 0x345   :  { %3515 = vpow2.f32 %v3168_v15  ;;  %v4411_v15 = vld [vmem:[#allocation5 + $0x8] ss:$16 sps:$4 sm:$0xff]  }
 0x346   :  { %3517 = vtanh.f32 %v847_v8 }
 0x347   :  { %3519 = vpow2.f32 %v3169_v19  ;;  %v4414_v19 = vld [vmem:[#allocation5 + $0x24] ss:$16 sps:$4 sm:$0xff]  }
 0x34e   :  { %v3514_v10 = vpop.eup %3513 }
 0x34f   :  { %v857_v16 = vadd.f32 1.0, %v3514_v10  ;;  %v3516_v26 = vpop.eup %3515  ;;  %v4417_v10 = vld [vmem:[#allocation5 + $0x2c] ss:$16 sps:$4 sm:$0xff]  }
 0x350   :  { %v858_v53 = vadd.f32 1.0, %v3516_v26  ;;  %v3518_v36 = vpop.eup %3517  ;;  %v4425_v26 = vld [vmem:[#allocation5 + $0x28] ss:$16 sps:$4 sm:$0xff]  }
 0x351   :  { %3521 = vrcp.f32 %v857_v16  ;;  %v3520_v13 = vpop.eup %3519  ;;  %v4422_v16 = vld [vmem:[#allocation5 + $0x20] ss:$16 sps:$4 sm:$0xff]  }
 0x352   :  { %3523 = vrcp.f32 %v858_v53  ;;  %v859_v7 = vadd.f32 1.0, %v3520_v13  ;;  %v4428_v53 = vld [vmem:[#allocation5 + $0x44] ss:$16 sps:$4 sm:$0xff]   ;;  %v4434_v13 = vld [vmem:[#allocation5 + $0x40] ss:$16 sps:$4 sm:$0xff]  }
 0x354   :  { %3525 = vrcp.f32 %v859_v7  ;;  %v4446_v7 = vld [vmem:[#allocation5 + $0x60] ss:$16 sps:$4 sm:$0xff]  }
 0x35b   :  { %v3522_v3 = vpop.eup %3521 }
 0x35c   :  { %v868_v18 = vmul.f32 %v3522_v3, %v3518_v36  ;;  %v3524_v37 = vpop.eup %3523  ;;  %v4431_v36 = vld [vmem:[#allocation5 + $0x4c] ss:$16 sps:$4 sm:$0xff]   ;;  %v4437_v3 = vld [vmem:[#allocation5 + $0x48] ss:$16 sps:$4 sm:$0xff]  }
 0x35d   :  { %v867_v61 = vmul.f32 %v3524_v37, %v4317_v40  ;;  %v4443_v37 = vld [vmem:[#allocation5 + $0x6c] ss:$16 sps:$4 sm:$0xff]  }
 0x35e   :  { %v3526_v59 = vpop.eup %3525 }
 0x35f   :  { %v4359_v14 = vadd.f32 %v868_v18, %v867_v61  ;;  %v4440_v18 = vld [vmem:[#allocation5 + $0x64] ss:$16 sps:$4 sm:$0xff]   ;;  %v4449_v61 = vld [vmem:[#allocation5 + $0x68] ss:$16 sps:$4 sm:$0xff]  }
 0x361   :  { %3527 = vtanh.f32 %v4359_v14 }
 0x36b   :  { %v3528_v4 = vpop.eup %3527 }
 0x36c   :  { %v871_v25 = vmul.f32 %v3528_v4, %v3526_v59  ;;  %v4455_v59 = vld [vmem:[#allocation5 + $0x8c] ss:$16 sps:$4 sm:$0xff]   ;;  %v4458_v4 = vld [vmem:[#allocation5 + $0x80] ss:$16 sps:$4 sm:$0xff]  }
 0x36e   :  { %v872_v63 = vpack.c.bf16 %v871_v25, %v871_v25  ;;  %v4461_v25 = vld [vmem:[#allocation5 + $0x88] ss:$16 sps:$4 sm:$0xff]  }
 0x370   :  { %874 = vst [vmem:[#allocation3 + $0x8] sm:$0xf] %v872_v63  ;;  %913 = vmatmul.mubr.bf16.vlgmr.msra.gmra.mrb[28].mxu0 %v872_v63  ;;  %954 = vmatmul.mubr.bf16.vlgmr.msra.gmra.mrb[28].mxu1 %v872_v63  ;;  %v4464_v63 = vld [vmem:[#allocation5 + $0xa4] ss:$16 sps:$4 sm:$0xff]  }
 0x371   :  { %999 = vmatpush1.bf16.msra.mxu0 %v4003_v20  ;;  %1040 = vmatpush1.bf16.msra.mxu1 %v4009_v22  ;;  %v4394_v20 = vld [vmem:[#allocation5 + $0x4] ss:$16 sps:$4 sm:$0xff]  }
 0x372   :  { %1000 = vmatprep.subr.bf16.mxu0 %v4007_v21  ;;  %1041 = vmatprep.subr.bf16.mxu1 %v4015_v24  ;;  %v4397_v21 = vld [vmem:[#allocation5 + $0xc] ss:$16 sps:$4 sm:$0xff]  }
 0x373   :  { %1030 = vmatprep.mubr.bf16.mxu0 %v5246_v47  ;;  %1071 = vmatprep.mubr.bf16.mxu1 %v5246_v47  ;;  %v5248_v24 = vld [vmem:[#allocation13_spill] sm:$0xff] }
 0x375   :  { %1001 = vmatpush1.bf16.msra.mxu0 %v4013_v23  ;;  %1042 = vmatpush1.bf16.msra.mxu1 %v4030_v28  ;;  %v5249_v28 = vld [vmem:[#allocation16_spill] sm:$0xff] }
 0x376   :  { %1002 = vmatprep.subr.bf16.mxu0 %v4027_v27  ;;  %1043 = vmatprep.subr.bf16.mxu1 %v4034_v30 }
 0x379   :  { %1003 = vmatpush1.bf16.msra.mxu0 %v4037_v31  ;;  %1044 = vmatpush1.bf16.msra.mxu1 %v4043_v33  ;;  %v5250_v33 = vld [vmem:[#allocation14_spill] sm:$0xff] }
 0x37a   :  { %1004 = vmatprep.subr.bf16.mxu0 %v4040_v32  ;;  %1045 = vmatprep.subr.bf16.mxu1 %v4047_v34 }
 0x37d   :  { %1005 = vmatpush1.bf16.msra.mxu0 %v4050_v35  ;;  %1046 = vmatpush1.bf16.msra.mxu1 %v4064_v39  ;;  %v5251_v35 = vld [vmem:[#allocation17_spill] sm:$0xff] }
 0x37e   :  { %1006 = vmatprep.subr.bf16.mxu0 %v4061_v38  ;;  %1047 = vmatprep.subr.bf16.mxu1 %v4070_v42 }
 0x381   :  { %1007 = vmatpush1.bf16.msra.mxu0 %v4068_v41  ;;  %1048 = vmatpush1.bf16.msra.mxu1 %v4073_v43 }
 0x382   :  { %1008 = vmatprep.subr.bf16.mxu0 %v4075_v44  ;;  %1049 = vmatprep.subr.bf16.mxu1 %v4078_v45 }
 0x385   :  { %1009 = vmatpush1.bf16.msra.mxu0 %v4081_v46  ;;  %1050 = vmatpush1.bf16.msra.mxu1 %v4095_v50 }
 0x386   :  { %1010 = vmatprep.subr.bf16.mxu0 %v4091_v49  ;;  %1051 = vmatprep.subr.bf16.mxu1 %v4099_v51 }
 0x389   :  { %1011 = vmatpush1.bf16.msra.mxu0 %v4103_v52  ;;  %1052 = vmatpush1.bf16.msra.mxu1 %v4109_v55 }
 0x38a   :  { %1012 = vmatprep.subr.bf16.mxu0 %v4106_v54  ;;  %1053 = vmatprep.subr.bf16.mxu1 %v4112_v56 }
 0x38d   :  { %1013 = vmatpush1.bf16.msra.mxu0 %v4115_v57  ;;  %1054 = vmatpush1.bf16.msra.mxu1 %v4121_v58 }
 0x38e   :  { %1116 = vmatprep.subr.bf16.mxu0 %v4394_v20  ;;  %1157 = vmatprep.subr.bf16.mxu1 %v4397_v21 }
 0x443   :  { %v914_v22 = vpop.f32.mrb[28].mxu0  ;;  %v955_v23 = vpop.f32.mrb[28].mxu1 }
 0x444   :  { %v962_v27 = vadd.f32 %v914_v22, %v5248_v24  ;;  %v964_v30 = vadd.f32 %v955_v23, %v5249_v28  ;;  %v916_v31 = vpop.f32.mrb[29].mxu0  ;;  %v957_v32 = vpop.f32.mrb[29].mxu1  ;;  %v4467_v22 = vld [vmem:[#allocation5 + $0xac] ss:$16 sps:$4 sm:$0xff]   ;;  %v4470_v23 = vld [vmem:[#allocation5 + $0xa0] ss:$16 sps:$4 sm:$0xff]  }
 0x445   :  { %v963_v34 = vadd.f32 %v916_v31, %v5250_v33  ;;  %v965_v38 = vadd.f32 %v957_v32, %v5251_v35  ;;  %v918_v39 = vpop.f32.mrb[30].mxu0  ;;  %v959_v41 = vpop.f32.mrb[30].mxu1  ;;  %v4473_v24 = vld [vmem:[#allocation5 + $0xa8] ss:$16 sps:$4 sm:$0xff]   ;;  %v5252_v31 = vld [vmem:[#allocation18_spill] sm:$0xff] }
 0x446   :  { %v3170_v42 = vmul.f32 -1.442695, %v962_v27  ;;  %v919_v43 = vpop.f32.mrb[31].mxu0  ;;  %v960_v44 = vpop.f32.mrb[31].mxu1  ;;  %v3172_v46 = vmul.f32 -1.442695, %v964_v30 }
 0x447   :  { %v3171_v45 = vmul.f32 -1.442695, %v963_v34  ;;  %v4476_v27 = vld [vmem:[#allocation5 + $0xc4] ss:$16 sps:$4 sm:$0xff]   ;;  %v5253_v32 = vld [vmem:[#allocation21_spill] sm:$0xff]  ;;  %v5254_v34 = vld [vmem:[#allocation19_spill] sm:$0xff] }
 0x448   :  { %3529 = vpow2.f32 %v3170_v42  ;;  %v5255_v35 = vld [vmem:[#allocation23_spill] sm:$0xff] }
 0x449   :  { %3531 = vpow2.f32 %v3171_v45 }
 0x44a   :  { %3533 = vtanh.f32 %v965_v38 }
 0x44b   :  { %3535 = vpow2.f32 %v3172_v46 }
 0x452   :  { %v3530_v49 = vpop.eup %3529 }
 0x453   :  { %v975_v50 = vadd.f32 1.0, %v3530_v49  ;;  %v3532_v40 = vpop.eup %3531 }
 0x454   :  { %v976_v11 = vadd.f32 1.0, %v3532_v40  ;;  %v3534_v48 = vpop.eup %3533 }
 0x455   :  { %3537 = vrcp.f32 %v975_v50  ;;  %v3536_v60 = vpop.eup %3535 }
 0x456   :  { %3539 = vrcp.f32 %v976_v11  ;;  %v977_v5 = vadd.f32 1.0, %v3536_v60 }
 0x458   :  { %3541 = vrcp.f32 %v977_v5 }
 0x45f   :  { %v3538_v0 = vpop.eup %3537 }
 0x460   :  { %v986_v1 = vmul.f32 %v3538_v0, %v3534_v48  ;;  %v3540_v2 = vpop.eup %3539 }
 0x461   :  { %v985_v6 = vmul.f32 %v3540_v2, %v4359_v14  ;;  %v4452_v14 = vld [vmem:[#allocation5 + $0x84] ss:$16 sps:$4 sm:$0xff]  }
 0x462   :  { %v3542_v62 = vpop.eup %3541 }
 0x463   :  { %v4405_v8 = vadd.f32 %v986_v1, %v985_v6 }
 0x465   :  { %3543 = vtanh.f32 %v4405_v8 }
 0x46f   :  { %v3544_v9 = vpop.eup %3543 }
 0x470   :  { %v989_v12 = vmul.f32 %v3544_v9, %v3542_v62 }
 0x472   :  { %v990_v17 = vpack.c.bf16 %v989_v12, %v989_v12  ;;  %v4524_v12 = vld [vmem:[#allocation5 + $0xc0] ss:$16 sps:$4 sm:$0xff]  }
 0x474   :  { %992 = vst [vmem:[#allocation3 + $0xc] sm:$0xf] %v990_v17  ;;  %1031 = vmatmul.mubr.bf16.vlgmr.msra.gmra.mrb[32].mxu0 %v990_v17  ;;  %1072 = vmatmul.mubr.bf16.vlgmr.msra.gmra.mrb[32].mxu1 %v990_v17  ;;  %v4527_v17 = vld [vmem:[#allocation5 + $0xc8] ss:$16 sps:$4 sm:$0xff]  }
 0x475   :  { %1117 = vmatpush1.bf16.msra.mxu0 %v4408_v29  ;;  %1158 = vmatpush1.bf16.msra.mxu1 %v4411_v15 }
 0x476   :  { %1118 = vmatprep.subr.bf16.mxu0 %v4414_v19  ;;  %1159 = vmatprep.subr.bf16.mxu1 %v4417_v10 }
 0x477   :  { %1148 = vmatprep.mubr.bf16.mxu0 %v5246_v47  ;;  %1189 = vmatprep.mubr.bf16.mxu1 %v5246_v47 }
 0x479   :  { %1119 = vmatpush1.bf16.msra.mxu0 %v4422_v16  ;;  %1160 = vmatpush1.bf16.msra.mxu1 %v4425_v26 }
 0x47a   :  { %1120 = vmatprep.subr.bf16.mxu0 %v4428_v53  ;;  %1161 = vmatprep.subr.bf16.mxu1 %v4431_v36 }
 0x47d   :  { %1121 = vmatpush1.bf16.msra.mxu0 %v4434_v13  ;;  %1162 = vmatpush1.bf16.msra.mxu1 %v4437_v3 }
 0x47e   :  { %1122 = vmatprep.subr.bf16.mxu0 %v4440_v18  ;;  %1163 = vmatprep.subr.bf16.mxu1 %v4443_v37 }
 0x481   :  { %1123 = vmatpush1.bf16.msra.mxu0 %v4446_v7  ;;  %1164 = vmatpush1.bf16.msra.mxu1 %v4449_v61 }
 0x482   :  { %1124 = vmatprep.subr.bf16.mxu0 %v4452_v14  ;;  %1165 = vmatprep.subr.bf16.mxu1 %v4455_v59 }
 0x485   :  { %1125 = vmatpush1.bf16.msra.mxu0 %v4458_v4  ;;  %1166 = vmatpush1.bf16.msra.mxu1 %v4461_v25 }
 0x486   :  { %1126 = vmatprep.subr.bf16.mxu0 %v4464_v63  ;;  %1167 = vmatprep.subr.bf16.mxu1 %v4467_v22 }
 0x489   :  { %1127 = vmatpush1.bf16.msra.mxu0 %v4470_v23  ;;  %1168 = vmatpush1.bf16.msra.mxu1 %v4473_v24 }
 0x48a   :  { %1128 = vmatprep.subr.bf16.mxu0 %v4476_v27  ;;  %1169 = vmatprep.subr.bf16.mxu1 %v4099_v51 }
 0x48d   :  { %1129 = vmatpush1.bf16.msra.mxu0 %v4103_v52  ;;  %1170 = vmatpush1.bf16.msra.mxu1 %v4109_v55 }
 0x48e   :  { %1130 = vmatprep.subr.bf16.mxu0 %v4106_v54  ;;  %1171 = vmatprep.subr.bf16.mxu1 %v4112_v56 }
 0x491   :  { %1131 = vmatpush1.bf16.msra.mxu0 %v4115_v57  ;;  %1172 = vmatpush1.bf16.msra.mxu1 %v4121_v58 }
 0x492   :  { %1234 = vmatprep.subr.bf16.mxu0 %v4394_v20  ;;  %1275 = vmatprep.subr.bf16.mxu1 %v4397_v21 }
 0x547   :  { %v1032_v28 = vpop.f32.mrb[32].mxu0  ;;  %v1073_v30 = vpop.f32.mrb[32].mxu1 }
 0x548   :  { %v1080_v51 = vadd.f32 %v1032_v28, %v5252_v31  ;;  %v1082_v52 = vadd.f32 %v1073_v30, %v5253_v32  ;;  %v1034_v33 = vpop.f32.mrb[33].mxu0  ;;  %v1075_v55 = vpop.f32.mrb[33].mxu1  ;;  %v4530_v28 = vld [vmem:[#allocation5 + $0xe4] ss:$16 sps:$4 sm:$0xff]   ;;  %v4533_v30 = vld [vmem:[#allocation5 + $0xec] ss:$16 sps:$4 sm:$0xff]  }
 0x549   :  { %v1081_v54 = vadd.f32 %v1034_v33, %v5254_v34  ;;  %v1083_v56 = vadd.f32 %v1075_v55, %v5255_v35  ;;  %v1036_v38 = vpop.f32.mrb[34].mxu0  ;;  %v1077_v57 = vpop.f32.mrb[34].mxu1  ;;  %v4536_v31 = vld [vmem:[#allocation5 + $0xe0] ss:$16 sps:$4 sm:$0xff]  }
 0x54a   :  { %v3173_v39 = vmul.f32 -1.442695, %v1080_v51  ;;  %v1037_v58 = vpop.f32.mrb[35].mxu0  ;;  %v1078_v41 = vpop.f32.mrb[35].mxu1  ;;  %v3175_v43 = vmul.f32 -1.442695, %v1082_v52 }
 0x54b   :  { %v3174_v42 = vmul.f32 -1.442695, %v1081_v54  ;;  %v4539_v51 = vld [vmem:[#allocation5 + $0xe8] ss:$16 sps:$4 sm:$0xff]   ;;  %v5256_v33 = vld [vmem:[#allocation20_spill] sm:$0xff]  ;;  %v5258_v38 = vld [vmem:[#allocation22_spill] sm:$0xff] }
 0x54c   :  { %3545 = vpow2.f32 %v3173_v39  ;;  %v5257_v34 = vld [vmem:[#allocation24_spill] sm:$0xff]  ;;  %v5259_v39 = vld [vmem:[#allocation25_spill] sm:$0xff] }
 0x54d   :  { %3547 = vpow2.f32 %v3174_v42 }
 0x54e   :  { %3549 = vtanh.f32 %v1083_v56 }
 0x54f   :  { %3551 = vpow2.f32 %v3175_v43 }
 0x556   :  { %v3546_v44 = vpop.eup %3545 }
 0x557   :  { %v1093_v45 = vadd.f32 1.0, %v3546_v44  ;;  %v3548_v46 = vpop.eup %3547 }
 0x558   :  { %v1094_v49 = vadd.f32 1.0, %v3548_v46  ;;  %v3550_v50 = vpop.eup %3549 }
 0x559   :  { %3553 = vrcp.f32 %v1093_v45  ;;  %v3552_v40 = vpop.eup %3551 }
 0x55a   :  { %3555 = vrcp.f32 %v1094_v49  ;;  %v1095_v0 = vadd.f32 1.0, %v3552_v40 }
 0x55c   :  { %3557 = vrcp.f32 %v1095_v0 }
 0x563   :  { %v3554_v11 = vpop.eup %3553 }
 0x564   :  { %v1104_v48 = vmul.f32 %v3554_v11, %v3550_v50  ;;  %v3556_v60 = vpop.eup %3555 }
 0x565   :  { %v1103_v1 = vmul.f32 %v3556_v60, %v4405_v8  ;;  %v4521_v8 = vld [vmem:[#allocation5 + $0xcc] ss:$16 sps:$4 sm:$0xff]  }
 0x566   :  { %v3558_v5 = vpop.eup %3557 }
 0x567   :  { %v4493_v2 = vadd.f32 %v1104_v48, %v1103_v1 }
 0x569   :  { %3559 = vtanh.f32 %v4493_v2 }
 0x573   :  { %v3560_v6 = vpop.eup %3559 }
 0x574   :  { %v1107_v62 = vmul.f32 %v3560_v6, %v3558_v5 }
 0x576   :  { %v1108_v9 = vpack.c.bf16 %v1107_v62, %v1107_v62 }
 0x578   :  { %1110 = vst [vmem:[#allocation3 + $0x10] sm:$0xf] %v1108_v9  ;;  %1149 = vmatmul.mubr.bf16.vlgmr.msra.gmra.mrb[36].mxu0 %v1108_v9  ;;  %1190 = vmatmul.mubr.bf16.vlgmr.msra.gmra.mrb[36].mxu1 %v1108_v9 }
 0x579   :  { %1235 = vmatpush1.bf16.msra.mxu0 %v4408_v29  ;;  %1276 = vmatpush1.bf16.msra.mxu1 %v4411_v15 }
 0x57a   :  { %1236 = vmatprep.subr.bf16.mxu0 %v4414_v19  ;;  %1277 = vmatprep.subr.bf16.mxu1 %v4417_v10 }
 0x57b   :  { %1266 = vmatprep.mubr.bf16.mxu0 %v5246_v47  ;;  %1307 = vmatprep.mubr.bf16.mxu1 %v5246_v47 }
 0x57d   :  { %1237 = vmatpush1.bf16.msra.mxu0 %v4422_v16  ;;  %1278 = vmatpush1.bf16.msra.mxu1 %v4425_v26 }
 0x57e   :  { %1238 = vmatprep.subr.bf16.mxu0 %v4428_v53  ;;  %1279 = vmatprep.subr.bf16.mxu1 %v4431_v36 }
 0x581   :  { %1239 = vmatpush1.bf16.msra.mxu0 %v4434_v13  ;;  %1280 = vmatpush1.bf16.msra.mxu1 %v4437_v3 }
 0x582   :  { %1240 = vmatprep.subr.bf16.mxu0 %v4440_v18  ;;  %1281 = vmatprep.subr.bf16.mxu1 %v4443_v37 }
 0x585   :  { %1241 = vmatpush1.bf16.msra.mxu0 %v4446_v7  ;;  %1282 = vmatpush1.bf16.msra.mxu1 %v4449_v61 }
 0x586   :  { %1242 = vmatprep.subr.bf16.mxu0 %v4452_v14  ;;  %1283 = vmatprep.subr.bf16.mxu1 %v4455_v59 }
 0x589   :  { %1243 = vmatpush1.bf16.msra.mxu0 %v4458_v4  ;;  %1284 = vmatpush1.bf16.msra.mxu1 %v4461_v25 }
 0x58a   :  { %1244 = vmatprep.subr.bf16.mxu0 %v4464_v63  ;;  %1285 = vmatprep.subr.bf16.mxu1 %v4467_v22 }
 0x58d   :  { %1245 = vmatpush1.bf16.msra.mxu0 %v4470_v23  ;;  %1286 = vmatpush1.bf16.msra.mxu1 %v4473_v24 }
 0x58e   :  { %1246 = vmatprep.subr.bf16.mxu0 %v4476_v27  ;;  %1287 = vmatprep.subr.bf16.mxu1 %v4521_v8 }
 0x591   :  { %1247 = vmatpush1.bf16.msra.mxu0 %v4524_v12  ;;  %1288 = vmatpush1.bf16.msra.mxu1 %v4527_v17 }
 0x592   :  { %1248 = vmatprep.subr.bf16.mxu0 %v4530_v28  ;;  %1289 = vmatprep.subr.bf16.mxu1 %v4533_v30 }
 0x595   :  { %1249 = vmatpush1.bf16.msra.mxu0 %v4536_v31  ;;  %1290 = vmatpush1.bf16.msra.mxu1 %v4539_v51 }
 0x596   :  { %1352 = vmatprep.subr.bf16.mxu0 %v4394_v20  ;;  %1393 = vmatprep.subr.bf16.mxu1 %v4397_v21 }
 0x64b   :  { %v1150_v32 = vpop.f32.mrb[36].mxu0  ;;  %v1191_v52 = vpop.f32.mrb[36].mxu1 }
 0x64c   :  { %v1198_v55 = vadd.f32 %v1150_v32, %v5256_v33  ;;  %v1200_v54 = vadd.f32 %v1191_v52, %v5257_v34  ;;  %v1152_v35 = vpop.f32.mrb[37].mxu0  ;;  %v1193_v56 = vpop.f32.mrb[37].mxu1 }
 0x64d   :  { %v1199_v57 = vadd.f32 %v1152_v35, %v5258_v38  ;;  %v1201_v58 = vadd.f32 %v1193_v56, %v5259_v39  ;;  %v1154_v41 = vpop.f32.mrb[38].mxu0  ;;  %v1195_v42 = vpop.f32.mrb[38].mxu1  ;;  %v3373_v38 = vld [vmem:[#allocation7] ss:$16 sps:$4 sm:$0xff]  }
 0x64e   :  { %v3176_v43 = vmul.f32 -1.442695, %v1198_v55  ;;  %v1155_v44 = vpop.f32.mrb[39].mxu0  ;;  %v1196_v45 = vpop.f32.mrb[39].mxu1  ;;  %v3178_v21 = vmul.f32 -1.442695, %v1200_v54 }
 0x64f   :  { %v3177_v20 = vmul.f32 -1.442695, %v1199_v57  ;;  %v3376_v57 = vld [vmem:[#allocation7 + $0x8] ss:$16 sps:$4 sm:$0xff]   ;;  %v3384_v41 = vld [vmem:[#allocation7 + $0x2c] ss:$16 sps:$4 sm:$0xff]  }
 0x650   :  { %3561 = vpow2.f32 %v3176_v43  ;;  %v3379_v42 = vld [vmem:[#allocation7 + $0x20] ss:$16 sps:$4 sm:$0xff]   ;;  %v3382_v43 = vld [vmem:[#allocation7 + $0x28] ss:$16 sps:$4 sm:$0xff]   ;;  %v3387_v44 = vld [vmem:[#allocation7 + $0x44] ss:$16 sps:$4 sm:$0xff]  }
 0x651   :  { %3563 = vpow2.f32 %v3177_v20  ;;  %v3390_v45 = vld [vmem:[#allocation7 + $0x4c] ss:$16 sps:$4 sm:$0xff]   ;;  %v3385_v20 = vld [vmem:[#allocation7 + $0x40] ss:$16 sps:$4 sm:$0xff]  }
 0x652   :  { %3565 = vtanh.f32 %v1201_v58  ;;  %v3381_v58 = vld [vmem:[#allocation7 + $0x24] ss:$16 sps:$4 sm:$0xff]  }
 0x653   :  { %3567 = vpow2.f32 %v3178_v21  ;;  %v3388_v21 = vld [vmem:[#allocation7 + $0x48] ss:$16 sps:$4 sm:$0xff]  }
 0x65a   :  { %v3562_v46 = vpop.eup %3561 }
 0x65b   :  { %v1211_v49 = vadd.f32 1.0, %v3562_v46  ;;  %v3564_v50 = vpop.eup %3563  ;;  %v3393_v46 = vld [vmem:[#allocation7 + $0x64] ss:$16 sps:$4 sm:$0xff]  }
 0x65c   :  { %v1212_v40 = vadd.f32 1.0, %v3564_v50  ;;  %v3566_v11 = vpop.eup %3565  ;;  %v3391_v50 = vld [vmem:[#allocation7 + $0x60] ss:$16 sps:$4 sm:$0xff]  }
 0x65d   :  { %3569 = vrcp.f32 %v1211_v49  ;;  %v3568_v48 = vpop.eup %3567  ;;  %v3396_v49 = vld [vmem:[#allocation7 + $0x6c] ss:$16 sps:$4 sm:$0xff]  }
 0x65e   :  { %3571 = vrcp.f32 %v1212_v40  ;;  %v1213_v5 = vadd.f32 1.0, %v3568_v48  ;;  %v3394_v40 = vld [vmem:[#allocation7 + $0x68] ss:$16 sps:$4 sm:$0xff]   ;;  %v3402_v48 = vld [vmem:[#allocation7 + $0x8c] ss:$16 sps:$4 sm:$0xff]  }
 0x660   :  { %3573 = vrcp.f32 %v1213_v5  ;;  %v3408_v5 = vld [vmem:[#allocation7 + $0xac] ss:$16 sps:$4 sm:$0xff]  }
 0x667   :  { %v3570_v60 = vpop.eup %3569 }
 0x668   :  { %v1222_v0 = vmul.f32 %v3570_v60, %v3566_v11  ;;  %v3572_v1 = vpop.eup %3571  ;;  %v3399_v11 = vld [vmem:[#allocation7 + $0x84] ss:$16 sps:$4 sm:$0xff]   ;;  %v3397_v60 = vld [vmem:[#allocation7 + $0x80] ss:$16 sps:$4 sm:$0xff]  }
 0x669   :  { %v1221_v6 = vmul.f32 %v3572_v1, %v4493_v2  ;;  %v3405_v1 = vld [vmem:[#allocation7 + $0xa4] ss:$16 sps:$4 sm:$0xff]  }
 0x66a   :  { %v3574_v9 = vpop.eup %3573 }
 0x66b   :  { %v4549_v62 = vadd.f32 %v1222_v0, %v1221_v6  ;;  %v3400_v0 = vld [vmem:[#allocation7 + $0x88] ss:$16 sps:$4 sm:$0xff]   ;;  %v3403_v6 = vld [vmem:[#allocation7 + $0xa0] ss:$16 sps:$4 sm:$0xff]  }
 0x66d   :  { %3575 = vtanh.f32 %v4549_v62 }
 0x677   :  { %v3576_v32 = vpop.eup %3575 }
 0x678   :  { %v1225_v52 = vmul.f32 %v3576_v32, %v3574_v9  ;;  %v3411_v9 = vld [vmem:[#allocation7 + $0xc4] ss:$16 sps:$4 sm:$0xff]   ;;  %v3414_v32 = vld [vmem:[#allocation7 + $0xcc] ss:$16 sps:$4 sm:$0xff]  }
 0x67a   :  { %v1226_v33 = vpack.c.bf16 %v1225_v52, %v1225_v52  ;;  %v3409_v52 = vld [vmem:[#allocation7 + $0xc0] ss:$16 sps:$4 sm:$0xff]  }
 0x67c   :  { %1228 = vst [vmem:[#allocation3 + $0x14] sm:$0xf] %v1226_v33  ;;  %1267 = vmatmul.mubr.bf16.vlgmr.msra.gmra.mrb[40].mxu0 %v1226_v33  ;;  %1308 = vmatmul.mubr.bf16.vlgmr.msra.gmra.mrb[40].mxu1 %v1226_v33  ;;  %v3412_v33 = vld [vmem:[#allocation7 + $0xc8] ss:$16 sps:$4 sm:$0xff]  }
 0x67d   :  { %1353 = vmatpush1.bf16.msra.mxu0 %v4408_v29  ;;  %1394 = vmatpush1.bf16.msra.mxu1 %v4411_v15  ;;  %v3375_v29 = vld [vmem:[#allocation7 + $0x4] ss:$16 sps:$4 sm:$0xff]   ;;  %v3378_v15 = vld [vmem:[#allocation7 + $0xc] ss:$16 sps:$4 sm:$0xff]  }
 0x67e   :  { %1354 = vmatprep.subr.bf16.mxu0 %v4414_v19  ;;  %1395 = vmatprep.subr.bf16.mxu1 %v4417_v10 }
 0x67f   :  { %1384 = vmatprep.mubr.bf16.mxu0 %v5246_v47  ;;  %1425 = vmatprep.mubr.bf16.mxu1 %v5246_v47 }
 0x681   :  { %1355 = vmatpush1.bf16.msra.mxu0 %v4422_v16  ;;  %1396 = vmatpush1.bf16.msra.mxu1 %v4425_v26  ;;  %v5260_v16 = vld [vmem:[#allocation26_spill] sm:$0xff] }
 0x682   :  { %1356 = vmatprep.subr.bf16.mxu0 %v4428_v53  ;;  %1397 = vmatprep.subr.bf16.mxu1 %v4431_v36  ;;  %v5261_v53 = vld [vmem:[#allocation29_spill] sm:$0xff] }
 0x685   :  { %1357 = vmatpush1.bf16.msra.mxu0 %v4434_v13  ;;  %1398 = vmatpush1.bf16.msra.mxu1 %v4437_v3 }
 0x686   :  { %1358 = vmatprep.subr.bf16.mxu0 %v4440_v18  ;;  %1399 = vmatprep.subr.bf16.mxu1 %v4443_v37  ;;  %v5262_v18 = vld [vmem:[#allocation27_spill] sm:$0xff] }
 0x689   :  { %1359 = vmatpush1.bf16.msra.mxu0 %v4446_v7  ;;  %1400 = vmatpush1.bf16.msra.mxu1 %v4449_v61  ;;  %v5263_v7 = vld [vmem:[#allocation31_spill] sm:$0xff] }
 0x68a   :  { %1360 = vmatprep.subr.bf16.mxu0 %v4452_v14  ;;  %1401 = vmatprep.subr.bf16.mxu1 %v4455_v59 }
 0x68d   :  { %1361 = vmatpush1.bf16.msra.mxu0 %v4458_v4  ;;  %1402 = vmatpush1.bf16.msra.mxu1 %v4461_v25 }
 0x68e   :  { %1362 = vmatprep.subr.bf16.mxu0 %v4464_v63  ;;  %1403 = vmatprep.subr.bf16.mxu1 %v4467_v22 }
 0x691   :  { %1363 = vmatpush1.bf16.msra.mxu0 %v4470_v23  ;;  %1404 = vmatpush1.bf16.msra.mxu1 %v4473_v24 }
 0x692   :  { %1364 = vmatprep.subr.bf16.mxu0 %v4476_v27  ;;  %1405 = vmatprep.subr.bf16.mxu1 %v4521_v8 }
 0x695   :  { %1365 = vmatpush1.bf16.msra.mxu0 %v4524_v12  ;;  %1406 = vmatpush1.bf16.msra.mxu1 %v4527_v17 }
 0x696   :  { %1366 = vmatprep.subr.bf16.mxu0 %v4530_v28  ;;  %1407 = vmatprep.subr.bf16.mxu1 %v4533_v30 }
 0x699   :  { %1367 = vmatpush1.bf16.msra.mxu0 %v4536_v31  ;;  %1408 = vmatpush1.bf16.msra.mxu1 %v4539_v51 }
 0x69a   :  { %1711 = vmatprep.subr.bf16.mxu0 %v3375_v29  ;;  %1784 = vmatprep.subr.bf16.mxu1 %v3378_v15  ;;  %v3417_v29 = vld [vmem:[#allocation7 + $0xe4] ss:$16 sps:$4 sm:$0xff]   ;;  %v3420_v15 = vld [vmem:[#allocation7 + $0xec] ss:$16 sps:$4 sm:$0xff]  }
 0x74f   :  { %v1268_v19 = vpop.f32.mrb[40].mxu0  ;;  %v1309_v10 = vpop.f32.mrb[40].mxu1 }
 0x750   :  { %v1316_v26 = vadd.f32 %v1268_v19, %v5260_v16  ;;  %v1318_v36 = vadd.f32 %v1309_v10, %v5261_v53  ;;  %v1270_v13 = vpop.f32.mrb[41].mxu0  ;;  %v1311_v3 = vpop.f32.mrb[41].mxu1  ;;  %v3415_v19 = vld [vmem:[#allocation7 + $0xe0] ss:$16 sps:$4 sm:$0xff]   ;;  %v3418_v10 = vld [vmem:[#allocation7 + $0xe8] ss:$16 sps:$4 sm:$0xff]  }
 0x751   :  { %v1317_v37 = vadd.f32 %v1270_v13, %v5262_v18  ;;  %v1319_v61 = vadd.f32 %v1311_v3, %v5263_v7  ;;  %v1272_v14 = vpop.f32.mrb[42].mxu0  ;;  %v1313_v59 = vpop.f32.mrb[42].mxu1  ;;  %v3421_v16 = vld [vmem:[#allocation3] sm:$0xff]   ;;  %v3423_v53 = vld [vmem:[#allocation3 + $0x10] sm:$0xff]   ;;  %v4602_v13 = vld [vmem:[#allocation9 + $0xc] ss:$16 sps:$4 sm:$0xff]  }
 0x752   :  { %v3179_v4 = vmul.f32 -1.442695, %v1316_v26  ;;  %v1273_v25 = vpop.f32.mrb[43].mxu0  ;;  %v1314_v63 = vpop.f32.mrb[43].mxu1  ;;  %v3181_v23 = vmul.f32 -1.442695, %v1318_v36 }
 0x753   :  { %v3180_v22 = vmul.f32 -1.442695, %v1317_v37  ;;  %v3422_v26 = vld [vmem:[#allocation3 + $0x8] sm:$0xff]   ;;  %v4600_v36 = vld [vmem:[#allocation9 + $0x4] ss:$16 sps:$4 sm:$0xff]  }
 0x754   :  { %3577 = vpow2.f32 %v3179_v4  ;;  %v4604_v3 = vld [vmem:[#allocation9] ss:$16 sps:$4 sm:$0xff]   ;;  %v4606_v18 = vld [vmem:[#allocation9 + $0x8] ss:$16 sps:$4 sm:$0xff]   ;;  %v4612_v37 = vld [vmem:[#allocation9 + $0x24] ss:$16 sps:$4 sm:$0xff]  }
 0x755   :  { %3579 = vpow2.f32 %v3180_v22  ;;  %v4614_v7 = vld [vmem:[#allocation9 + $0x2c] ss:$16 sps:$4 sm:$0xff]   ;;  %v4618_v14 = vld [vmem:[#allocation9 + $0x28] ss:$16 sps:$4 sm:$0xff]   ;;  %v4624_v59 = vld [vmem:[#allocation9 + $0x44] ss:$16 sps:$4 sm:$0xff]  }
 0x756   :  { %3581 = vtanh.f32 %v1319_v61  ;;  %v4616_v61 = vld [vmem:[#allocation9 + $0x20] ss:$16 sps:$4 sm:$0xff]   ;;  %v4626_v4 = vld [vmem:[#allocation9 + $0x4c] ss:$16 sps:$4 sm:$0xff]   ;;  %v4630_v63 = vld [vmem:[#allocation9 + $0x48] ss:$16 sps:$4 sm:$0xff]  }
 0x757   :  { %3583 = vpow2.f32 %v3181_v23  ;;  %v4628_v25 = vld [vmem:[#allocation9 + $0x40] ss:$16 sps:$4 sm:$0xff]   ;;  %v4636_v22 = vld [vmem:[#allocation9 + $0x64] ss:$16 sps:$4 sm:$0xff]   ;;  %v4638_v23 = vld [vmem:[#allocation9 + $0x6c] ss:$16 sps:$4 sm:$0xff]  }
 0x75e   :  { %v3578_v24 = vpop.eup %3577 }
 0x75f   :  { %v1329_v27 = vadd.f32 1.0, %v3578_v24  ;;  %v3580_v2 = vpop.eup %3579  ;;  %v4640_v24 = vld [vmem:[#allocation9 + $0x60] ss:$16 sps:$4 sm:$0xff]  }
 0x760   :  { %v1330_v8 = vadd.f32 1.0, %v3580_v2  ;;  %v3582_v12 = vpop.eup %3581  ;;  %v4648_v2 = vld [vmem:[#allocation9 + $0x84] ss:$16 sps:$4 sm:$0xff]  }
 0x761   :  { %3585 = vrcp.f32 %v1329_v27  ;;  %v3584_v17 = vpop.eup %3583  ;;  %v4642_v27 = vld [vmem:[#allocation9 + $0x68] ss:$16 sps:$4 sm:$0xff]  }
 0x762   :  { %3587 = vrcp.f32 %v1330_v8  ;;  %v1331_v51 = vadd.f32 1.0, %v3584_v17  ;;  %v4650_v8 = vld [vmem:[#allocation9 + $0x8c] ss:$16 sps:$4 sm:$0xff]   ;;  %v4654_v17 = vld [vmem:[#allocation9 + $0x88] ss:$16 sps:$4 sm:$0xff]  }
 0x764   :  { %3589 = vrcp.f32 %v1331_v51  ;;  %v4666_v51 = vld [vmem:[#allocation9 + $0xa8] ss:$16 sps:$4 sm:$0xff]  }
 0x76b   :  { %v3586_v28 = vpop.eup %3585 }
 0x76c   :  { %v1340_v30 = vmul.f32 %v3586_v28, %v3582_v12  ;;  %v3588_v31 = vpop.eup %3587  ;;  %v4652_v12 = vld [vmem:[#allocation9 + $0x80] ss:$16 sps:$4 sm:$0xff]   ;;  %v4660_v28 = vld [vmem:[#allocation9 + $0xa4] ss:$16 sps:$4 sm:$0xff]  }
 0x76d   :  { %v1339_v55 = vmul.f32 %v3588_v31, %v4549_v62  ;;  %v3406_v62 = vld [vmem:[#allocation7 + $0xa8] ss:$16 sps:$4 sm:$0xff]   ;;  %v4664_v31 = vld [vmem:[#allocation9 + $0xa0] ss:$16 sps:$4 sm:$0xff]  }
 0x76e   :  { %v3590_v54 = vpop.eup %3589 }
 0x76f   :  { %v4589_v34 = vadd.f32 %v1340_v30, %v1339_v55  ;;  %v4662_v30 = vld [vmem:[#allocation9 + $0xac] ss:$16 sps:$4 sm:$0xff]   ;;  %v4672_v55 = vld [vmem:[#allocation9 + $0xc4] ss:$16 sps:$4 sm:$0xff]  }
 0x771   :  { %3591 = vtanh.f32 %v4589_v34 }
 0x77b   :  { %v3592_v35 = vpop.eup %3591 }
 0x77c   :  { %v1343_v56 = vmul.f32 %v3592_v35, %v3590_v54  ;;  %v4674_v54 = vld [vmem:[#allocation9 + $0xcc] ss:$16 sps:$4 sm:$0xff]   ;;  %v4676_v35 = vld [vmem:[#allocation9 + $0xc0] ss:$16 sps:$4 sm:$0xff]  }
 0x77e   :  { %v1344_v39 = vpack.c.bf16 %v1343_v56, %v1343_v56  ;;  %v4678_v56 = vld [vmem:[#allocation9 + $0xc8] ss:$16 sps:$4 sm:$0xff]  }
 0x780   :  { %1346 = vst [vmem:[#allocation3 + $0x18] sm:$0xf] %v1344_v39  ;;  %1385 = vmatmul.mubr.bf16.vlgmr.msra.gmra.mrb[44].mxu0 %v1344_v39  ;;  %1426 = vmatmul.mubr.bf16.vlgmr.msra.gmra.mrb[44].mxu1 %v1344_v39  ;;  %v4688_v39 = vld [vmem:[#allocation9 + $0xe0] ss:$16 sps:$4 sm:$0xff]  }
 0x781   :  { %1712 = vmatpush1.bf16.msra.mxu0 %v3373_v38  ;;  %1785 = vmatpush1.bf16.msra.mxu1 %v3376_v57  ;;  %v4682_v38 = vld [vmem:[#allocation9 + $0xe4] ss:$16 sps:$4 sm:$0xff]   ;;  %v4684_v57 = vld [vmem:[#allocation9 + $0xec] ss:$16 sps:$4 sm:$0xff]  }
 0x782   :  { %1713 = vmatprep.subr.bf16.mxu0 %v3381_v58  ;;  %1786 = vmatprep.subr.bf16.mxu1 %v3384_v41  ;;  %v4690_v58 = vld [vmem:[#allocation9 + $0xe8] ss:$16 sps:$4 sm:$0xff]  }
 0x783   :  { %1743 = vmatprep.mubr.bf16.mxu0 %v5246_v47  ;;  %1816 = vmatprep.mubr.bf16.mxu1 %v5246_v47 }
 0x785   :  { %1714 = vmatpush1.bf16.msra.mxu0 %v3379_v42  ;;  %1787 = vmatpush1.bf16.msra.mxu1 %v3382_v43  ;;  %v5264_v43 = vld [vmem:[#allocation28_spill] sm:$0xff] }
 0x786   :  { %1715 = vmatprep.subr.bf16.mxu0 %v3387_v44  ;;  %1788 = vmatprep.subr.bf16.mxu1 %v3390_v45  ;;  %v5265_v45 = vld [vmem:[#allocation32_spill] sm:$0xff] }
 0x789   :  { %1716 = vmatpush1.bf16.msra.mxu0 %v3385_v20  ;;  %1789 = vmatpush1.bf16.msra.mxu1 %v3388_v21 }
 0x78a   :  { %1717 = vmatprep.subr.bf16.mxu0 %v3393_v46  ;;  %1790 = vmatprep.subr.bf16.mxu1 %v3396_v49  ;;  %v5266_v49 = vld [vmem:[#allocation30_spill] sm:$0xff] }
 0x78d   :  { %1718 = vmatpush1.bf16.msra.mxu0 %v3391_v50  ;;  %1791 = vmatpush1.bf16.msra.mxu1 %v3394_v40  ;;  %v5267_v40 = vld [vmem:[#allocation33_spill] sm:$0xff] }
 0x78e   :  { %1719 = vmatprep.subr.bf16.mxu0 %v3399_v11  ;;  %1792 = vmatprep.subr.bf16.mxu1 %v3402_v48 }
 0x791   :  { %1720 = vmatpush1.bf16.msra.mxu0 %v3397_v60  ;;  %1793 = vmatpush1.bf16.msra.mxu1 %v3400_v0 }
 0x792   :  { %1721 = vmatprep.subr.bf16.mxu0 %v3405_v1  ;;  %1794 = vmatprep.subr.bf16.mxu1 %v3408_v5 }
 0x795   :  { %1722 = vmatpush1.bf16.msra.mxu0 %v3403_v6  ;;  %1795 = vmatpush1.bf16.msra.mxu1 %v3406_v62 }
 0x796   :  { %1723 = vmatprep.subr.bf16.mxu0 %v3411_v9  ;;  %1796 = vmatprep.subr.bf16.mxu1 %v3414_v32 }
 0x799   :  { %1724 = vmatpush1.bf16.msra.mxu0 %v3409_v52  ;;  %1797 = vmatpush1.bf16.msra.mxu1 %v3412_v33 }
 0x79a   :  { %1725 = vmatprep.subr.bf16.mxu0 %v3417_v29  ;;  %1798 = vmatprep.subr.bf16.mxu1 %v3420_v15 }
 0x79d   :  { %1726 = vmatpush1.bf16.msra.mxu0 %v3415_v19  ;;  %1799 = vmatpush1.bf16.msra.mxu1 %v3418_v10 }
 0x79e   :  { %2085 = vmatprep.subr.bf16.mxu0 %v4600_v36  ;;  %2126 = vmatprep.subr.bf16.mxu1 %v4602_v13 }
 0x7a0   :  { %1744 = vmatmul.mubr.bf16.vlgmr.msra.gmra.mrb[48].mxu0 %v3421_v16  ;;  %1817 = vmatmul.mubr.bf16.vlgmr.msra.gmra.mrb[48].mxu1 %v3421_v16 }
 0x7a1   :  { %1753 = vmatprep.mubr.bf16.mxu0 %v5246_v47  ;;  %1826 = vmatprep.mubr.bf16.mxu1 %v5246_v47 }
 0x7a2   :  { %2086 = vmatpush1.bf16.msra.mxu0 %v4604_v3  ;;  %2127 = vmatpush1.bf16.msra.mxu1 %v4606_v18 }
 0x7a3   :  { %2087 = vmatprep.subr.bf16.mxu0 %v4612_v37  ;;  %2128 = vmatprep.subr.bf16.mxu1 %v4614_v7 }
 0x7a6   :  { %2088 = vmatpush1.bf16.msra.mxu0 %v4616_v61  ;;  %2129 = vmatpush1.bf16.msra.mxu1 %v4618_v14 }
 0x7a7   :  { %2089 = vmatprep.subr.bf16.mxu0 %v4624_v59  ;;  %2130 = vmatprep.subr.bf16.mxu1 %v4626_v4 }
 0x7a8   :  { %1754 = vmatmul.mubr.bf16.gmra.mrb[52].mxu0 %v3422_v26  ;;  %1827 = vmatmul.mubr.bf16.gmra.mrb[52].mxu1 %v3422_v26 }
 0x7a9   :  { %1763 = vmatprep.mubr.bf16.mxu0 %v5246_v47  ;;  %1836 = vmatprep.mubr.bf16.mxu1 %v5246_v47 }
 0x7aa   :  { %2090 = vmatpush1.bf16.msra.mxu0 %v4628_v25  ;;  %2131 = vmatpush1.bf16.msra.mxu1 %v4630_v63 }
 0x7ab   :  { %2091 = vmatprep.subr.bf16.mxu0 %v4636_v22  ;;  %2132 = vmatprep.subr.bf16.mxu1 %v4638_v23 }
 0x7ae   :  { %2092 = vmatpush1.bf16.msra.mxu0 %v4640_v24  ;;  %2133 = vmatpush1.bf16.msra.mxu1 %v4642_v27 }
 0x7af   :  { %2093 = vmatprep.subr.bf16.mxu0 %v4648_v2  ;;  %2134 = vmatprep.subr.bf16.mxu1 %v4650_v8 }
 0x7b0   :  { %1764 = vmatmul.mubr.bf16.gmra.mrb[56].mxu0 %v3423_v53  ;;  %1837 = vmatmul.mubr.bf16.gmra.mrb[56].mxu1 %v3423_v53 }
 0x7b1   :  { %1773 = vmatprep.mubr.bf16.mxu0 %v5246_v47  ;;  %1846 = vmatprep.mubr.bf16.mxu1 %v5246_v47 }
 0x7b2   :  { %2094 = vmatpush1.bf16.msra.mxu0 %v4652_v12  ;;  %2135 = vmatpush1.bf16.msra.mxu1 %v4654_v17 }
 0x7b3   :  { %2095 = vmatprep.subr.bf16.mxu0 %v4660_v28  ;;  %2136 = vmatprep.subr.bf16.mxu1 %v4662_v30 }
 0x7b6   :  { %2096 = vmatpush1.bf16.msra.mxu0 %v4664_v31  ;;  %2137 = vmatpush1.bf16.msra.mxu1 %v4666_v51 }
 0x7b7   :  { %2097 = vmatprep.subr.bf16.mxu0 %v4672_v55  ;;  %2138 = vmatprep.subr.bf16.mxu1 %v4674_v54 }
 0x7ba   :  { %2098 = vmatpush1.bf16.msra.mxu0 %v4676_v35  ;;  %2139 = vmatpush1.bf16.msra.mxu1 %v4678_v56 }
 0x7bb   :  { %2099 = vmatprep.subr.bf16.mxu0 %v4682_v38  ;;  %2140 = vmatprep.subr.bf16.mxu1 %v4684_v57 }
 0x7be   :  { %2100 = vmatpush1.bf16.msra.mxu0 %v4688_v39  ;;  %2141 = vmatpush1.bf16.msra.mxu1 %v4690_v58 }
 0x7bf   :  { %2200 = vmatprep.subr.bf16.mxu0 %v4600_v36  ;;  %2241 = vmatprep.subr.bf16.mxu1 %v4602_v13 }
 0x853   :  { %v1386_v41 = vpop.f32.mrb[44].mxu0  ;;  %v1427_v42 = vpop.f32.mrb[44].mxu1 }
 0x854   :  { %v1434_v44 = vadd.f32 %v1386_v41, %v5264_v43  ;;  %v1436_v20 = vadd.f32 %v1427_v42, %v5265_v45  ;;  %v1388_v21 = vpop.f32.mrb[45].mxu0  ;;  %v1429_v46 = vpop.f32.mrb[45].mxu1 }
 0x855   :  { %v1435_v50 = vadd.f32 %v1388_v21, %v5266_v49  ;;  %v1437_v11 = vadd.f32 %v1429_v46, %v5267_v40  ;;  %v1390_v48 = vpop.f32.mrb[46].mxu0  ;;  %v1431_v60 = vpop.f32.mrb[46].mxu1 }
 0x856   :  { %v3182_v0 = vmul.f32 -1.442695, %v1434_v44  ;;  %v1391_v1 = vpop.f32.mrb[47].mxu0  ;;  %v1432_v5 = vpop.f32.mrb[47].mxu1  ;;  %v3184_v62 = vmul.f32 -1.442695, %v1436_v20 }
 0x857   :  { %v3183_v6 = vmul.f32 -1.442695, %v1435_v50 }
 0x858   :  { %3593 = vpow2.f32 %v3182_v0 }
 0x859   :  { %3595 = vpow2.f32 %v3183_v6 }
 0x85a   :  { %3597 = vtanh.f32 %v1437_v11 }
 0x85b   :  { %3599 = vpow2.f32 %v3184_v62 }
 0x862   :  { %v3594_v9 = vpop.eup %3593 }
 0x863   :  { %v1447_v32 = vadd.f32 1.0, %v3594_v9  ;;  %v3596_v52 = vpop.eup %3595 }
 0x864   :  { %v1448_v33 = vadd.f32 1.0, %v3596_v52  ;;  %v3598_v29 = vpop.eup %3597 }
 0x865   :  { %3601 = vrcp.f32 %v1447_v32  ;;  %v3600_v15 = vpop.eup %3599 }
 0x866   :  { %3603 = vrcp.f32 %v1448_v33  ;;  %v1449_v26 = vadd.f32 1.0, %v3600_v15 }
 0x868   :  { %3605 = vrcp.f32 %v1449_v26 }
 0x86f   :  { %v3602_v19 = vpop.eup %3601 }
 0x870   :  { %v1458_v10 = vmul.f32 %v3602_v19, %v3598_v29  ;;  %v3604_v16 = vpop.eup %3603 }
 0x871   :  { %v1457_v53 = vmul.f32 %v3604_v16, %v4589_v34 }
 0x872   :  { %v3606_v5 = vpop.eup %3605 }
 0x873   :  { %v4703_v41 = vpop.f32.mrb[48].mxu0  ;;  %v4705_v42 = vpop.f32.mrb[48].mxu1  ;;  %v1459_v43 = vadd.f32 %v1458_v10, %v1457_v53  ;;  %v1497_v53 = vld [vmem:[%s5212_s6] sm:$0xf] }
 0x874   :  { %v4707_v44 = vpop.f32.mrb[49].mxu0  ;;  %v4709_v45 = vpop.f32.mrb[49].mxu1 }
 0x875   :  { %v4711_v20 = vpop.f32.mrb[50].mxu0  ;;  %v4713_v21 = vpop.f32.mrb[50].mxu1  ;;  %3607 = vtanh.f32 %v1459_v43 }
 0x876   :  { %v4715_v46 = vpop.f32.mrb[51].mxu0  ;;  %v4717_v49 = vpop.f32.mrb[51].mxu1 }
 0x87b   :  { %v4719_v34 = vpop.f32.mrb[52].mxu0  ;;  %v4721_v50 = vpop.f32.mrb[52].mxu1 }
 0x87c   :  { %5268 = vst [vmem:[#allocation15_spill] sm:$0xff] %v4721_v50  ;;  %v4723_v40 = vpop.f32.mrb[53].mxu0  ;;  %v4725_v11 = vpop.f32.mrb[53].mxu1 }
 0x87d   :  { %5269 = vst [vmem:[#allocation13_spill] sm:$0xff] %v4723_v40  ;;  %5270 = vst [vmem:[#allocation16_spill] sm:$0xff] %v4725_v11  ;;  %v4727_v48 = vpop.f32.mrb[54].mxu0  ;;  %v4729_v60 = vpop.f32.mrb[54].mxu1 }
 0x87e   :  { %5271 = vst [vmem:[#allocation14_spill] sm:$0xff] %v4727_v48  ;;  %5272 = vst [vmem:[#allocation17_spill] sm:$0xff] %v4729_v60  ;;  %v4731_v0 = vpop.f32.mrb[55].mxu0  ;;  %v4733_v1 = vpop.f32.mrb[55].mxu1 }
 0x87f   :  { %5273 = vst [vmem:[#allocation18_spill] sm:$0xff] %v4731_v0  ;;  %5274 = vst [vmem:[#allocation21_spill] sm:$0xff] %v4733_v1  ;;  %v3608_v6 = vpop.eup %3607 }
 0x880   :  { %v1461_v62 = vmul.f32 %v3608_v6, %v3606_v5 }
 0x882   :  { %v1462_v9 = vpack.c.bf16 %v1461_v62, %v1461_v62 }
 0x883   :  { %v4735_v32 = vpop.f32.mrb[56].mxu0  ;;  %v4737_v52 = vpop.f32.mrb[56].mxu1 }
 0x884   :  { %5275 = vst [vmem:[#allocation19_spill] sm:$0xff] %v4735_v32  ;;  %5276 = vst [vmem:[#allocation23_spill] sm:$0xff] %v4737_v52  ;;  %v4739_v33 = vpop.f32.mrb[57].mxu0  ;;  %v4741_v29 = vpop.f32.mrb[57].mxu1 }
 0x885   :  { %5277 = vst [vmem:[#allocation20_spill] sm:$0xff] %v4739_v33  ;;  %5278 = vst [vmem:[#allocation24_spill] sm:$0xff] %v4741_v29  ;;  %v4743_v15 = vpop.f32.mrb[58].mxu0  ;;  %v4745_v19 = vpop.f32.mrb[58].mxu1 }
 0x886   :  { %1464 = vst [vmem:[#allocation3 + $0x1c] sm:$0xf] %v1462_v9  ;;  %5279 = vst [vmem:[#allocation22_spill] sm:$0xff] %v4743_v15  ;;  %v4747_v10 = vpop.f32.mrb[59].mxu0  ;;  %v4749_v16 = vpop.f32.mrb[59].mxu1 }
 0x887   :  { %5280 = vst [vmem:[#allocation25_spill] sm:$0xff] %v4745_v19  ;;  %5281 = vst [vmem:[#allocation26_spill] sm:$0xff] %v4747_v10 }
 0x888   :  { %5282 = vst [vmem:[#allocation29_spill] sm:$0xff] %v4749_v16  ;;  %v5289_v16 = vld [vmem:[#allocation12_spill] sm:$0xff] }
 0x889   :  { %v5290_v10 = vsub.s32 0, %v5289_v16  ;;  %v5291_v15 = vsub.s32 2, %v5289_v16 }
 0x88b   :  { %v4806_v19 = vrot.slane %v1497_v53, %v5290_v10  ;;  %v4810_v29 = vrot.slane %v1497_v53, %v5291_v15 }
 0x88d   :  { %v3460_v26 = vld [vmem:[#allocation3 + $0x18] sm:$0xff]   ;;  %v1746_v10 = vadd.f32 %v4703_v41, %v4806_v19 }
 0x88e   :  { %1774 = vmatmul.mubr.bf16.gmra.mrb[60].mxu0 %v3460_v26  ;;  %1847 = vmatmul.mubr.bf16.gmra.mrb[60].mxu1 %v3460_v26 }
 0x88f   :  { %2117 = vmatprep.mubr.bf16.mxu0 %v5246_v47  ;;  %2158 = vmatprep.mubr.bf16.mxu1 %v5246_v47 }
 0x896   :  { %2118 = vmatmul.mubr.bf16.vlgmr.msra.gmra.mrb[64].mxu0 %v5246_v47  ;;  %2159 = vmatmul.mubr.bf16.vlgmr.msra.gmra.mrb[64].mxu1 %v5246_v47 }
 0x897   :  { %2201 = vmatpush1.bf16.msra.mxu0 %v4604_v3  ;;  %2242 = vmatpush1.bf16.msra.mxu1 %v4606_v18 }
 0x898   :  { %2202 = vmatprep.subr.bf16.mxu0 %v4612_v37  ;;  %2243 = vmatprep.subr.bf16.mxu1 %v4614_v7 }
 0x899   :  { %2232 = vmatprep.mubr.bf16.mxu0 %v5246_v47  ;;  %2273 = vmatprep.mubr.bf16.mxu1 %v5246_v47 }
 0x89b   :  { %2203 = vmatpush1.bf16.msra.mxu0 %v4616_v61  ;;  %2244 = vmatpush1.bf16.msra.mxu1 %v4618_v14 }
 0x89c   :  { %2204 = vmatprep.subr.bf16.mxu0 %v4624_v59  ;;  %2245 = vmatprep.subr.bf16.mxu1 %v4626_v4 }
 0x89f   :  { %2205 = vmatpush1.bf16.msra.mxu0 %v4628_v25  ;;  %2246 = vmatpush1.bf16.msra.mxu1 %v4630_v63 }
 0x8a0   :  { %2206 = vmatprep.subr.bf16.mxu0 %v4636_v22  ;;  %2247 = vmatprep.subr.bf16.mxu1 %v4638_v23 }
 0x8a3   :  { %2207 = vmatpush1.bf16.msra.mxu0 %v4640_v24  ;;  %2248 = vmatpush1.bf16.msra.mxu1 %v4642_v27 }
 0x8a4   :  { %2208 = vmatprep.subr.bf16.mxu0 %v4648_v2  ;;  %2249 = vmatprep.subr.bf16.mxu1 %v4650_v8 }
 0x8a7   :  { %2209 = vmatpush1.bf16.msra.mxu0 %v4652_v12  ;;  %2250 = vmatpush1.bf16.msra.mxu1 %v4654_v17 }
 0x8a8   :  { %2210 = vmatprep.subr.bf16.mxu0 %v4660_v28  ;;  %2251 = vmatprep.subr.bf16.mxu1 %v4662_v30 }
 0x8ab   :  { %2211 = vmatpush1.bf16.msra.mxu0 %v4664_v31  ;;  %2252 = vmatpush1.bf16.msra.mxu1 %v4666_v51 }
 0x8ac   :  { %2212 = vmatprep.subr.bf16.mxu0 %v4672_v55  ;;  %2253 = vmatprep.subr.bf16.mxu1 %v4674_v54 }
 0x8af   :  { %2213 = vmatpush1.bf16.msra.mxu0 %v4676_v35  ;;  %2254 = vmatpush1.bf16.msra.mxu1 %v4678_v56 }
 0x8b0   :  { %2214 = vmatprep.subr.bf16.mxu0 %v4682_v38  ;;  %2255 = vmatprep.subr.bf16.mxu1 %v4684_v57 }
 0x8b3   :  { %2215 = vmatpush1.bf16.msra.mxu0 %v4688_v39  ;;  %2256 = vmatpush1.bf16.msra.mxu1 %v4690_v58 }
 0x8b4   :  { %2315 = vmatprep.subr.bf16.mxu0 %v4600_v36  ;;  %2356 = vmatprep.subr.bf16.mxu1 %v4602_v13 }
 0x961   :  { %v4792_v43 = vpop.f32.mrb[60].mxu0  ;;  %v4794_v5 = vpop.f32.mrb[60].mxu1 }
 0x962   :  { %5283 = vst [vmem:[#allocation27_spill] sm:$0xff] %v4792_v43  ;;  %5284 = vst [vmem:[#allocation31_spill] sm:$0xff] %v4794_v5  ;;  %v4796_v6 = vpop.f32.mrb[61].mxu0  ;;  %v4798_v62 = vpop.f32.mrb[61].mxu1 }
 0x963   :  { %5285 = vst [vmem:[#allocation28_spill] sm:$0xff] %v4796_v6  ;;  %5286 = vst [vmem:[#allocation32_spill] sm:$0xff] %v4798_v62  ;;  %v4800_v9 = vpop.f32.mrb[62].mxu0  ;;  %v4802_v26 = vpop.f32.mrb[62].mxu1  ;;  %v5294_v6 = vsub.s32 1, %v5289_v16 }
 0x964   :  { %5287 = vst [vmem:[#allocation30_spill] sm:$0xff] %v4800_v9  ;;  %5288 = vst [vmem:[#allocation33_spill] sm:$0xff] %v4802_v26  ;;  %v4812_v33 = vpop.f32.mrb[63].mxu0  ;;  %v4814_v43 = vpop.f32.mrb[63].mxu1  ;;  %v5295_v9 = vsub.s32 3, %v5289_v16  ;;  %v1819_v26 = vadd.f32 %v4705_v42, %v4810_v29 }
 0x965   :  { %5292 = vst [vmem:[#allocation12_spill] sm:$0xff] %v4812_v33  ;;  %5293 = vst [vmem:[#allocation34_spill] sm:$0xff] %v4814_v43  ;;  %v4818_v5 = vrot.slane %v1497_v53, %v5294_v6 }
 0x966   :  { %v4822_v62 = vrot.slane %v1497_v53, %v5295_v9 }
 0x967   :  { %v1748_v15 = vadd.f32 %v4707_v44, %v4818_v5 }
 0x968   :  { %v1821_v43 = vadd.f32 %v4709_v45, %v4822_v62 }
 0x969   :  { %v2119_v33 = vpop.f32.mrb[64].mxu0  ;;  %v2160_v52 = vpop.f32.mrb[64].mxu1 }
 0x96a   :  { %v2167_v6 = vadd.f32 %v2119_v33, %v1746_v10  ;;  %v2169_v32 = vadd.f32 %v2160_v52, %v1819_v26  ;;  %v2121_v1 = vpop.f32.mrb[65].mxu0  ;;  %v2162_v16 = vpop.f32.mrb[65].mxu1 }
 0x96b   :  { %v2168_v53 = vadd.f32 %v2121_v1, %v1748_v15  ;;  %v2170_v9 = vadd.f32 %v2162_v16, %v1821_v43  ;;  %v2123_v0 = vpop.f32.mrb[66].mxu0  ;;  %v2164_v60 = vpop.f32.mrb[66].mxu1  ;;  %v1752_v16 = vadd.f32 %v4715_v46, %v4818_v5 }
 0x96c   :  { %v3253_v41 = vmul.f32 -1.442695, %v2167_v6  ;;  %v2124_v48 = vpop.f32.mrb[67].mxu0  ;;  %v2165_v11 = vpop.f32.mrb[67].mxu1  ;;  %v3255_v44 = vmul.f32 -1.442695, %v2169_v32  ;;  %v1823_v6 = vadd.f32 %v4713_v21, %v4810_v29 }
 0x96d   :  { %v3254_v42 = vmul.f32 -1.442695, %v2168_v53  ;;  %v1825_v53 = vadd.f32 %v4717_v49, %v4822_v62 }
 0x96e   :  { %3609 = vpow2.f32 %v3253_v41 }
 0x96f   :  { %3611 = vpow2.f32 %v3254_v42 }
 0x970   :  { %3613 = vtanh.f32 %v2170_v9 }
 0x971   :  { %3615 = vpow2.f32 %v3255_v44 }
 0x978   :  { %v3610_v40 = vpop.eup %3609 }
 0x979   :  { %v2180_v50 = vadd.f32 1.0, %v3610_v40  ;;  %v3612_v45 = vpop.eup %3611 }
 0x97a   :  { %v2181_v52 = vadd.f32 1.0, %v3612_v45  ;;  %v3614_v33 = vpop.eup %3613 }
 0x97b   :  { %3617 = vrcp.f32 %v2180_v50  ;;  %v3616_v1 = vpop.eup %3615  ;;  %v1750_v50 = vadd.f32 %v4711_v20, %v4806_v19 }
 0x97c   :  { %3619 = vrcp.f32 %v2181_v52  ;;  %v2182_v26 = vadd.f32 1.0, %v3616_v1 }
 0x97e   :  { %3621 = vrcp.f32 %v2182_v26 }
 0x985   :  { %v3618_v43 = vpop.eup %3617 }
 0x986   :  { %v2191_v0 = vmul.f32 %v3618_v43, %v3614_v33  ;;  %v3620_v60 = vpop.eup %3619 }
 0x987   :  { %v2190_v48 = vmul.f32 0.0, %v3620_v60 }
 0x988   :  { %v3622_v32 = vpop.eup %3621 }
 0x989   :  { %v4832_v11 = vadd.f32 %v2191_v0, %v2190_v48 }
 0x98b   :  { %3623 = vtanh.f32 %v4832_v11 }
 0x995   :  { %v3624_v40 = vpop.eup %3623 }
 0x996   :  { %v2194_v10 = vmul.f32 %v3624_v40, %v3622_v32 }
 0x998   :  { %v2195_v15 = vpack.c.bf16 %v2194_v10, %v2194_v10 }
 0x99a   :  { %2233 = vmatmul.mubr.bf16.vlgmr.msra.gmra.mrb[68].mxu0 %v2195_v15  ;;  %2274 = vmatmul.mubr.bf16.vlgmr.msra.gmra.mrb[68].mxu1 %v2195_v15 }
 0x99b   :  { %2316 = vmatpush1.bf16.msra.mxu0 %v4604_v3  ;;  %2357 = vmatpush1.bf16.msra.mxu1 %v4606_v18 }
 0x99c   :  { %2317 = vmatprep.subr.bf16.mxu0 %v4612_v37  ;;  %2358 = vmatprep.subr.bf16.mxu1 %v4614_v7 }
 0x99d   :  { %2347 = vmatprep.mubr.bf16.mxu0 %v5246_v47  ;;  %2388 = vmatprep.mubr.bf16.mxu1 %v5246_v47 }
 0x99f   :  { %2318 = vmatpush1.bf16.msra.mxu0 %v4616_v61  ;;  %2359 = vmatpush1.bf16.msra.mxu1 %v4618_v14 }
 0x9a0   :  { %2319 = vmatprep.subr.bf16.mxu0 %v4624_v59  ;;  %2360 = vmatprep.subr.bf16.mxu1 %v4626_v4 }
 0x9a3   :  { %2320 = vmatpush1.bf16.msra.mxu0 %v4628_v25  ;;  %2361 = vmatpush1.bf16.msra.mxu1 %v4630_v63 }
 0x9a4   :  { %2321 = vmatprep.subr.bf16.mxu0 %v4636_v22  ;;  %2362 = vmatprep.subr.bf16.mxu1 %v4638_v23 }
 0x9a7   :  { %2322 = vmatpush1.bf16.msra.mxu0 %v4640_v24  ;;  %2363 = vmatpush1.bf16.msra.mxu1 %v4642_v27 }
 0x9a8   :  { %2323 = vmatprep.subr.bf16.mxu0 %v4648_v2  ;;  %2364 = vmatprep.subr.bf16.mxu1 %v4650_v8 }
 0x9ab   :  { %2324 = vmatpush1.bf16.msra.mxu0 %v4652_v12  ;;  %2365 = vmatpush1.bf16.msra.mxu1 %v4654_v17 }
 0x9ac   :  { %2325 = vmatprep.subr.bf16.mxu0 %v4660_v28  ;;  %2366 = vmatprep.subr.bf16.mxu1 %v4662_v30 }
 0x9af   :  { %2326 = vmatpush1.bf16.msra.mxu0 %v4664_v31  ;;  %2367 = vmatpush1.bf16.msra.mxu1 %v4666_v51 }
 0x9b0   :  { %2327 = vmatprep.subr.bf16.mxu0 %v4672_v55  ;;  %2368 = vmatprep.subr.bf16.mxu1 %v4674_v54 }
 0x9b3   :  { %2328 = vmatpush1.bf16.msra.mxu0 %v4676_v35  ;;  %2369 = vmatpush1.bf16.msra.mxu1 %v4678_v56 }
 0x9b4   :  { %2329 = vmatprep.subr.bf16.mxu0 %v4682_v38  ;;  %2370 = vmatprep.subr.bf16.mxu1 %v4684_v57 }
 0x9b7   :  { %2330 = vmatpush1.bf16.msra.mxu0 %v4688_v39  ;;  %2371 = vmatpush1.bf16.msra.mxu1 %v4690_v58 }
 0x9b8   :  { %2430 = vmatprep.subr.bf16.mxu0 %v4600_v36  ;;  %2471 = vmatprep.subr.bf16.mxu1 %v4602_v13 }
 0xa6d   :  { %v2234_v9 = vpop.f32.mrb[68].mxu0  ;;  %v2275_v41 = vpop.f32.mrb[68].mxu1 }
 0xa6e   :  { %v2282_v42 = vadd.f32 %v2234_v9, %v1750_v50  ;;  %v2284_v44 = vadd.f32 %v2275_v41, %v1823_v6  ;;  %v2236_v45 = vpop.f32.mrb[69].mxu0  ;;  %v2277_v52 = vpop.f32.mrb[69].mxu1 }
 0xa6f   :  { %v2283_v33 = vadd.f32 %v2236_v45, %v1752_v16  ;;  %v2285_v1 = vadd.f32 %v2277_v52, %v1825_v53  ;;  %v2238_v43 = vpop.f32.mrb[70].mxu0  ;;  %v2279_v0 = vpop.f32.mrb[70].mxu1 }
 0xa70   :  { %v3256_v20 = vmul.f32 -1.442695, %v2282_v42  ;;  %v2239_v60 = vpop.f32.mrb[71].mxu0  ;;  %v2280_v26 = vpop.f32.mrb[71].mxu1  ;;  %v3258_v46 = vmul.f32 -1.442695, %v2284_v44 }
 0xa71   :  { %v3257_v21 = vmul.f32 -1.442695, %v2283_v33  ;;  %v5296_v33 = vld [vmem:[#allocation15_spill] sm:$0xff]  ;;  %v5297_v43 = vld [vmem:[#allocation13_spill] sm:$0xff] }
 0xa72   :  { %3625 = vpow2.f32 %v3256_v20  ;;  %v1758_v0 = vadd.f32 %v5297_v43, %v4818_v5  ;;  %v5298_v20 = vld [vmem:[#allocation16_spill] sm:$0xff] }
 0xa73   :  { %3627 = vpow2.f32 %v3257_v21  ;;  %v1831_v60 = vadd.f32 %v5298_v20, %v4822_v62 }
 0xa74   :  { %3629 = vtanh.f32 %v2285_v1  ;;  %v1829_v1 = vadd.f32 %v5296_v33, %v4810_v29 }
 0xa75   :  { %3631 = vpow2.f32 %v3258_v46 }
 0xa7c   :  { %v3626_v48 = vpop.eup %3625 }
 0xa7d   :  { %v2295_v32 = vadd.f32 1.0, %v3626_v48  ;;  %v3628_v49 = vpop.eup %3627 }
 0xa7e   :  { %v2296_v40 = vadd.f32 1.0, %v3628_v49  ;;  %v3630_v10 = vpop.eup %3629 }
 0xa7f   :  { %3633 = vrcp.f32 %v2295_v32  ;;  %v3632_v15 = vpop.eup %3631 }
 0xa80   :  { %3635 = vrcp.f32 %v2296_v40  ;;  %v2297_v53 = vadd.f32 1.0, %v3632_v15 }
 0xa82   :  { %3637 = vrcp.f32 %v2297_v53 }
 0xa89   :  { %v3634_v50 = vpop.eup %3633 }
 0xa8a   :  { %v2306_v6 = vmul.f32 %v3634_v50, %v3630_v10  ;;  %v3636_v16 = vpop.eup %3635 }
 0xa8b   :  { %v2305_v9 = vmul.f32 %v3636_v16, %v4832_v11  ;;  %v1756_v11 = vadd.f32 %v4719_v34, %v4806_v19 }
 0xa8c   :  { %v3638_v42 = vpop.eup %3637 }
 0xa8d   :  { %v4878_v41 = vadd.f32 %v2306_v6, %v2305_v9 }
 0xa8f   :  { %3639 = vtanh.f32 %v4878_v41 }
 0xa99   :  { %v3640_v44 = vpop.eup %3639 }
 0xa9a   :  { %v2309_v45 = vmul.f32 %v3640_v44, %v3638_v42 }
 0xa9c   :  { %v2310_v52 = vpack.c.bf16 %v2309_v45, %v2309_v45 }
 0xa9e   :  { %2348 = vmatmul.mubr.bf16.vlgmr.msra.gmra.mrb[72].mxu0 %v2310_v52  ;;  %2389 = vmatmul.mubr.bf16.vlgmr.msra.gmra.mrb[72].mxu1 %v2310_v52 }
 0xa9f   :  { %2431 = vmatpush1.bf16.msra.mxu0 %v4604_v3  ;;  %2472 = vmatpush1.bf16.msra.mxu1 %v4606_v18 }
 0xaa0   :  { %2432 = vmatprep.subr.bf16.mxu0 %v4612_v37  ;;  %2473 = vmatprep.subr.bf16.mxu1 %v4614_v7 }
 0xaa1   :  { %2462 = vmatprep.mubr.bf16.mxu0 %v5246_v47  ;;  %2503 = vmatprep.mubr.bf16.mxu1 %v5246_v47 }
 0xaa3   :  { %2433 = vmatpush1.bf16.msra.mxu0 %v4616_v61  ;;  %2474 = vmatpush1.bf16.msra.mxu1 %v4618_v14 }
 0xaa4   :  { %2434 = vmatprep.subr.bf16.mxu0 %v4624_v59  ;;  %2475 = vmatprep.subr.bf16.mxu1 %v4626_v4 }
 0xaa7   :  { %2435 = vmatpush1.bf16.msra.mxu0 %v4628_v25  ;;  %2476 = vmatpush1.bf16.msra.mxu1 %v4630_v63 }
 0xaa8   :  { %2436 = vmatprep.subr.bf16.mxu0 %v4636_v22  ;;  %2477 = vmatprep.subr.bf16.mxu1 %v4638_v23 }
 0xaab   :  { %2437 = vmatpush1.bf16.msra.mxu0 %v4640_v24  ;;  %2478 = vmatpush1.bf16.msra.mxu1 %v4642_v27 }
 0xaac   :  { %2438 = vmatprep.subr.bf16.mxu0 %v4648_v2  ;;  %2479 = vmatprep.subr.bf16.mxu1 %v4650_v8 }
 0xaaf   :  { %2439 = vmatpush1.bf16.msra.mxu0 %v4652_v12  ;;  %2480 = vmatpush1.bf16.msra.mxu1 %v4654_v17 }
 0xab0   :  { %2440 = vmatprep.subr.bf16.mxu0 %v4660_v28  ;;  %2481 = vmatprep.subr.bf16.mxu1 %v4662_v30 }
 0xab3   :  { %2441 = vmatpush1.bf16.msra.mxu0 %v4664_v31  ;;  %2482 = vmatpush1.bf16.msra.mxu1 %v4666_v51 }
 0xab4   :  { %2442 = vmatprep.subr.bf16.mxu0 %v4672_v55  ;;  %2483 = vmatprep.subr.bf16.mxu1 %v4674_v54 }
 0xab7   :  { %2443 = vmatpush1.bf16.msra.mxu0 %v4676_v35  ;;  %2484 = vmatpush1.bf16.msra.mxu1 %v4678_v56 }
 0xab8   :  { %2444 = vmatprep.subr.bf16.mxu0 %v4682_v38  ;;  %2485 = vmatprep.subr.bf16.mxu1 %v4684_v57 }
 0xabb   :  { %2445 = vmatpush1.bf16.msra.mxu0 %v4688_v39  ;;  %2486 = vmatpush1.bf16.msra.mxu1 %v4690_v58 }
 0xabc   :  { %2545 = vmatprep.subr.bf16.mxu0 %v4600_v36  ;;  %2586 = vmatprep.subr.bf16.mxu1 %v4602_v13 }
 0xb71   :  { %v2349_v26 = vpop.f32.mrb[72].mxu0  ;;  %v2390_v21 = vpop.f32.mrb[72].mxu1 }
 0xb72   :  { %v2397_v46 = vadd.f32 %v2349_v26, %v1756_v11  ;;  %v2399_v48 = vadd.f32 %v2390_v21, %v1829_v1  ;;  %v2351_v32 = vpop.f32.mrb[73].mxu0  ;;  %v2392_v49 = vpop.f32.mrb[73].mxu1 }
 0xb73   :  { %v2398_v40 = vadd.f32 %v2351_v32, %v1758_v0  ;;  %v2400_v10 = vadd.f32 %v2392_v49, %v1831_v60  ;;  %v2353_v15 = vpop.f32.mrb[74].mxu0  ;;  %v2394_v50 = vpop.f32.mrb[74].mxu1 }
 0xb74   :  { %v3259_v34 = vmul.f32 -1.442695, %v2397_v46  ;;  %v2354_v6 = vpop.f32.mrb[75].mxu0  ;;  %v2395_v16 = vpop.f32.mrb[75].mxu1  ;;  %v3261_v9 = vmul.f32 -1.442695, %v2399_v48 }
 0xb75   :  { %v3260_v53 = vmul.f32 -1.442695, %v2398_v40  ;;  %v5300_v40 = vld [vmem:[#allocation17_spill] sm:$0xff]  ;;  %v5301_v15 = vld [vmem:[#allocation18_spill] sm:$0xff] }
 0xb76   :  { %3641 = vpow2.f32 %v3259_v34  ;;  %v1762_v50 = vadd.f32 %v5301_v15, %v4818_v5  ;;  %v5302_v34 = vld [vmem:[#allocation21_spill] sm:$0xff] }
 0xb77   :  { %3643 = vpow2.f32 %v3260_v53  ;;  %v1835_v6 = vadd.f32 %v5302_v34, %v4822_v62 }
 0xb78   :  { %3645 = vtanh.f32 %v2400_v10  ;;  %v1833_v10 = vadd.f32 %v5300_v40, %v4810_v29 }
 0xb79   :  { %3647 = vpow2.f32 %v3261_v9 }
 0xb80   :  { %v3642_v42 = vpop.eup %3641 }
 0xb81   :  { %v2410_v44 = vadd.f32 1.0, %v3642_v42  ;;  %v3644_v45 = vpop.eup %3643 }
 0xb82   :  { %v2411_v52 = vadd.f32 1.0, %v3644_v45  ;;  %v3646_v11 = vpop.eup %3645 }
 0xb83   :  { %3649 = vrcp.f32 %v2410_v44  ;;  %v3648_v33 = vpop.eup %3647 }
 0xb84   :  { %3651 = vrcp.f32 %v2411_v52  ;;  %v2412_v20 = vadd.f32 1.0, %v3648_v33 }
 0xb86   :  { %3653 = vrcp.f32 %v2412_v20 }
 0xb8d   :  { %v3650_v1 = vpop.eup %3649 }
 0xb8e   :  { %v2421_v43 = vmul.f32 %v3650_v1, %v3646_v11  ;;  %v3652_v0 = vpop.eup %3651 }
 0xb8f   :  { %v2420_v60 = vmul.f32 %v3652_v0, %v4878_v41  ;;  %v5299_v41 = vld [vmem:[#allocation14_spill] sm:$0xff] }
 0xb90   :  { %v3654_v21 = vpop.eup %3653  ;;  %v1760_v49 = vadd.f32 %v5299_v41, %v4806_v19 }
 0xb91   :  { %v4924_v26 = vadd.f32 %v2421_v43, %v2420_v60 }
 0xb93   :  { %3655 = vtanh.f32 %v4924_v26 }
 0xb9d   :  { %v3656_v46 = vpop.eup %3655 }
 0xb9e   :  { %v2424_v48 = vmul.f32 %v3656_v46, %v3654_v21 }
 0xba0   :  { %v2425_v32 = vpack.c.bf16 %v2424_v48, %v2424_v48 }
 0xba2   :  { %2463 = vmatmul.mubr.bf16.vlgmr.msra.gmra.mrb[76].mxu0 %v2425_v32  ;;  %2504 = vmatmul.mubr.bf16.vlgmr.msra.gmra.mrb[76].mxu1 %v2425_v32 }
 0xba3   :  { %2546 = vmatpush1.bf16.msra.mxu0 %v4604_v3  ;;  %2587 = vmatpush1.bf16.msra.mxu1 %v4606_v18 }
 0xba4   :  { %2547 = vmatprep.subr.bf16.mxu0 %v4612_v37  ;;  %2588 = vmatprep.subr.bf16.mxu1 %v4614_v7 }
 0xba5   :  { %2577 = vmatprep.mubr.bf16.mxu0 %v5246_v47  ;;  %2618 = vmatprep.mubr.bf16.mxu1 %v5246_v47 }
 0xba7   :  { %2548 = vmatpush1.bf16.msra.mxu0 %v4616_v61  ;;  %2589 = vmatpush1.bf16.msra.mxu1 %v4618_v14 }
 0xba8   :  { %2549 = vmatprep.subr.bf16.mxu0 %v4624_v59  ;;  %2590 = vmatprep.subr.bf16.mxu1 %v4626_v4 }
 0xbab   :  { %2550 = vmatpush1.bf16.msra.mxu0 %v4628_v25  ;;  %2591 = vmatpush1.bf16.msra.mxu1 %v4630_v63 }
 0xbac   :  { %2551 = vmatprep.subr.bf16.mxu0 %v4636_v22  ;;  %2592 = vmatprep.subr.bf16.mxu1 %v4638_v23 }
 0xbaf   :  { %2552 = vmatpush1.bf16.msra.mxu0 %v4640_v24  ;;  %2593 = vmatpush1.bf16.msra.mxu1 %v4642_v27 }
 0xbb0   :  { %2553 = vmatprep.subr.bf16.mxu0 %v4648_v2  ;;  %2594 = vmatprep.subr.bf16.mxu1 %v4650_v8 }
 0xbb3   :  { %2554 = vmatpush1.bf16.msra.mxu0 %v4652_v12  ;;  %2595 = vmatpush1.bf16.msra.mxu1 %v4654_v17 }
 0xbb4   :  { %2555 = vmatprep.subr.bf16.mxu0 %v4660_v28  ;;  %2596 = vmatprep.subr.bf16.mxu1 %v4662_v30 }
 0xbb7   :  { %2556 = vmatpush1.bf16.msra.mxu0 %v4664_v31  ;;  %2597 = vmatpush1.bf16.msra.mxu1 %v4666_v51 }
 0xbb8   :  { %2557 = vmatprep.subr.bf16.mxu0 %v4672_v55  ;;  %2598 = vmatprep.subr.bf16.mxu1 %v4674_v54 }
 0xbbb   :  { %2558 = vmatpush1.bf16.msra.mxu0 %v4676_v35  ;;  %2599 = vmatpush1.bf16.msra.mxu1 %v4678_v56 }
 0xbbc   :  { %2559 = vmatprep.subr.bf16.mxu0 %v4682_v38  ;;  %2600 = vmatprep.subr.bf16.mxu1 %v4684_v57 }
 0xbbf   :  { %2560 = vmatpush1.bf16.msra.mxu0 %v4688_v39  ;;  %2601 = vmatpush1.bf16.msra.mxu1 %v4690_v58 }
 0xbc0   :  { %2660 = vmatprep.subr.bf16.mxu0 %v4600_v36  ;;  %2701 = vmatprep.subr.bf16.mxu1 %v4602_v13 }
 0xc75   :  { %v2464_v16 = vpop.f32.mrb[76].mxu0  ;;  %v2505_v53 = vpop.f32.mrb[76].mxu1 }
 0xc76   :  { %v2512_v9 = vadd.f32 %v2464_v16, %v1760_v49  ;;  %v2514_v42 = vadd.f32 %v2505_v53, %v1833_v10  ;;  %v2466_v44 = vpop.f32.mrb[77].mxu0  ;;  %v2507_v45 = vpop.f32.mrb[77].mxu1 }
 0xc77   :  { %v2513_v52 = vadd.f32 %v2466_v44, %v1762_v50  ;;  %v2515_v11 = vadd.f32 %v2507_v45, %v1835_v6  ;;  %v2468_v33 = vpop.f32.mrb[78].mxu0  ;;  %v2509_v1 = vpop.f32.mrb[78].mxu1 }
 0xc78   :  { %v3262_v43 = vmul.f32 -1.442695, %v2512_v9  ;;  %v2469_v0 = vpop.f32.mrb[79].mxu0  ;;  %v2510_v20 = vpop.f32.mrb[79].mxu1  ;;  %v3264_v21 = vmul.f32 -1.442695, %v2514_v42 }
 0xc79   :  { %v3263_v60 = vmul.f32 -1.442695, %v2513_v52  ;;  %v5019_v0 = vld [vmem:[#allocation9] ss:$16 sps:$4 sm:$0xff]   ;;  %v5022_v20 = vld [vmem:[#allocation9 + $0x8] ss:$16 sps:$4 sm:$0xff]  }
 0xc7a   :  { %3657 = vpow2.f32 %v3262_v43 }
 0xc7b   :  { %3659 = vpow2.f32 %v3263_v60  ;;  %v5025_v60 = vld [vmem:[#allocation9 + $0x24] ss:$16 sps:$4 sm:$0xff]  }
 0xc7c   :  { %3661 = vtanh.f32 %v2515_v11 }
 0xc7d   :  { %3663 = vpow2.f32 %v3264_v21  ;;  %v5028_v21 = vld [vmem:[#allocation9 + $0x2c] ss:$16 sps:$4 sm:$0xff]  }
 0xc84   :  { %v3658_v46 = vpop.eup %3657 }
 0xc85   :  { %v2525_v48 = vadd.f32 1.0, %v3658_v46  ;;  %v3660_v32 = vpop.eup %3659  ;;  %v5033_v46 = vld [vmem:[#allocation9 + $0x20] ss:$16 sps:$4 sm:$0xff]  }
 0xc86   :  { %v2526_v41 = vadd.f32 1.0, %v3660_v32  ;;  %v3662_v49 = vpop.eup %3661  ;;  %v5039_v32 = vld [vmem:[#allocation9 + $0x44] ss:$16 sps:$4 sm:$0xff]  }
 0xc87   :  { %3665 = vrcp.f32 %v2525_v48  ;;  %v3664_v40 = vpop.eup %3663  ;;  %v5036_v48 = vld [vmem:[#allocation9 + $0x28] ss:$16 sps:$4 sm:$0xff]  }
 0xc88   :  { %3667 = vrcp.f32 %v2526_v41  ;;  %v2527_v34 = vadd.f32 1.0, %v3664_v40  ;;  %v5042_v41 = vld [vmem:[#allocation9 + $0x4c] ss:$16 sps:$4 sm:$0xff]   ;;  %v5048_v40 = vld [vmem:[#allocation9 + $0x48] ss:$16 sps:$4 sm:$0xff]  }
 0xc8a   :  { %3669 = vrcp.f32 %v2527_v34  ;;  %v5060_v34 = vld [vmem:[#allocation9 + $0x68] ss:$16 sps:$4 sm:$0xff]  }
 0xc91   :  { %v3666_v10 = vpop.eup %3665 }
 0xc92   :  { %v2536_v15 = vmul.f32 %v3666_v10, %v3662_v49  ;;  %v3668_v50 = vpop.eup %3667  ;;  %v5045_v49 = vld [vmem:[#allocation9 + $0x40] ss:$16 sps:$4 sm:$0xff]   ;;  %v5051_v10 = vld [vmem:[#allocation9 + $0x64] ss:$16 sps:$4 sm:$0xff]  }
 0xc93   :  { %v2535_v6 = vmul.f32 %v3668_v50, %v4924_v26  ;;  %v5057_v50 = vld [vmem:[#allocation9 + $0x60] ss:$16 sps:$4 sm:$0xff]  }
 0xc94   :  { %v3670_v53 = vpop.eup %3669 }
 0xc95   :  { %v4970_v16 = vadd.f32 %v2536_v15, %v2535_v6  ;;  %v5054_v15 = vld [vmem:[#allocation9 + $0x6c] ss:$16 sps:$4 sm:$0xff]   ;;  %v5063_v6 = vld [vmem:[#allocation9 + $0x84] ss:$16 sps:$4 sm:$0xff]  }
 0xc97   :  { %3671 = vtanh.f32 %v4970_v16 }
 0xca1   :  { %v3672_v9 = vpop.eup %3671 }
 0xca2   :  { %v2539_v42 = vmul.f32 %v3672_v9, %v3670_v53  ;;  %v5069_v53 = vld [vmem:[#allocation9 + $0x80] ss:$16 sps:$4 sm:$0xff]   ;;  %v5072_v9 = vld [vmem:[#allocation9 + $0x88] ss:$16 sps:$4 sm:$0xff]  }
 0xca4   :  { %v2540_v44 = vpack.c.bf16 %v2539_v42, %v2539_v42  ;;  %v5075_v42 = vld [vmem:[#allocation9 + $0xa4] ss:$16 sps:$4 sm:$0xff]  }
 0xca6   :  { %2578 = vmatmul.mubr.bf16.vlgmr.msra.gmra.mrb[80].mxu0 %v2540_v44  ;;  %2619 = vmatmul.mubr.bf16.vlgmr.msra.gmra.mrb[80].mxu1 %v2540_v44  ;;  %v5078_v44 = vld [vmem:[#allocation9 + $0xac] ss:$16 sps:$4 sm:$0xff]  }
 0xca7   :  { %2661 = vmatpush1.bf16.msra.mxu0 %v4604_v3  ;;  %2702 = vmatpush1.bf16.msra.mxu1 %v4606_v18  ;;  %v5303_v3 = vld [vmem:[#allocation19_spill] sm:$0xff] }
 0xca8   :  { %2662 = vmatprep.subr.bf16.mxu0 %v4612_v37  ;;  %2703 = vmatprep.subr.bf16.mxu1 %v4614_v7  ;;  %v1766_v18 = vadd.f32 %v5303_v3, %v4806_v19  ;;  %v5304_v37 = vld [vmem:[#allocation23_spill] sm:$0xff]  ;;  %v5081_v3 = vld [vmem:[#allocation9 + $0xa0] ss:$16 sps:$4 sm:$0xff]  }
 0xca9   :  { %2692 = vmatprep.mubr.bf16.mxu0 %v5246_v47  ;;  %2733 = vmatprep.mubr.bf16.mxu1 %v5246_v47  ;;  %v1839_v7 = vadd.f32 %v5304_v37, %v4810_v29  ;;  %v5087_v37 = vld [vmem:[#allocation9 + $0xc4] ss:$16 sps:$4 sm:$0xff]  }
 0xcab   :  { %2663 = vmatpush1.bf16.msra.mxu0 %v4616_v61  ;;  %2704 = vmatpush1.bf16.msra.mxu1 %v4618_v14  ;;  %v5305_v61 = vld [vmem:[#allocation20_spill] sm:$0xff] }
 0xcac   :  { %2664 = vmatprep.subr.bf16.mxu0 %v4624_v59  ;;  %2705 = vmatprep.subr.bf16.mxu1 %v4626_v4  ;;  %v1768_v14 = vadd.f32 %v5305_v61, %v4818_v5  ;;  %v5306_v59 = vld [vmem:[#allocation24_spill] sm:$0xff] }
 0xcad   :  { %v1841_v4 = vadd.f32 %v5306_v59, %v4822_v62  ;;  %v5093_v61 = vld [vmem:[#allocation9 + $0xc0] ss:$16 sps:$4 sm:$0xff]   ;;  %v5099_v59 = vld [vmem:[#allocation9 + $0xe4] ss:$16 sps:$4 sm:$0xff]  }
 0xcaf   :  { %2665 = vmatpush1.bf16.msra.mxu0 %v4628_v25  ;;  %2706 = vmatpush1.bf16.msra.mxu1 %v4630_v63 }
 0xcb0   :  { %2666 = vmatprep.subr.bf16.mxu0 %v4636_v22  ;;  %2707 = vmatprep.subr.bf16.mxu1 %v4638_v23 }
 0xcb3   :  { %2667 = vmatpush1.bf16.msra.mxu0 %v4640_v24  ;;  %2708 = vmatpush1.bf16.msra.mxu1 %v4642_v27 }
 0xcb4   :  { %2668 = vmatprep.subr.bf16.mxu0 %v4648_v2  ;;  %2709 = vmatprep.subr.bf16.mxu1 %v4650_v8 }
 0xcb7   :  { %2669 = vmatpush1.bf16.msra.mxu0 %v4652_v12  ;;  %2710 = vmatpush1.bf16.msra.mxu1 %v4654_v17 }
 0xcb8   :  { %2670 = vmatprep.subr.bf16.mxu0 %v4660_v28  ;;  %2711 = vmatprep.subr.bf16.mxu1 %v4662_v30 }
 0xcbb   :  { %2671 = vmatpush1.bf16.msra.mxu0 %v4664_v31  ;;  %2712 = vmatpush1.bf16.msra.mxu1 %v4666_v51 }
 0xcbc   :  { %2672 = vmatprep.subr.bf16.mxu0 %v4672_v55  ;;  %2713 = vmatprep.subr.bf16.mxu1 %v4674_v54 }
 0xcbf   :  { %2673 = vmatpush1.bf16.msra.mxu0 %v4676_v35  ;;  %2714 = vmatpush1.bf16.msra.mxu1 %v4678_v56 }
 0xcc0   :  { %2674 = vmatprep.subr.bf16.mxu0 %v4682_v38  ;;  %2715 = vmatprep.subr.bf16.mxu1 %v4684_v57 }
 0xcc3   :  { %2675 = vmatpush1.bf16.msra.mxu0 %v4688_v39  ;;  %2716 = vmatpush1.bf16.msra.mxu1 %v4690_v58 }
 0xcc4   :  { %2775 = vmatprep.subr.bf16.mxu0 %v4600_v36  ;;  %2816 = vmatprep.subr.bf16.mxu1 %v4602_v13 }
 0xd79   :  { %v2579_v25 = vpop.f32.mrb[80].mxu0  ;;  %v2620_v63 = vpop.f32.mrb[80].mxu1 }
 0xd7a   :  { %v2627_v22 = vadd.f32 %v2579_v25, %v1766_v18  ;;  %v2629_v23 = vadd.f32 %v2620_v63, %v1839_v7  ;;  %v2581_v24 = vpop.f32.mrb[81].mxu0  ;;  %v2622_v36 = vpop.f32.mrb[81].mxu1  ;;  %v5084_v18 = vld [vmem:[#allocation9 + $0xa8] ss:$16 sps:$4 sm:$0xff]   ;;  %v5090_v7 = vld [vmem:[#allocation9 + $0xcc] ss:$16 sps:$4 sm:$0xff]  }
 0xd7b   :  { %v2628_v27 = vadd.f32 %v2581_v24, %v1768_v14  ;;  %v2630_v13 = vadd.f32 %v2622_v36, %v1841_v4  ;;  %v2583_v2 = vpop.f32.mrb[82].mxu0  ;;  %v2624_v8 = vpop.f32.mrb[82].mxu1  ;;  %v5096_v14 = vld [vmem:[#allocation9 + $0xc8] ss:$16 sps:$4 sm:$0xff]   ;;  %v5102_v4 = vld [vmem:[#allocation9 + $0xec] ss:$16 sps:$4 sm:$0xff]  }
 0xd7c   :  { %v3265_v12 = vmul.f32 -1.442695, %v2627_v22  ;;  %v2584_v17 = vpop.f32.mrb[83].mxu0  ;;  %v2625_v28 = vpop.f32.mrb[83].mxu1  ;;  %v3267_v31 = vmul.f32 -1.442695, %v2629_v23 }
 0xd7d   :  { %v3266_v30 = vmul.f32 -1.442695, %v2628_v27  ;;  %v5105_v25 = vld [vmem:[#allocation9 + $0xe0] ss:$16 sps:$4 sm:$0xff]   ;;  %v5108_v63 = vld [vmem:[#allocation9 + $0xe8] ss:$16 sps:$4 sm:$0xff]  }
 0xd7e   :  { %3673 = vpow2.f32 %v3265_v12  ;;  %v3799_v22 = vld [vmem:[#allocation9 + $0x4] ss:$16 sps:$4 sm:$0xff]   ;;  %v3800_v23 = vld [vmem:[#allocation9 + $0xc] ss:$16 sps:$4 sm:$0xff]  }
 0xd7f   :  { %3675 = vpow2.f32 %v3266_v30  ;;  %v5307_v24 = vld [vmem:[#allocation22_spill] sm:$0xff]  ;;  %v5308_v27 = vld [vmem:[#allocation25_spill] sm:$0xff] }
 0xd80   :  { %3677 = vtanh.f32 %v2630_v13  ;;  %v1770_v36 = vadd.f32 %v5307_v24, %v4806_v19  ;;  %v1843_v13 = vadd.f32 %v5308_v27, %v4810_v29  ;;  %v5309_v2 = vld [vmem:[#allocation26_spill] sm:$0xff]  ;;  %v5310_v12 = vld [vmem:[#allocation29_spill] sm:$0xff] }
 0xd81   :  { %3679 = vpow2.f32 %v3267_v31  ;;  %v1772_v8 = vadd.f32 %v5309_v2, %v4818_v5  ;;  %v1845_v17 = vadd.f32 %v5310_v12, %v4822_v62 }
 0xd88   :  { %v3674_v51 = vpop.eup %3673 }
 0xd89   :  { %v2640_v55 = vadd.f32 1.0, %v3674_v51  ;;  %v3676_v54 = vpop.eup %3675 }
 0xd8a   :  { %v2641_v35 = vadd.f32 1.0, %v3676_v54  ;;  %v3678_v56 = vpop.eup %3677 }
 0xd8b   :  { %3681 = vrcp.f32 %v2640_v55  ;;  %v3680_v38 = vpop.eup %3679 }
 0xd8c   :  { %3683 = vrcp.f32 %v2641_v35  ;;  %v2642_v26 = vadd.f32 1.0, %v3680_v38 }
 0xd8e   :  { %3685 = vrcp.f32 %v2642_v26 }
 0xd95   :  { %v3682_v57 = vpop.eup %3681 }
 0xd96   :  { %v2651_v39 = vmul.f32 %v3682_v57, %v3678_v56  ;;  %v3684_v58 = vpop.eup %3683 }
 0xd97   :  { %v2650_v45 = vmul.f32 %v3684_v58, %v4970_v16  ;;  %v5066_v16 = vld [vmem:[#allocation9 + $0x8c] ss:$16 sps:$4 sm:$0xff]  }
 0xd98   :  { %v3686_v11 = vpop.eup %3685 }
 0xd99   :  { %v5016_v52 = vadd.f32 %v2651_v39, %v2650_v45 }
 0xd9b   :  { %3687 = vtanh.f32 %v5016_v52 }
 0xda5   :  { %v3688_v33 = vpop.eup %3687 }
 0xda6   :  { %v2654_v1 = vmul.f32 %v3688_v33, %v3686_v11 }
 0xda8   :  { %v2655_v43 = vpack.c.bf16 %v2654_v1, %v2654_v1 }
 0xdaa   :  { %2693 = vmatmul.mubr.bf16.vlgmr.msra.gmra.mrb[84].mxu0 %v2655_v43  ;;  %2734 = vmatmul.mubr.bf16.vlgmr.msra.gmra.mrb[84].mxu1 %v2655_v43 }
 0xdab   :  { %2776 = vmatpush1.bf16.msra.mxu0 %v5019_v0  ;;  %2817 = vmatpush1.bf16.msra.mxu1 %v5022_v20 }
 0xdac   :  { %2777 = vmatprep.subr.bf16.mxu0 %v5025_v60  ;;  %2818 = vmatprep.subr.bf16.mxu1 %v5028_v21 }
 0xdad   :  { %2807 = vmatprep.mubr.bf16.mxu0 %v5246_v47  ;;  %2848 = vmatprep.mubr.bf16.mxu1 %v5246_v47 }
 0xdaf   :  { %2778 = vmatpush1.bf16.msra.mxu0 %v5033_v46  ;;  %2819 = vmatpush1.bf16.msra.mxu1 %v5036_v48 }
 0xdb0   :  { %2779 = vmatprep.subr.bf16.mxu0 %v5039_v32  ;;  %2820 = vmatprep.subr.bf16.mxu1 %v5042_v41 }
 0xdb3   :  { %2780 = vmatpush1.bf16.msra.mxu0 %v5045_v49  ;;  %2821 = vmatpush1.bf16.msra.mxu1 %v5048_v40 }
 0xdb4   :  { %2781 = vmatprep.subr.bf16.mxu0 %v5051_v10  ;;  %2822 = vmatprep.subr.bf16.mxu1 %v5054_v15 }
 0xdb7   :  { %2782 = vmatpush1.bf16.msra.mxu0 %v5057_v50  ;;  %2823 = vmatpush1.bf16.msra.mxu1 %v5060_v34 }
 0xdb8   :  { %2783 = vmatprep.subr.bf16.mxu0 %v5063_v6  ;;  %2824 = vmatprep.subr.bf16.mxu1 %v5066_v16 }
 0xdbb   :  { %2784 = vmatpush1.bf16.msra.mxu0 %v5069_v53  ;;  %2825 = vmatpush1.bf16.msra.mxu1 %v5072_v9 }
 0xdbc   :  { %2785 = vmatprep.subr.bf16.mxu0 %v5075_v42  ;;  %2826 = vmatprep.subr.bf16.mxu1 %v5078_v44 }
 0xdbf   :  { %2786 = vmatpush1.bf16.msra.mxu0 %v5081_v3  ;;  %2827 = vmatpush1.bf16.msra.mxu1 %v5084_v18 }
 0xdc0   :  { %2787 = vmatprep.subr.bf16.mxu0 %v5087_v37  ;;  %2828 = vmatprep.subr.bf16.mxu1 %v5090_v7 }
 0xdc3   :  { %2788 = vmatpush1.bf16.msra.mxu0 %v5093_v61  ;;  %2829 = vmatpush1.bf16.msra.mxu1 %v5096_v14 }
 0xdc4   :  { %2789 = vmatprep.subr.bf16.mxu0 %v5099_v59  ;;  %2830 = vmatprep.subr.bf16.mxu1 %v5102_v4 }
 0xdc7   :  { %2790 = vmatpush1.bf16.msra.mxu0 %v5105_v25  ;;  %2831 = vmatpush1.bf16.msra.mxu1 %v5108_v63 }
 0xdc8   :  { %2890 = vmatprep.subr.bf16.mxu0 %v3799_v22  ;;  %2931 = vmatprep.subr.bf16.mxu1 %v3800_v23 }
 0xe7d   :  { %v2694_v28 = vpop.f32.mrb[84].mxu0  ;;  %v2735_v30 = vpop.f32.mrb[84].mxu1 }
 0xe7e   :  { %v2742_v31 = vadd.f32 %v2694_v28, %v1770_v36  ;;  %v2744_v51 = vadd.f32 %v2735_v30, %v1843_v13  ;;  %v2696_v55 = vpop.f32.mrb[85].mxu0  ;;  %v2737_v54 = vpop.f32.mrb[85].mxu1 }
 0xe7f   :  { %v2743_v35 = vadd.f32 %v2696_v55, %v1772_v8  ;;  %v2745_v56 = vadd.f32 %v2737_v54, %v1845_v17  ;;  %v2698_v38 = vpop.f32.mrb[86].mxu0  ;;  %v2739_v57 = vpop.f32.mrb[86].mxu1 }
 0xe80   :  { %v3268_v39 = vmul.f32 -1.442695, %v2742_v31  ;;  %v2699_v58 = vpop.f32.mrb[87].mxu0  ;;  %v2740_v26 = vpop.f32.mrb[87].mxu1  ;;  %v3270_v11 = vmul.f32 -1.442695, %v2744_v51 }
 0xe81   :  { %v3269_v45 = vmul.f32 -1.442695, %v2743_v35  ;;  %v3878_v58 = vmov 0.0   ;;  %v3474_v26 = vld [vmem:[%s5213_s7 + $0x8] sm:$0xff]  }
 0xe82   :  { %3689 = vpow2.f32 %v3268_v39  ;;  %v3473_v39 = vld [vmem:[%s5213_s7] sm:$0xff]  }
 0xe83   :  { %3691 = vpow2.f32 %v3269_v45  ;;  %v3475_v45 = vld [vmem:[%s5213_s7 + $0x10] sm:$0xff]  }
 0xe84   :  { %3693 = vtanh.f32 %v2745_v56 }
 0xe85   :  { %3695 = vpow2.f32 %v3270_v11  ;;  %v3476_v11 = vld [vmem:[%s5213_s7 + $0x18] sm:$0xff]  }
 0xe8c   :  { %v3690_v33 = vpop.eup %3689 }
 0xe8d   :  { %v2755_v1 = vadd.f32 1.0, %v3690_v33  ;;  %v3692_v43 = vpop.eup %3691  ;;  %v3477_v33 = vld [vmem:[%s5213_s7 + $0x20] sm:$0xff]  }
 0xe8e   :  { %v2756_v22 = vadd.f32 1.0, %v3692_v43  ;;  %v3694_v23 = vpop.eup %3693  ;;  %v3479_v43 = vld [vmem:[%s5213_s7 + $0x30] sm:$0xff]  }
 0xe8f   :  { %3697 = vrcp.f32 %v2755_v1  ;;  %v3696_v24 = vpop.eup %3695  ;;  %v3478_v1 = vld [vmem:[%s5213_s7 + $0x28] sm:$0xff]  }
 0xe90   :  { %3699 = vrcp.f32 %v2756_v22  ;;  %v2757_v2 = vadd.f32 1.0, %v3696_v24  ;;  %v3480_v22 = vld [vmem:[%s5213_s7 + $0x38] sm:$0xff]  }
 0xe92   :  { %3701 = vrcp.f32 %v2757_v2 }
 0xe99   :  { %v3698_v36 = vpop.eup %3697 }
 0xe9a   :  { %v2766_v27 = vmul.f32 %v3698_v36, %v3694_v23  ;;  %v3700_v13 = vpop.eup %3699  ;;  %v5315_v23 = vld [vmem:[#allocation30_spill] sm:$0xff]  ;;  %v5316_v36 = vld [vmem:[#allocation33_spill] sm:$0xff] }
 0xe9b   :  { %v2765_v8 = vmul.f32 %v3700_v13, %v5016_v52  ;;  %v1780_v24 = vadd.f32 %v5315_v23, %v4806_v19  ;;  %v5317_v13 = vld [vmem:[#allocation12_spill] sm:$0xff] }
 0xe9c   :  { %v3702_v17 = vpop.eup %3701  ;;  %v1782_v2 = vadd.f32 %v5317_v13, %v4818_v5 }
 0xe9d   :  { %v5120_v12 = vadd.f32 %v2766_v27, %v2765_v8  ;;  %v1853_v27 = vadd.f32 %v5316_v36, %v4810_v29  ;;  %v5318_v8 = vld [vmem:[#allocation34_spill] sm:$0xff] }
 0xe9f   :  { %3703 = vtanh.f32 %v5120_v12 }
 0xea9   :  { %v3704_v28 = vpop.eup %3703 }
 0xeaa   :  { %v2769_v30 = vmul.f32 %v3704_v28, %v3702_v17 }
 0xeac   :  { %v2770_v31 = vpack.c.bf16 %v2769_v30, %v2769_v30 }
 0xeae   :  { %2808 = vmatmul.mubr.bf16.vlgmr.msra.gmra.mrb[88].mxu0 %v2770_v31  ;;  %2849 = vmatmul.mubr.bf16.vlgmr.msra.gmra.mrb[88].mxu1 %v2770_v31 }
 0xeaf   :  { %2891 = vmatpush1.bf16.msra.mxu0 %v5019_v0  ;;  %2932 = vmatpush1.bf16.msra.mxu1 %v5022_v20  ;;  %v5312_v0 = vld [vmem:[#allocation31_spill] sm:$0xff] }
 0xeb0   :  { %2892 = vmatprep.subr.bf16.mxu0 %v5025_v60  ;;  %2933 = vmatprep.subr.bf16.mxu1 %v5028_v21  ;;  %v1849_v20 = vadd.f32 %v5312_v0, %v4810_v29  ;;  %v5313_v60 = vld [vmem:[#allocation28_spill] sm:$0xff] }
 0xeb1   :  { %2922 = vmatprep.mubr.bf16.mxu0 %v5246_v47  ;;  %2963 = vmatprep.mubr.bf16.mxu1 %v5246_v47  ;;  %v5311_v47 = vld [vmem:[#allocation27_spill] sm:$0xff]  ;;  %v1778_v21 = vadd.f32 %v5313_v60, %v4818_v5 }
 0xeb2   :  { %v1776_v52 = vadd.f32 %v5311_v47, %v4806_v19 }
 0xeb3   :  { %2893 = vmatpush1.bf16.msra.mxu0 %v5033_v46  ;;  %2934 = vmatpush1.bf16.msra.mxu1 %v5036_v48  ;;  %v5314_v46 = vld [vmem:[#allocation32_spill] sm:$0xff] }
 0xeb4   :  { %2894 = vmatprep.subr.bf16.mxu0 %v5039_v32  ;;  %2935 = vmatprep.subr.bf16.mxu1 %v5042_v41  ;;  %v1851_v48 = vadd.f32 %v5314_v46, %v4822_v62 }
 0xeb7   :  { %2895 = vmatpush1.bf16.msra.mxu0 %v5045_v49  ;;  %2936 = vmatpush1.bf16.msra.mxu1 %v5048_v40 }
 0xeb8   :  { %2896 = vmatprep.subr.bf16.mxu0 %v5051_v10  ;;  %2937 = vmatprep.subr.bf16.mxu1 %v5054_v15 }
 0xebb   :  { %2897 = vmatpush1.bf16.msra.mxu0 %v5057_v50  ;;  %2938 = vmatpush1.bf16.msra.mxu1 %v5060_v34 }
 0xebc   :  { %2898 = vmatprep.subr.bf16.mxu0 %v5063_v6  ;;  %2939 = vmatprep.subr.bf16.mxu1 %v5066_v16 }
 0xebf   :  { %2899 = vmatpush1.bf16.msra.mxu0 %v5069_v53  ;;  %2940 = vmatpush1.bf16.msra.mxu1 %v5072_v9 }
 0xec0   :  { %2900 = vmatprep.subr.bf16.mxu0 %v5075_v42  ;;  %2941 = vmatprep.subr.bf16.mxu1 %v5078_v44 }
 0xec3   :  { %2901 = vmatpush1.bf16.msra.mxu0 %v5081_v3  ;;  %2942 = vmatpush1.bf16.msra.mxu1 %v5084_v18 }
 0xec4   :  { %2902 = vmatprep.subr.bf16.mxu0 %v5087_v37  ;;  %2943 = vmatprep.subr.bf16.mxu1 %v5090_v7 }
 0xec7   :  { %2903 = vmatpush1.bf16.msra.mxu0 %v5093_v61  ;;  %2944 = vmatpush1.bf16.msra.mxu1 %v5096_v14 }
 0xec8   :  { %2904 = vmatprep.subr.bf16.mxu0 %v5099_v59  ;;  %2945 = vmatprep.subr.bf16.mxu1 %v5102_v4 }
 0xecb   :  { %2905 = vmatpush1.bf16.msra.mxu0 %v5105_v25  ;;  %2946 = vmatpush1.bf16.msra.mxu1 %v5108_v63 }
 0xecc   :  { %3295 = vmatprep.subr.bf16.mxu0 %v3878_v58 }
 0xf81   :  { %v2809_v32 = vpop.f32.mrb[88].mxu0  ;;  %v2850_v41 = vpop.f32.mrb[88].mxu1 }
 0xf82   :  { %v2857_v49 = vadd.f32 %v2809_v32, %v1776_v52  ;;  %v2859_v40 = vadd.f32 %v2850_v41, %v1849_v20  ;;  %v2811_v10 = vpop.f32.mrb[89].mxu0  ;;  %v2852_v15 = vpop.f32.mrb[89].mxu1 }
 0xf83   :  { %v2858_v50 = vadd.f32 %v2811_v10, %v1778_v21  ;;  %v2860_v34 = vadd.f32 %v2852_v15, %v1851_v48  ;;  %v2813_v6 = vpop.f32.mrb[90].mxu0  ;;  %v2854_v16 = vpop.f32.mrb[90].mxu1 }
 0xf84   :  { %v3271_v53 = vmul.f32 -1.442695, %v2857_v49  ;;  %v2814_v9 = vpop.f32.mrb[91].mxu0  ;;  %v2855_v42 = vpop.f32.mrb[91].mxu1  ;;  %v3273_v3 = vmul.f32 -1.442695, %v2859_v40 }
 0xf85   :  { %v3272_v44 = vmul.f32 -1.442695, %v2858_v50 }
 0xf86   :  { %3705 = vpow2.f32 %v3271_v53 }
 0xf87   :  { %3707 = vpow2.f32 %v3272_v44 }
 0xf88   :  { %3709 = vtanh.f32 %v2860_v34 }
 0xf89   :  { %3711 = vpow2.f32 %v3273_v3 }
 0xf90   :  { %v3706_v18 = vpop.eup %3705 }
 0xf91   :  { %v2870_v37 = vadd.f32 1.0, %v3706_v18  ;;  %v3708_v7 = vpop.eup %3707  ;;  %v3277_v18 = vld [vmem:[%s5214_s8] ss:$0 sm:$0xff] }
 0xf92   :  { %v2871_v61 = vadd.f32 1.0, %v3708_v7  ;;  %v3710_v14 = vpop.eup %3709 }
 0xf93   :  { %3713 = vrcp.f32 %v2870_v37  ;;  %v3712_v59 = vpop.eup %3711 }
 0xf94   :  { %3715 = vrcp.f32 %v2871_v61  ;;  %v2872_v51 = vadd.f32 1.0, %v3712_v59 }
 0xf96   :  { %3717 = vrcp.f32 %v2872_v51 }
 0xf9d   :  { %v3714_v4 = vpop.eup %3713 }
 0xf9e   :  { %v2881_v25 = vmul.f32 %v3714_v4, %v3710_v14  ;;  %v3716_v63 = vpop.eup %3715 }
 0xf9f   :  { %v2880_v55 = vmul.f32 %v3716_v63, %v5120_v12  ;;  %v1855_v12 = vadd.f32 %v5318_v8, %v4822_v62 }
 0xfa0   :  { %v3718_v35 = vpop.eup %3717 }
 0xfa1   :  { %v5164_v54 = vadd.f32 %v2881_v25, %v2880_v55 }
 0xfa3   :  { %3719 = vtanh.f32 %v5164_v54 }
 0xfad   :  { %v3720_v56 = vpop.eup %3719 }
 0xfae   :  { %v2884_v38 = vmul.f32 %v3720_v56, %v3718_v35 }
 0xfb0   :  { %v2885_v57 = vpack.c.bf16 %v2884_v38, %v2884_v38 }
 0xfb2   :  { %2923 = vmatmul.mubr.bf16.vlgmr.msra.gmra.mrb[92].mxu0 %v2885_v57  ;;  %2964 = vmatmul.mubr.bf16.vlgmr.msra.gmra.mrb[92].mxu1 %v2885_v57 }
 0xfb3   :  { %3296 = vmatpush3.bf16.msra.mxu0 %v3473_v39  ;;  %3311 = vmatprep.mubr.msk.bf16.mxu0 %vm3879_vm2, %v3878_v58 }
 0xfb4   :  { %3297 = vmatprep.subr.bf16.mxu0 %v3878_v58 }
 0xfb7   :  { %3298 = vmatpush3.bf16.msra.mxu0 %v3474_v26 }
 0xfb8   :  { %3299 = vmatprep.subr.bf16.mxu0 %v3878_v58 }
 0xfbb   :  { %3300 = vmatpush3.bf16.msra.mxu0 %v3475_v45 }
 0xfbc   :  { %3301 = vmatprep.subr.bf16.mxu0 %v3878_v58 }
 0xfbf   :  { %3302 = vmatpush3.bf16.msra.mxu0 %v3476_v11 }
 0xfc0   :  { %3303 = vmatprep.subr.bf16.mxu0 %v3878_v58 }
 0xfc3   :  { %3304 = vmatpush3.bf16.msra.mxu0 %v3477_v33 }
 0xfc4   :  { %3305 = vmatprep.subr.bf16.mxu0 %v3878_v58 }
 0xfc7   :  { %3306 = vmatpush3.bf16.msra.mxu0 %v3478_v1 }
 0xfc8   :  { %3307 = vmatprep.subr.bf16.mxu0 %v3878_v58 }
 0xfcb   :  { %3308 = vmatpush3.bf16.msra.mxu0 %v3479_v43 }
 0xfcc   :  { %3309 = vmatprep.subr.bf16.mxu0 %v3878_v58 }
 0xfcf   :  { %3310 = vmatpush3.bf16.msra.mxu0 %v3480_v22 }
0x1085   :  { %v2924_v17 = vpop.f32.mrb[92].mxu0  ;;  %v2965_v28 = vpop.f32.mrb[92].mxu1 }
0x1086   :  { %v2972_v30 = vadd.f32 %v2924_v17, %v1780_v24  ;;  %v2974_v31 = vadd.f32 %v2965_v28, %v1853_v27  ;;  %v2926_v47 = vpop.f32.mrb[93].mxu0  ;;  %v2967_v52 = vpop.f32.mrb[93].mxu1 }
0x1087   :  { %v2973_v0 = vadd.f32 %v2926_v47, %v1782_v2  ;;  %v2975_v20 = vadd.f32 %v2967_v52, %v1855_v12  ;;  %v2928_v60 = vpop.f32.mrb[94].mxu0  ;;  %v2969_v21 = vpop.f32.mrb[94].mxu1 }
0x1088   :  { %v3274_v19 = vmul.f32 -1.442695, %v2972_v30  ;;  %v2929_v46 = vpop.f32.mrb[95].mxu0  ;;  %v2970_v48 = vpop.f32.mrb[95].mxu1  ;;  %v3276_v5 = vmul.f32 -1.442695, %v2974_v31 }
0x1089   :  { %v3275_v29 = vmul.f32 -1.442695, %v2973_v0 }
0x108a   :  { %3721 = vpow2.f32 %v3274_v19 }
0x108b   :  { %3723 = vpow2.f32 %v3275_v29 }
0x108c   :  { %3725 = vtanh.f32 %v2975_v20 }
0x108d   :  { %3727 = vpow2.f32 %v3276_v5 }
0x1094   :  { %v3722_v32 = vpop.eup %3721 }
0x1095   :  { %v2985_v41 = vadd.f32 1.0, %v3722_v32  ;;  %v3724_v62 = vpop.eup %3723 }
0x1096   :  { %v2986_v49 = vadd.f32 1.0, %v3724_v62  ;;  %v3726_v40 = vpop.eup %3725 }
0x1097   :  { %3729 = vrcp.f32 %v2985_v41  ;;  %v3728_v10 = vpop.eup %3727 }
0x1098   :  { %3731 = vrcp.f32 %v2986_v49  ;;  %v2987_v6 = vadd.f32 1.0, %v3728_v10 }
0x109a   :  { %3733 = vrcp.f32 %v2987_v6 }
0x10a1   :  { %v3730_v15 = vpop.eup %3729 }
0x10a2   :  { %v2996_v50 = vmul.f32 %v3730_v15, %v3726_v40  ;;  %v3732_v34 = vpop.eup %3731 }
0x10a3   :  { %v2995_v16 = vmul.f32 %v3732_v34, %v5164_v54 }
0x10a4   :  { %v3734_v9 = vpop.eup %3733 }
0x10a5   :  { %v2997_v53 = vadd.f32 %v2996_v50, %v2995_v16 }
0x10a7   :  { %3735 = vtanh.f32 %v2997_v53 }
0x10b1   :  { %v3736_v42 = vpop.eup %3735 }
0x10b2   :  { %v2999_v44 = vmul.f32 %v3736_v42, %v3734_v9 }
0x10b4   :  { %v3000_v3 = vpack.c.bf16 %v2999_v44, %v2999_v44 }
0x10b6   :  { %3312 = vmatmul.mubr.bf16.vlgmr.msra.gmra.mrb[96].mxu0 %v3000_v3 }
0x1189   :  { %v3106_v37 = vpop.f32.mrb[96].mxu0 }
0x118a   :  { %v3107_v7 = vadd.f32 %v3277_v18, %v3106_v37  ;;  %v3313_v61 = vpop.f32.mrb[97].mxu0 }
0x118b   :  { %v3109_v14 = vpop.f32.mrb[98].mxu0 }
0x118c   :  { %3112 = vst [vmem:[%s5215_s9] sm:$0xff] %v3107_v7  ;;  %v3314_v59 = vpop.f32.mrb[99].mxu0 }
0x118d   :  { %3117 = vsyncpa [#allocation6], 1 }
0x118e   :  { %3118 = vsyncpa [#allocation8], 1 }

</bundles_post_ra>
